<compile_context>
chip_gen: v5e
topology: v5e:2x2
jax: 0.10.0
libtpu: 0.0.40
codegen_flags: <defaults>
</compile_context>

<pallas_src>
import math
from functools import partial

import jax
import jax.numpy as jnp
from jax.experimental import pallas as pl
from jax.experimental.pallas import tpu as pltpu


def _vmem_limit_bytes():
    # Generation-aware scoped-VMEM budget: ~60% of physical per-core VMEM,
    # capped at 100 MiB (v5e/v6e: 128 MiB physical, v7x: only 64 MiB per TensorCore).
    try:
        cap = getattr(pltpu.get_tpu_info(), "vmem_capacity_bytes", None)
        if cap:
            return int(min(cap * 6 // 10, 100 * 1024 * 1024))
    except Exception:
        pass
    return 40 * 1024 * 1024  # conservative fallback, safe on every generation


VMEM_LIMIT = _vmem_limit_bytes()
NEG_MASK_BIAS = -1e30  # finite "masked" bias -> no NaN for fully-masked rows


def _pick_tile(dim, pref, align):
    """Largest legal tile <= pref: full dim if it fits, else an `align`-multiple divisor."""
    if dim <= pref:
        return dim
    t = (pref // align) * align
    while t >= align:
        if dim % t == 0:
            return t
        t -= align
    return dim  # full-dim fallback (always legal)


# ----------------------------------------------------------------------------
# Generic tiled matmul (bf16 MXU operands, f32 accumulator) + fused bias/residual
# ----------------------------------------------------------------------------

def _make_mm_kernel(has_bias, has_res):
    def kernel(*refs):
        x_ref, w_ref = refs[0], refs[1]
        pos = 2
        b_ref = refs[pos] if has_bias else None
        pos += int(has_bias)
        r_ref = refs[pos] if has_res else None
        pos += int(has_res)
        o_ref, acc_ref = refs[pos], refs[pos + 1]

        @pl.when(pl.program_id(2) == 0)
        def _():
            acc_ref[...] = jnp.zeros_like(acc_ref)

        acc_ref[...] += jnp.dot(x_ref[...].astype(jnp.bfloat16),
                                w_ref[...].astype(jnp.bfloat16),
                                preferred_element_type=jnp.float32)

        @pl.when(pl.program_id(2) == pl.num_programs(2) - 1)
        def _():
            out = acc_ref[...]
            if has_bias:
                out = out + b_ref[...]
            if has_res:
                out = out + r_ref[...].astype(jnp.float32)
            o_ref[...] = out.astype(o_ref.dtype)

    return kernel


def tiled_matmul(x, w, bias=None, residual=None, out_dtype=jnp.bfloat16):
    M, K = x.shape
    N = w.shape[1]
    tm = _pick_tile(M, 512, 8)
    tn = _pick_tile(N, 512, 128)
    tk = _pick_tile(K, 1024, 128)
    grid = (M // tm, N // tn, K // tk)

    in_specs = [pl.BlockSpec((tm, tk), lambda i, j, k: (i, k)),
                pl.BlockSpec((tk, tn), lambda i, j, k: (k, j))]
    args = [x, w]
    if bias is not None:
        in_specs.append(pl.BlockSpec((1, tn), lambda i, j, k: (0, j)))
        args.append(bias.reshape(1, N))
    if residual is not None:
        in_specs.append(pl.BlockSpec((tm, tn), lambda i, j, k: (i, j)))
        args.append(residual)

    return pl.pallas_call(
        _make_mm_kernel(bias is not None, residual is not None),
        out_shape=jax.ShapeDtypeStruct((M, N), out_dtype),
        grid_spec=pltpu.PrefetchScalarGridSpec(
            num_scalar_prefetch=0, grid=grid, in_specs=in_specs,
            out_specs=pl.BlockSpec((tm, tn), lambda i, j, k: (i, j)),
            scratch_shapes=[pltpu.VMEM((tm, tn), jnp.float32)]),
        compiler_params=pltpu.CompilerParams(
            dimension_semantics=("parallel", "parallel", "arbitrary"),
            vmem_limit_bytes=VMEM_LIMIT),
        cost_estimate=pl.CostEstimate(
            flops=2 * M * N * K, transcendentals=0,
            bytes_accessed=2 * (M * K + K * N + M * N)),
    )(*args)


# ----------------------------------------------------------------------------
# U-Net skip combiner: x @ W_a + skip @ W_b (no HBM concat)
# ----------------------------------------------------------------------------

def _skip_kernel(x_ref, s_ref, wa_ref, wb_ref, o_ref, acc_ref):
    @pl.when(pl.program_id(2) == 0)
    def _():
        acc_ref[...] = jnp.zeros_like(acc_ref)
    acc_ref[...] += (
        jnp.dot(x_ref[...].astype(jnp.bfloat16), wa_ref[...].astype(jnp.bfloat16),
                preferred_element_type=jnp.float32)
        + jnp.dot(s_ref[...].astype(jnp.bfloat16), wb_ref[...].astype(jnp.bfloat16),
                  preferred_element_type=jnp.float32))

    @pl.when(pl.program_id(2) == pl.num_programs(2) - 1)
    def _():
        o_ref[...] = acc_ref[...].astype(o_ref.dtype)


def skip_combine(x2d, sc2d, wa, wb):
    M, K = x2d.shape
    N = wa.shape[1]
    tm = _pick_tile(M, 512, 8)
    tn = _pick_tile(N, 512, 128)
    tk = _pick_tile(K, 1024, 128)
    grid = (M // tm, N // tn, K // tk)
    return pl.pallas_call(
        _skip_kernel,
        out_shape=jax.ShapeDtypeStruct((M, N), jnp.bfloat16),
        grid_spec=pltpu.PrefetchScalarGridSpec(
            num_scalar_prefetch=0, grid=grid,
            in_specs=[pl.BlockSpec((tm, tk), lambda i, j, k: (i, k)),
                      pl.BlockSpec((tm, tk), lambda i, j, k: (i, k)),
                      pl.BlockSpec((tk, tn), lambda i, j, k: (k, j)),
                      pl.BlockSpec((tk, tn), lambda i, j, k: (k, j))],
            out_specs=pl.BlockSpec((tm, tn), lambda i, j, k: (i, j)),
            scratch_shapes=[pltpu.VMEM((tm, tn), jnp.float32)]),
        compiler_params=pltpu.CompilerParams(
            dimension_semantics=("parallel", "parallel", "arbitrary"),
            vmem_limit_bytes=VMEM_LIMIT),
        cost_estimate=pl.CostEstimate(
            flops=4 * M * N * K, transcendentals=0,
            bytes_accessed=2 * (2 * M * K + 2 * K * N + M * N)),
    )(x2d, sc2d, wa, wb)


# ----------------------------------------------------------------------------
# Fused AdaptiveRMSNorm + qkv projection + rotary.
# Weight stored as (3, H, H); output written as (B, 3, N, H) bf16 so attention can
# read q/k/v blocks directly (no HBM transpose).  Norm is computed once per row
# tile (j == 0) into a bf16 VMEM scratch; rotary is applied to the q/k sections.
# ----------------------------------------------------------------------------

def _qkv_kernel(x_ref, g_ref, b_ref, w_ref, cos_ref, sin_ref, o_ref, xn_scr,
                *, scale, d):
    j = pl.program_id(2)  # 0 = q, 1 = k, 2 = v

    @pl.when(j == 0)
    def _():
        xf = x_ref[0].astype(jnp.float32)
        ssq = jnp.sum(xf * xf, axis=-1, keepdims=True)
        normed = xf * jax.lax.rsqrt(jnp.maximum(ssq, 1e-24)) * scale
        xn_scr[...] = (normed * g_ref[0] + b_ref[0]).astype(jnp.bfloat16)

    h = jnp.dot(xn_scr[...], w_ref[0], preferred_element_type=jnp.float32)  # (tn, H)

    @pl.when(j < 2)  # q and k get rotary
    def _():
        tn, hdim = h.shape
        h3 = h.reshape(tn, hdim // d, d)
        rot = jnp.concatenate([-h3[..., d // 2:], h3[..., :d // 2]], axis=-1)
        cos = cos_ref[...][:, None, :]
        sin = sin_ref[...][:, None, :]
        o_ref[0, 0] = (h3 * cos + rot * sin).reshape(tn, hdim).astype(o_ref.dtype)

    @pl.when(j == 2)  # v passes through
    def _():
        o_ref[0, 0] = h.astype(o_ref.dtype)


def qkv_norm_rotary(x, gamma, beta, w3, cos, sin):
    B, N, H = x.shape
    d = cos.shape[-1]
    tn = _pick_tile(N, 256, 8)
    return pl.pallas_call(
        partial(_qkv_kernel, scale=math.sqrt(H), d=d),
        out_shape=jax.ShapeDtypeStruct((B, 3, N, H), jnp.bfloat16),
        grid_spec=pltpu.PrefetchScalarGridSpec(
            num_scalar_prefetch=0, grid=(B, N // tn, 3),
            in_specs=[
                pl.BlockSpec((1, tn, H), lambda b, i, j: (b, i, 0)),
                pl.BlockSpec((1, 1, H), lambda b, i, j: (b, 0, 0)),
                pl.BlockSpec((1, 1, H), lambda b, i, j: (b, 0, 0)),
                pl.BlockSpec((1, H, H), lambda b, i, j: (j, 0, 0)),
                pl.BlockSpec((tn, d), lambda b, i, j: (i, 0)),
                pl.BlockSpec((tn, d), lambda b, i, j: (i, 0)),
            ],
            out_specs=pl.BlockSpec((1, 1, tn, H), lambda b, i, j: (b, j, i, 0)),
            scratch_shapes=[pltpu.VMEM((tn, H), jnp.bfloat16)]),
        compiler_params=pltpu.CompilerParams(
            dimension_semantics=("parallel", "parallel", "arbitrary"),
            vmem_limit_bytes=VMEM_LIMIT),
        cost_estimate=pl.CostEstimate(
            flops=2 * B * N * 3 * H * H, transcendentals=0,
            bytes_accessed=2 * (4 * B * N * H + 3 * H * H)),
    )(x, gamma.reshape(B, 1, H), beta.reshape(B, 1, H), w3, cos, sin)


# ----------------------------------------------------------------------------
# Fused AdaptiveRMSNorm + FF first projection (+ bias + GELU); norm hoisted out
# of the output-column (j) loop via a bf16 VMEM scratch.
# ----------------------------------------------------------------------------

def _ff_norm_kernel(x_ref, g_ref, b_ref, w_ref, bias_ref, o_ref, xn_scr,
                    *, scale, act_gelu):
    @pl.when(pl.program_id(2) == 0)
    def _():
        xf = x_ref[0].astype(jnp.float32)
        ssq = jnp.sum(xf * xf, axis=-1, keepdims=True)
        normed = xf * jax.lax.rsqrt(jnp.maximum(ssq, 1e-24)) * scale
        xn_scr[...] = (normed * g_ref[0] + b_ref[0]).astype(jnp.bfloat16)

    h = jnp.dot(xn_scr[...], w_ref[...], preferred_element_type=jnp.float32)
    h = h + bias_ref[...]
    if act_gelu:
        # TODO(synk): PyTorch nn.GELU default is exact erf; tanh approximation used here.
        h = jax.nn.gelu(h, approximate=True)
    o_ref[0] = h.astype(o_ref.dtype)


def fused_norm_matmul(x, gamma, beta, w, bias, act_gelu=False):
    B, N, H = x.shape
    Hout = w.shape[1]
    tn = _pick_tile(N, 256, 8)
    tno = _pick_tile(Hout, 512, 128)
    return pl.pallas_call(
        partial(_ff_norm_kernel, scale=math.sqrt(H), act_gelu=act_gelu),
        out_shape=jax.ShapeDtypeStruct((B, N, Hout), jnp.bfloat16),
        grid_spec=pltpu.PrefetchScalarGridSpec(
            num_scalar_prefetch=0, grid=(B, N // tn, Hout // tno),
            in_specs=[
                pl.BlockSpec((1, tn, H), lambda b, i, j: (b, i, 0)),
                pl.BlockSpec((1, 1, H), lambda b, i, j: (b, 0, 0)),
                pl.BlockSpec((1, 1, H), lambda b, i, j: (b, 0, 0)),
                pl.BlockSpec((H, tno), lambda b, i, j: (0, j)),
                pl.BlockSpec((1, tno), lambda b, i, j: (0, j)),
            ],
            out_specs=pl.BlockSpec((1, tn, tno), lambda b, i, j: (b, i, j)),
            scratch_shapes=[pltpu.VMEM((tn, H), jnp.bfloat16)]),
        compiler_params=pltpu.CompilerParams(
            dimension_semantics=("parallel", "parallel", "arbitrary"),
            vmem_limit_bytes=VMEM_LIMIT),
        cost_estimate=pl.CostEstimate(
            flops=2 * B * N * H * Hout, transcendentals=B * N * Hout,
            bytes_accessed=2 * (B * N * (H + Hout) + H * Hout)),
    )(x, gamma.reshape(B, 1, H), beta.reshape(B, 1, H), w, bias.reshape(1, Hout))


# ----------------------------------------------------------------------------
# Head-batched flash-style attention (online softmax).  Reads q/k/v blocks from
# the (B, 3, N, H) qkv buffer (rotary already applied), writes (B, N, H) bf16
# directly (lane-dense, no HBM transpose).
# ----------------------------------------------------------------------------

def _flash_body(q_ref, k_ref, v_ref, bias, o_ref, m_sc, l_sc, acc_sc,
                scale, heads, d):
    ki = pl.program_id(2)

    @pl.when(ki == 0)
    def _():
        m_sc[...] = jnp.full(m_sc.shape, -jnp.inf, jnp.float32)
        l_sc[...] = jnp.zeros(l_sc.shape, jnp.float32)
        acc_sc[...] = jnp.zeros(acc_sc.shape, jnp.float32)

    tq, tk = q_ref.shape[2], k_ref.shape[2]
    q = jnp.swapaxes(q_ref[0, 0].reshape(tq, heads, d), 0, 1)  # (h, tq, d) bf16
    k = jnp.swapaxes(k_ref[0, 0].reshape(tk, heads, d), 0, 1)  # (h, tk, d) bf16
    v = jnp.swapaxes(v_ref[0, 0].reshape(tk, heads, d), 0, 1)  # (h, tk, d) bf16

    s = jnp.einsum("hqd,hkd->hqk", q, k,
                   preferred_element_type=jnp.float32) * scale          # (h, tq, tk)
    if bias is not None:
        s = s + bias                                                     # (1, 1, tk)

    m_prev = m_sc[...]
    m_new = jnp.maximum(m_prev, jnp.max(s, axis=-1, keepdims=True))
    alpha = jnp.exp(m_prev - m_new)
    p = jnp.exp(s - m_new)
    l_sc[...] = alpha * l_sc[...] + jnp.sum(p, axis=-1, keepdims=True)
    acc_sc[...] = alpha * acc_sc[...] + jnp.einsum(
        "hqk,hkd->hqd", p.astype(jnp.bfloat16), v,
        preferred_element_type=jnp.float32)
    m_sc[...] = m_new

    @pl.when(ki == pl.num_programs(2) - 1)
    def _():
        out = acc_sc[...] / l_sc[...]                                    # exact normalization
        o_ref[0] = jnp.swapaxes(out, 0, 1).reshape(tq, heads * d).astype(o_ref.dtype)


def _flash_kernel_masked(q_ref, k_ref, v_ref, bias_ref, o_ref, m_sc, l_sc, acc_sc,
                         *, scale, heads, d):
    _flash_body(q_ref, k_ref, v_ref, bias_ref[...], o_ref, m_sc, l_sc, acc_sc,
                scale, heads, d)


def _flash_kernel_nomask(q_ref, k_ref, v_ref, o_ref, m_sc, l_sc, acc_sc,
                         *, scale, heads, d):
    _flash_body(q_ref, k_ref, v_ref, None, o_ref, m_sc, l_sc, acc_sc,
                scale, heads, d)


def flash_attention(qkv, mask_bias, heads):
    B, _, N, H = qkv.shape
    d = H // heads
    tq = _pick_tile(N, 256, 8)
    tk = _pick_tile(N, 512, 128)  # lane dim of the score/bias tiles: keep 128-aligned
    grid = (B, N // tq, N // tk)

    in_specs = [
        pl.BlockSpec((1, 1, tq, H), lambda b, qi, ki: (b, 0, qi, 0)),
        pl.BlockSpec((1, 1, tk, H), lambda b, qi, ki: (b, 1, ki, 0)),
        pl.BlockSpec((1, 1, tk, H), lambda b, qi, ki: (b, 2, ki, 0)),
    ]
    args = [qkv, qkv, qkv]
    if mask_bias is not None:
        in_specs.append(pl.BlockSpec((1, 1, tk), lambda b, qi, ki: (b, 0, ki)))
        args.append(mask_bias)
        kernel = partial(_flash_kernel_masked, scale=1.0 / math.sqrt(d),
                         heads=heads, d=d)
    else:
        kernel = partial(_flash_kernel_nomask, scale=1.0 / math.sqrt(d),
                         heads=heads, d=d)

    return pl.pallas_call(
        kernel,
        out_shape=jax.ShapeDtypeStruct((B, N, H), jnp.bfloat16),
        grid_spec=pltpu.PrefetchScalarGridSpec(
            num_scalar_prefetch=0, grid=grid, in_specs=in_specs,
            out_specs=pl.BlockSpec((1, tq, H), lambda b, qi, ki: (b, qi, 0)),
            scratch_shapes=[pltpu.VMEM((heads, tq, 1), jnp.float32),
                            pltpu.VMEM((heads, tq, 1), jnp.float32),
                            pltpu.VMEM((heads, tq, d), jnp.float32)]),
        compiler_params=pltpu.CompilerParams(
            dimension_semantics=("parallel", "parallel", "arbitrary"),
            vmem_limit_bytes=VMEM_LIMIT),
        cost_estimate=pl.CostEstimate(
            flops=4 * B * heads * N * N * d, transcendentals=B * heads * N * N,
            bytes_accessed=2 * 4 * B * N * H),
    )(*args)


# ----------------------------------------------------------------------------
# Final RMSNorm (f32 math, f32 output)
# ----------------------------------------------------------------------------

def _rmsnorm_kernel(x_ref, w_ref, o_ref, *, eps):
    x = x_ref[0].astype(jnp.float32)
    ms = jnp.mean(x * x, axis=-1, keepdims=True)
    o_ref[0] = (x * jax.lax.rsqrt(ms + eps) * w_ref[...]).astype(o_ref.dtype)


def rmsnorm(x, weight):
    B, N, H = x.shape
    tn = _pick_tile(N, 512, 8)
    eps = float(jnp.finfo(jnp.float32).eps)  # torch nn.RMSNorm default (eps=None -> finfo.eps)
    return pl.pallas_call(
        partial(_rmsnorm_kernel, eps=eps),
        out_shape=jax.ShapeDtypeStruct((B, N, H), jnp.float32),
        grid_spec=pltpu.PrefetchScalarGridSpec(
            num_scalar_prefetch=0, grid=(B, N // tn),
            in_specs=[pl.BlockSpec((1, tn, H), lambda b, i: (b, i, 0)),
                      pl.BlockSpec((1, H), lambda b, i: (0, 0))],
            out_specs=pl.BlockSpec((1, tn, H), lambda b, i: (b, i, 0))),
        compiler_params=pltpu.CompilerParams(
            dimension_semantics=("parallel", "parallel"),
            vmem_limit_bytes=VMEM_LIMIT),
    )(x, weight.reshape(1, H))


# ----------------------------------------------------------------------------
# Parameter init (deterministic, synthetic) + forward glue
# ----------------------------------------------------------------------------

def init_params(key, hidden, depth, heads, intermediate, use_unet_skip):
    assert depth % 2 == 0
    keys = iter(jax.random.split(key, depth * 16 + 1))
    nk = lambda: next(keys)
    nrm = lambda shape, s: jax.random.normal(nk(), shape, jnp.float32) * s
    bf16 = lambda a: a.astype(jnp.bfloat16)

    layers, cond_ws, cond_bs = [], [], []
    for ind in range(depth):
        layer_idx = ind + 1
        has_skip = use_unet_skip and layer_idx > depth // 2
        skip_w = nrm((2 * hidden, hidden), 1.0 / math.sqrt(2 * hidden)) if has_skip else None

        # conditioning projections for the two AdaptiveRMSNorms of this layer
        attn_gw = nrm((hidden, hidden), 0.02); attn_gb = jnp.ones((hidden,), jnp.float32)
        attn_bw = nrm((hidden, hidden), 0.02); attn_bb = jnp.zeros((hidden,), jnp.float32)
        ff_gw = nrm((hidden, hidden), 0.02);   ff_gb = jnp.ones((hidden,), jnp.float32)
        ff_bw = nrm((hidden, hidden), 0.02);   ff_bb = jnp.zeros((hidden,), jnp.float32)
        cond_ws += [attn_gw, attn_bw, ff_gw, ff_bw]
        cond_bs += [attn_gb, attn_bb, ff_gb, ff_bb]

        layers.append({
            "skip_wa": bf16(skip_w[:hidden]) if has_skip else None,
            "skip_wb": bf16(skip_w[hidden:]) if has_skip else None,
            "wqkv": bf16(nrm((3, hidden, hidden), 1.0 / math.sqrt(hidden))),  # (q|k|v, in, out)
            "wout": bf16(nrm((hidden, hidden), 1.0 / math.sqrt(hidden))),
            "w1": bf16(nrm((hidden, intermediate), 1.0 / math.sqrt(hidden))),
            "b1": jnp.zeros((intermediate,), jnp.float32),
            "w2": bf16(nrm((intermediate, hidden), 1.0 / math.sqrt(intermediate))),
            "b2": jnp.zeros((hidden,), jnp.float32),
        })

    # all layers' gamma/beta conditioning linears stacked into ONE matmul
    cond_w = bf16(jnp.concatenate(cond_ws, axis=1))  # (H, depth*4*H)
    cond_b = jnp.concatenate(cond_bs, axis=0)        # (depth*4*H,)
    return {"layers": layers, "cond_w": cond_w, "cond_b": cond_b,
            "final_w": jnp.ones((hidden,), jnp.float32)}


def rotary_tables(seq_len, head_dim, theta=10000.0):
    inv_freq = 1.0 / (theta ** (jnp.arange(0, head_dim, 2, dtype=jnp.float32) / head_dim))
    t = jnp.arange(seq_len, dtype=jnp.float32)
    freqs = jnp.einsum("i,j->ij", t, inv_freq)
    freqs = jnp.concatenate([freqs, freqs], axis=-1)  # (N, head_dim)
    return jnp.cos(freqs), jnp.sin(freqs)


def transformer_forward(params, x, mask, adaptive_rmsnorm_cond, heads):
    B, N, H = x.shape
    d = H // heads
    depth = len(params["layers"])

    x = x.astype(jnp.bfloat16)  # activation/residual stream carried in bf16 between kernels
    cos, sin = rotary_tables(N, d)

    if mask is None:
        mask_bias = None
    else:
        mask_bias = jnp.where(mask, 0.0, NEG_MASK_BIAS).astype(jnp.float32).reshape(B, 1, N)

    if adaptive_rmsnorm_cond is not None:
        # all per-layer gamma/beta conditioning projections batched into one matmul
        gb_all = tiled_matmul(adaptive_rmsnorm_cond, params["cond_w"],
                              bias=params["cond_b"], out_dtype=jnp.float32)
        gb_all = gb_all.reshape(B, depth, 4, H)
    else:
        gb_all = None
    ones = jnp.ones((B, H), jnp.float32)
    zeros = jnp.zeros((B, H), jnp.float32)

    skip_connects = []
    for li, lp in enumerate(params["layers"]):
        if lp["skip_wa"] is None:
            skip_connects.append(x)
        else:
            sc = skip_connects.pop()
            x = skip_combine(x.reshape(B * N, H), sc.reshape(B * N, H),
                             lp["skip_wa"], lp["skip_wb"]).reshape(B, N, H)

        if gb_all is not None:
            attn_g, attn_b = gb_all[:, li, 0], gb_all[:, li, 1]
            ff_g, ff_b = gb_all[:, li, 2], gb_all[:, li, 3]
        else:
            attn_g, attn_b, ff_g, ff_b = ones, zeros, ones, zeros

        # --- attention block: fused(norm + qkv + rotary) -> flash attention -> out-proj + residual
        qkv = qkv_norm_rotary(x, attn_g, attn_b, lp["wqkv"], cos, sin)   # (B, 3, N, H) bf16
        attn = flash_attention(qkv, mask_bias, heads)                    # (B, N, H) bf16
        x = tiled_matmul(attn.reshape(B * N, H), lp["wout"],
                         residual=x.reshape(B * N, H)).reshape(B, N, H)

        # --- feed-forward block: fused(norm + W1 + bias + GELU) -> fused(W2 + bias + residual)
        # TODO(synk): FeedForward's `mask` argument is ignored (assumed no-op in the reference).
        h1 = fused_norm_matmul(x, ff_g, ff_b, lp["w1"], lp["b1"], act_gelu=True)
        inter = h1.shape[-1]
        x = tiled_matmul(h1.reshape(B * N, inter), lp["w2"], bias=lp["b2"],
                         residual=x.reshape(B * N, H)).reshape(B, N, H)

    return rmsnorm(x, params["final_w"])


# ----------------------------------------------------------------------------
# Demo
# ----------------------------------------------------------------------------

if __name__ == "__main__":
    hidden, depth, heads, intermediate = 32, 2, 4, 64
    B, N = 2, 8

    key = jax.random.PRNGKey(0)
    k_params, k_x, k_cond = jax.random.split(key, 3)

    params = init_params(k_params, hidden, depth, heads, intermediate,
                         use_unet_skip=True)
    x = jax.random.normal(k_x, (B, N, hidden), jnp.float32)
    cond = jax.random.normal(k_cond, (B, hidden), jnp.float32)
    mask = jnp.ones((B, N), dtype=bool)

    fwd = jax.jit(transformer_forward, static_argnums=(4,))
    out = jax.block_until_ready(fwd(params, x, mask, cond, heads))

    assert out.shape == (B, N, hidden), out.shape
    assert bool(jnp.all(jnp.isfinite(out)))
    print("KERNEL_OK")
</pallas_src>

<mosaic_0001>
module attributes {stable_mosaic.version = 11 : i64} {
  func.func @kernel(%arg0: i32, %arg1: i32, %arg2: i32, %arg3: memref<2x32xf32, #tpu.memory_space<vmem>>, %arg4: memref<32x256xbf16, #tpu.memory_space<vmem>>, %arg5: memref<1x256xf32, #tpu.memory_space<vmem>>, %arg6: memref<2x256xf32, #tpu.memory_space<vmem>>, %arg7: memref<2x256xf32, #tpu.memory_space<vmem>>) attributes {dimension_semantics = [#tpu.dimension_semantics<parallel>, #tpu.dimension_semantics<parallel>, #tpu.dimension_semantics<arbitrary>], iteration_bounds = array<i64: 1, 1, 1>, scalar_prefetch = 0 : i64, scratch_operands = 1 : i64, tpu.core_type = #tpu.core_type<tc>, window_params = [{transform_indices = @transform_0, window_bounds = array<i64: 2, 32>}, {transform_indices = @transform_1, window_bounds = array<i64: 32, 256>}, {transform_indices = @transform_2, window_bounds = array<i64: 1, 256>}, {transform_indices = @transform_3, window_bounds = array<i64: 2, 256>}]} {
    %c0_i32 = arith.constant 0 : i32
    %0 = arith.cmpi eq, %arg2, %c0_i32 : i32
    %1 = arith.extui %0 : i1 to i32
    %c0_i32_0 = arith.constant 0 : i32
    %2 = arith.cmpi ne, %1, %c0_i32_0 : i32
    scf.if %2 {
      %cst_10 = arith.constant 0.000000e+00 : f32
      %13 = vector.broadcast %cst_10 : f32 to vector<2x256xf32>
      %c0_11 = arith.constant 0 : index
      %c0_12 = arith.constant 0 : index
      %14 = vector.load %arg7[%c0_11, %c0_12] : memref<2x256xf32, #tpu.memory_space<vmem>>, vector<2x256xf32>
      tpu.vector_store %arg7[%c0_11, %c0_12], %13 {strides = array<i32>} : memref<2x256xf32, #tpu.memory_space<vmem>>, vector<2x256xf32>,
    } else {
    }
    %c0 = arith.constant 0 : index
    %c0_1 = arith.constant 0 : index
    %3 = vector.load %arg7[%c0, %c0_1] : memref<2x256xf32, #tpu.memory_space<vmem>>, vector<2x256xf32>
    %c0_2 = arith.constant 0 : index
    %c0_3 = arith.constant 0 : index
    %4 = vector.load %arg3[%c0_2, %c0_3] : memref<2x32xf32, #tpu.memory_space<vmem>>, vector<2x32xf32>
    %5 = arith.truncf %4 : vector<2x32xf32> to vector<2x32xbf16>
    %c0_4 = arith.constant 0 : index
    %c0_5 = arith.constant 0 : index
    %6 = vector.load %arg4[%c0_4, %c0_5] : memref<32x256xbf16, #tpu.memory_space<vmem>>, vector<32x256xbf16>
    %cst = arith.constant dense<0.000000e+00> : vector<2x256xf32>
    %7 = tpu.matmul %5, %6, %cst {dimension_numbers = #tpu.dot_dimension_numbers<[1], [0], [0], [1], [0, 0, 1, 1], [], []>} : vector<2x32xbf16>, vector<32x256xbf16>, vector<2x256xf32> -> vector<2x256xf32>
    %8 = arith.addf %3, %7 : vector<2x256xf32>
    %c0_6 = arith.constant 0 : index
    %c0_7 = arith.constant 0 : index
    %9 = vector.load %arg7[%c0_6, %c0_7] : memref<2x256xf32, #tpu.memory_space<vmem>>, vector<2x256xf32>
    tpu.vector_store %arg7[%c0_6, %c0_7], %8 {strides = array<i32>} : memref<2x256xf32, #tpu.memory_space<vmem>>, vector<2x256xf32>,
    %c0_i32_8 = arith.constant 0 : i32
    %10 = arith.cmpi eq, %arg2, %c0_i32_8 : i32
    %11 = arith.extui %10 : i1 to i32
    %c0_i32_9 = arith.constant 0 : i32
    %12 = arith.cmpi ne, %11, %c0_i32_9 : i32
    scf.if %12 {
      %c0_10 = arith.constant 0 : index
      %c0_11 = arith.constant 0 : index
      %13 = vector.load %arg7[%c0_10, %c0_11] : memref<2x256xf32, #tpu.memory_space<vmem>>, vector<2x256xf32>
      %c0_12 = arith.constant 0 : index
      %c0_13 = arith.constant 0 : index
      %14 = vector.load %arg5[%c0_12, %c0_13] : memref<1x256xf32, #tpu.memory_space<vmem>>, vector<1x256xf32>
      %15 = vector.broadcast %14 : vector<1x256xf32> to vector<2x256xf32>
      %16 = arith.addf %13, %15 : vector<2x256xf32>
      %c0_14 = arith.constant 0 : index
      %c0_15 = arith.constant 0 : index
      %17 = vector.load %arg6[%c0_14, %c0_15] : memref<2x256xf32, #tpu.memory_space<vmem>>, vector<2x256xf32>
      tpu.vector_store %arg6[%c0_14, %c0_15], %16 {strides = array<i32>} : memref<2x256xf32, #tpu.memory_space<vmem>>, vector<2x256xf32>,
    } else {
    }
    return
  }
  func.func @transform_0(%arg0: i32, %arg1: i32, %arg2: i32) -> (i32, i32) {
    %c0_i32 = arith.constant 0 : i32
    return %arg0, %arg2 : i32, i32
  }
  func.func @transform_1(%arg0: i32, %arg1: i32, %arg2: i32) -> (i32, i32) {
    %c0_i32 = arith.constant 0 : i32
    return %arg2, %arg1 : i32, i32
  }
  func.func @transform_2(%arg0: i32, %arg1: i32, %arg2: i32) -> (i32, i32) {
    %c0_i32 = arith.constant 0 : i32
    %c0_i32_0 = arith.constant 0 : i32
    return %c0_i32, %arg1 : i32, i32
  }
  func.func @transform_3(%arg0: i32, %arg1: i32, %arg2: i32) -> (i32, i32) {
    %c0_i32 = arith.constant 0 : i32
    return %arg0, %arg1 : i32, i32
  }
}

module attributes {stable_mosaic.version = 11 : i64} {
  func.func @kernel(%arg0: i32, %arg1: i32, %arg2: i32, %arg3: memref<16x32xbf16, #tpu.memory_space<vmem>>, %arg4: memref<32x32xbf16, #tpu.memory_space<vmem>>, %arg5: memref<16x32xbf16, #tpu.memory_space<vmem>>, %arg6: memref<16x32xbf16, #tpu.memory_space<vmem>>, %arg7: memref<16x32xf32, #tpu.memory_space<vmem>>) attributes {dimension_semantics = [#tpu.dimension_semantics<parallel>, #tpu.dimension_semantics<parallel>, #tpu.dimension_semantics<arbitrary>], iteration_bounds = array<i64: 1, 1, 1>, scalar_prefetch = 0 : i64, scratch_operands = 1 : i64, tpu.core_type = #tpu.core_type<tc>, window_params = [{transform_indices = @transform_0, window_bounds = array<i64: 16, 32>}, {transform_indices = @transform_1, window_bounds = array<i64: 32, 32>}, {transform_indices = @transform_2, window_bounds = array<i64: 16, 32>}, {transform_indices = @transform_3, window_bounds = array<i64: 16, 32>}]} {
    %c0_i32 = arith.constant 0 : i32
    %0 = arith.cmpi eq, %arg2, %c0_i32 : i32
    %1 = arith.extui %0 : i1 to i32
    %c0_i32_0 = arith.constant 0 : i32
    %2 = arith.cmpi ne, %1, %c0_i32_0 : i32
    scf.if %2 {
      %cst_10 = arith.constant 0.000000e+00 : f32
      %12 = vector.broadcast %cst_10 : f32 to vector<16x32xf32>
      %c0_11 = arith.constant 0 : index
      %c0_12 = arith.constant 0 : index
      %13 = vector.load %arg7[%c0_11, %c0_12] : memref<16x32xf32, #tpu.memory_space<vmem>>, vector<16x32xf32>
      tpu.vector_store %arg7[%c0_11, %c0_12], %12 {strides = array<i32>} : memref<16x32xf32, #tpu.memory_space<vmem>>, vector<16x32xf32>,
    } else {
    }
    %c0 = arith.constant 0 : index
    %c0_1 = arith.constant 0 : index
    %3 = vector.load %arg7[%c0, %c0_1] : memref<16x32xf32, #tpu.memory_space<vmem>>, vector<16x32xf32>
    %c0_2 = arith.constant 0 : index
    %c0_3 = arith.constant 0 : index
    %4 = vector.load %arg3[%c0_2, %c0_3] : memref<16x32xbf16, #tpu.memory_space<vmem>>, vector<16x32xbf16>
    %c0_4 = arith.constant 0 : index
    %c0_5 = arith.constant 0 : index
    %5 = vector.load %arg4[%c0_4, %c0_5] : memref<32x32xbf16, #tpu.memory_space<vmem>>, vector<32x32xbf16>
    %cst = arith.constant dense<0.000000e+00> : vector<16x32xf32>
    %6 = tpu.matmul %4, %5, %cst {dimension_numbers = #tpu.dot_dimension_numbers<[1], [0], [0], [1], [0, 0, 1, 1], [], []>} : vector<16x32xbf16>, vector<32x32xbf16>, vector<16x32xf32> -> vector<16x32xf32>
    %7 = arith.addf %3, %6 : vector<16x32xf32>
    %c0_6 = arith.constant 0 : index
    %c0_7 = arith.constant 0 : index
    %8 = vector.load %arg7[%c0_6, %c0_7] : memref<16x32xf32, #tpu.memory_space<vmem>>, vector<16x32xf32>
    tpu.vector_store %arg7[%c0_6, %c0_7], %7 {strides = array<i32>} : memref<16x32xf32, #tpu.memory_space<vmem>>, vector<16x32xf32>,
    %c0_i32_8 = arith.constant 0 : i32
    %9 = arith.cmpi eq, %arg2, %c0_i32_8 : i32
    %10 = arith.extui %9 : i1 to i32
    %c0_i32_9 = arith.constant 0 : i32
    %11 = arith.cmpi ne, %10, %c0_i32_9 : i32
    scf.if %11 {
      %c0_10 = arith.constant 0 : index
      %c0_11 = arith.constant 0 : index
      %12 = vector.load %arg7[%c0_10, %c0_11] : memref<16x32xf32, #tpu.memory_space<vmem>>, vector<16x32xf32>
      %c0_12 = arith.constant 0 : index
      %c0_13 = arith.constant 0 : index
      %13 = vector.load %arg5[%c0_12, %c0_13] : memref<16x32xbf16, #tpu.memory_space<vmem>>, vector<16x32xbf16>
      %14 = arith.extf %13 : vector<16x32xbf16> to vector<16x32xf32>
      %15 = arith.addf %12, %14 : vector<16x32xf32>
      %16 = arith.truncf %15 : vector<16x32xf32> to vector<16x32xbf16>
      %c0_14 = arith.constant 0 : index
      %c0_15 = arith.constant 0 : index
      %17 = vector.load %arg6[%c0_14, %c0_15] : memref<16x32xbf16, #tpu.memory_space<vmem>>, vector<16x32xbf16>
      tpu.vector_store %arg6[%c0_14, %c0_15], %16 {strides = array<i32>} : memref<16x32xbf16, #tpu.memory_space<vmem>>, vector<16x32xbf16>,
    } else {
    }
    return
  }
  func.func @transform_0(%arg0: i32, %arg1: i32, %arg2: i32) -> (i32, i32) {
    %c0_i32 = arith.constant 0 : i32
    return %arg0, %arg2 : i32, i32
  }
  func.func @transform_1(%arg0: i32, %arg1: i32, %arg2: i32) -> (i32, i32) {
    %c0_i32 = arith.constant 0 : i32
    return %arg2, %arg1 : i32, i32
  }
  func.func @transform_2(%arg0: i32, %arg1: i32, %arg2: i32) -> (i32, i32) {
    %c0_i32 = arith.constant 0 : i32
    return %arg0, %arg1 : i32, i32
  }
  func.func @transform_3(%arg0: i32, %arg1: i32, %arg2: i32) -> (i32, i32) {
    %c0_i32 = arith.constant 0 : i32
    return %arg0, %arg1 : i32, i32
  }
}

module attributes {stable_mosaic.version = 11 : i64} {
  func.func @_flash_kernel_masked(%arg0: i32, %arg1: i32, %arg2: i32, %arg3: memref<1x1x8x32xbf16, #tpu.memory_space<vmem>>, %arg4: memref<1x1x8x32xbf16, #tpu.memory_space<vmem>>, %arg5: memref<1x1x8x32xbf16, #tpu.memory_space<vmem>>, %arg6: memref<1x1x8xf32, #tpu.memory_space<vmem>>, %arg7: memref<1x8x32xbf16, #tpu.memory_space<vmem>>, %arg8: memref<4x8x1xf32, #tpu.memory_space<vmem>>, %arg9: memref<4x8x1xf32, #tpu.memory_space<vmem>>, %arg10: memref<4x8x8xf32, #tpu.memory_space<vmem>>) attributes {dimension_semantics = [#tpu.dimension_semantics<parallel>, #tpu.dimension_semantics<parallel>, #tpu.dimension_semantics<arbitrary>], iteration_bounds = array<i64: 2, 1, 1>, scalar_prefetch = 0 : i64, scratch_operands = 3 : i64, tpu.core_type = #tpu.core_type<tc>, window_params = [{transform_indices = @transform_0, window_bounds = array<i64: 1, 1, 8, 32>}, {transform_indices = @transform_1, window_bounds = array<i64: 1, 1, 8, 32>}, {transform_indices = @transform_2, window_bounds = array<i64: 1, 1, 8, 32>}, {transform_indices = @transform_3, window_bounds = array<i64: 1, 1, 8>}, {transform_indices = @transform_4, window_bounds = array<i64: 1, 8, 32>}]} {
    %c0 = arith.constant 0 : index
    %c0_0 = arith.constant 0 : index
    %c0_1 = arith.constant 0 : index
    %0 = vector.load %arg6[%c0, %c0_0, %c0_1] : memref<1x1x8xf32, #tpu.memory_space<vmem>>, vector<1x1x8xf32>
    %c0_i32 = arith.constant 0 : i32
    %1 = arith.cmpi eq, %arg2, %c0_i32 : i32
    %2 = arith.extui %1 : i1 to i32
    %c0_i32_2 = arith.constant 0 : i32
    %3 = arith.cmpi ne, %2, %c0_i32_2 : i32
    scf.if %3 {
      %cst_39 = arith.constant 0xFF800000 : f32
      %47 = vector.broadcast %cst_39 : f32 to vector<4x8x1xf32>
      %c0_40 = arith.constant 0 : index
      %c0_41 = arith.constant 0 : index
      %c0_42 = arith.constant 0 : index
      %48 = vector.load %arg8[%c0_40, %c0_41, %c0_42] : memref<4x8x1xf32, #tpu.memory_space<vmem>>, vector<4x8x1xf32>
      tpu.vector_store %arg8[%c0_40, %c0_41, %c0_42], %47 {strides = array<i32>} : memref<4x8x1xf32, #tpu.memory_space<vmem>>, vector<4x8x1xf32>,
      %cst_43 = arith.constant 0.000000e+00 : f32
      %49 = vector.broadcast %cst_43 : f32 to vector<4x8x1xf32>
      %c0_44 = arith.constant 0 : index
      %c0_45 = arith.constant 0 : index
      %c0_46 = arith.constant 0 : index
      %50 = vector.load %arg9[%c0_44, %c0_45, %c0_46] : memref<4x8x1xf32, #tpu.memory_space<vmem>>, vector<4x8x1xf32>
      tpu.vector_store %arg9[%c0_44, %c0_45, %c0_46], %49 {strides = array<i32>} : memref<4x8x1xf32, #tpu.memory_space<vmem>>, vector<4x8x1xf32>,
      %cst_47 = arith.constant 0.000000e+00 : f32
      %51 = vector.broadcast %cst_47 : f32 to vector<4x8x8xf32>
      %c0_48 = arith.constant 0 : index
      %c0_49 = arith.constant 0 : index
      %c0_50 = arith.constant 0 : index
      %52 = vector.load %arg10[%c0_48, %c0_49, %c0_50] : memref<4x8x8xf32, #tpu.memory_space<vmem>>, vector<4x8x8xf32>
      tpu.vector_store %arg10[%c0_48, %c0_49, %c0_50], %51 {strides = array<i32>} : memref<4x8x8xf32, #tpu.memory_space<vmem>>, vector<4x8x8xf32>,
    } else {
    }
    %c0_3 = arith.constant 0 : index
    %c0_4 = arith.constant 0 : index
    %c0_5 = arith.constant 0 : index
    %c0_6 = arith.constant 0 : index
    %4 = vector.load %arg3[%c0_3, %c0_4, %c0_5, %c0_6] : memref<1x1x8x32xbf16, #tpu.memory_space<vmem>>, vector<1x1x8x32xbf16>
    %5 = vector.shape_cast %4 : vector<1x1x8x32xbf16> to vector<8x32xbf16>
    %6 = vector.shape_cast %5 : vector<8x32xbf16> to vector<8x4x8xbf16>
    %7 = tpu.transpose %6, [1, 0, 2] : vector<8x4x8xbf16> -> vector<4x8x8xbf16>
    %c0_7 = arith.constant 0 : index
    %c0_8 = arith.constant 0 : index
    %c0_9 = arith.constant 0 : index
    %c0_10 = arith.constant 0 : index
    %8 = vector.load %arg4[%c0_7, %c0_8, %c0_9, %c0_10] : memref<1x1x8x32xbf16, #tpu.memory_space<vmem>>, vector<1x1x8x32xbf16>
    %9 = vector.shape_cast %8 : vector<1x1x8x32xbf16> to vector<8x32xbf16>
    %10 = vector.shape_cast %9 : vector<8x32xbf16> to vector<8x4x8xbf16>
    %11 = tpu.transpose %10, [1, 0, 2] : vector<8x4x8xbf16> -> vector<4x8x8xbf16>
    %c0_11 = arith.constant 0 : index
    %c0_12 = arith.constant 0 : index
    %c0_13 = arith.constant 0 : index
    %c0_14 = arith.constant 0 : index
    %12 = vector.load %arg5[%c0_11, %c0_12, %c0_13, %c0_14] : memref<1x1x8x32xbf16, #tpu.memory_space<vmem>>, vector<1x1x8x32xbf16>
    %13 = vector.shape_cast %12 : vector<1x1x8x32xbf16> to vector<8x32xbf16>
    %14 = vector.shape_cast %13 : vector<8x32xbf16> to vector<8x4x8xbf16>
    %15 = tpu.transpose %14, [1, 0, 2] : vector<8x4x8xbf16> -> vector<4x8x8xbf16>
    "tpu.trace_start"() <{level = 10 : i32, message = "hqd,hkd->hqk"}> : () -> ()
    %cst = arith.constant dense<0.000000e+00> : vector<4x8x8xf32>
    %16 = tpu.matmul %7, %11, %cst {dimension_numbers = #tpu.dot_dimension_numbers<[2], [2], [1], [1], [0, 0, 0, 1, 1, 1], [0], [0]>} : vector<4x8x8xbf16>, vector<4x8x8xbf16>, vector<4x8x8xf32> -> vector<4x8x8xf32>
    "tpu.trace_stop"() : () -> ()
    %cst_15 = arith.constant 0.353553385 : f32
    %17 = vector.broadcast %cst_15 : f32 to vector<4x8x8xf32>
    %18 = arith.mulf %16, %17 : vector<4x8x8xf32>
    %19 = vector.broadcast %0 : vector<1x1x8xf32> to vector<4x8x8xf32>
    %20 = arith.addf %18, %19 : vector<4x8x8xf32>
    %c0_16 = arith.constant 0 : index
    %c0_17 = arith.constant 0 : index
    %c0_18 = arith.constant 0 : index
    %21 = vector.load %arg8[%c0_16, %c0_17, %c0_18] : memref<4x8x1xf32, #tpu.memory_space<vmem>>, vector<4x8x1xf32>
    %cst_19 = arith.constant dense<0xFF800000> : vector<4x8xf32>
    %22 = vector.multi_reduction <maximumf>, %20, %cst_19 [2] : vector<4x8x8xf32> to vector<4x8xf32>
    %23 = vector.shape_cast %22 : vector<4x8xf32> to vector<4x8x1xf32>
    %24 = arith.maximumf %21, %23 : vector<4x8x1xf32>
    %25 = arith.subf %21, %24 : vector<4x8x1xf32>
    %26 = math.exp %25 : vector<4x8x1xf32>
    %27 = vector.broadcast %24 : vector<4x8x1xf32> to vector<4x8x8xf32>
    %28 = arith.subf %20, %27 : vector<4x8x8xf32>
    %29 = math.exp %28 : vector<4x8x8xf32>
    %c0_20 = arith.constant 0 : index
    %c0_21 = arith.constant 0 : index
    %c0_22 = arith.constant 0 : index
    %30 = vector.load %arg9[%c0_20, %c0_21, %c0_22] : memref<4x8x1xf32, #tpu.memory_space<vmem>>, vector<4x8x1xf32>
    %31 = arith.mulf %26, %30 : vector<4x8x1xf32>
    %cst_23 = arith.constant dense<0.000000e+00> : vector<4x8xf32>
    %32 = vector.multi_reduction <add>, %29, %cst_23 [2] : vector<4x8x8xf32> to vector<4x8xf32>
    %33 = vector.shape_cast %32 : vector<4x8xf32> to vector<4x8x1xf32>
    %34 = arith.addf %31, %33 : vector<4x8x1xf32>
    %c0_24 = arith.constant 0 : index
    %c0_25 = arith.constant 0 : index
    %c0_26 = arith.constant 0 : index
    %35 = vector.load %arg9[%c0_24, %c0_25, %c0_26] : memref<4x8x1xf32, #tpu.memory_space<vmem>>, vector<4x8x1xf32>
    tpu.vector_store %arg9[%c0_24, %c0_25, %c0_26], %34 {strides = array<i32>} : memref<4x8x1xf32, #tpu.memory_space<vmem>>, vector<4x8x1xf32>,
    %c0_27 = arith.constant 0 : index
    %c0_28 = arith.constant 0 : index
    %c0_29 = arith.constant 0 : index
    %36 = vector.load %arg10[%c0_27, %c0_28, %c0_29] : memref<4x8x8xf32, #tpu.memory_space<vmem>>, vector<4x8x8xf32>
    %37 = vector.broadcast %26 : vector<4x8x1xf32> to vector<4x8x8xf32>
    %38 = arith.mulf %37, %36 : vector<4x8x8xf32>
    %39 = arith.truncf %29 : vector<4x8x8xf32> to vector<4x8x8xbf16>
    "tpu.trace_start"() <{level = 10 : i32, message = "hqk,hkd->hqd"}> : () -> ()
    %cst_30 = arith.constant dense<0.000000e+00> : vector<4x8x8xf32>
    %40 = tpu.matmul %39, %15, %cst_30 {dimension_numbers = #tpu.dot_dimension_numbers<[2], [1], [1], [2], [0, 0, 0, 1, 1, 2], [0], [0]>} : vector<4x8x8xbf16>, vector<4x8x8xbf16>, vector<4x8x8xf32> -> vector<4x8x8xf32>
    "tpu.trace_stop"() : () -> ()
    %41 = arith.addf %38, %40 : vector<4x8x8xf32>
    %c0_31 = arith.constant 0 : index
    %c0_32 = arith.constant 0 : index
    %c0_33 = arith.constant 0 : index
    %42 = vector.load %arg10[%c0_31, %c0_32, %c0_33] : memref<4x8x8xf32, #tpu.memory_space<vmem>>, vector<4x8x8xf32>
    tpu.vector_store %arg10[%c0_31, %c0_32, %c0_33], %41 {strides = array<i32>} : memref<4x8x8xf32, #tpu.memory_space<vmem>>, vector<4x8x8xf32>,
    %c0_34 = arith.constant 0 : index
    %c0_35 = arith.constant 0 : index
    %c0_36 = arith.constant 0 : index
    %43 = vector.load %arg8[%c0_34, %c0_35, %c0_36] : memref<4x8x1xf32, #tpu.memory_space<vmem>>, vector<4x8x1xf32>
    tpu.vector_store %arg8[%c0_34, %c0_35, %c0_36], %24 {strides = array<i32>} : memref<4x8x1xf32, #tpu.memory_space<vmem>>, vector<4x8x1xf32>,
    %c0_i32_37 = arith.constant 0 : i32
    %44 = arith.cmpi eq, %arg2, %c0_i32_37 : i32
    %45 = arith.extui %44 : i1 to i32
    %c0_i32_38 = arith.constant 0 : i32
    %46 = arith.cmpi ne, %45, %c0_i32_38 : i32
    scf.if %46 {
      %c0_39 = arith.constant 0 : index
      %c0_40 = arith.constant 0 : index
      %c0_41 = arith.constant 0 : index
      %47 = vector.load %arg10[%c0_39, %c0_40, %c0_41] : memref<4x8x8xf32, #tpu.memory_space<vmem>>, vector<4x8x8xf32>
      %c0_42 = arith.constant 0 : index
      %c0_43 = arith.constant 0 : index
      %c0_44 = arith.constant 0 : index
      %48 = vector.load %arg9[%c0_42, %c0_43, %c0_44] : memref<4x8x1xf32, #tpu.memory_space<vmem>>, vector<4x8x1xf32>
      %49 = vector.broadcast %48 : vector<4x8x1xf32> to vector<4x8x8xf32>
      %50 = arith.divf %47, %49 : vector<4x8x8xf32>
      %51 = tpu.transpose %50, [1, 0, 2] : vector<4x8x8xf32> -> vector<8x4x8xf32>
      %52 = vector.shape_cast %51 : vector<8x4x8xf32> to vector<8x32xf32>
      %53 = arith.truncf %52 : vector<8x32xf32> to vector<8x32xbf16>
      %c0_45 = arith.constant 0 : index
      %c0_46 = arith.constant 0 : index
      %c0_47 = arith.constant 0 : index
      %54 = vector.load %arg7[%c0_45, %c0_46, %c0_47] : memref<1x8x32xbf16, #tpu.memory_space<vmem>>, vector<1x8x32xbf16>
      %55 = vector.shape_cast %54 : vector<1x8x32xbf16> to vector<8x32xbf16>
      %56 = vector.shape_cast %53 : vector<8x32xbf16> to vector<1x8x32xbf16>
      tpu.vector_store %arg7[%c0_45, %c0_46, %c0_47], %56 {strides = array<i32>} : memref<1x8x32xbf16, #tpu.memory_space<vmem>>, vector<1x8x32xbf16>,
    } else {
    }
    return
  }
  func.func @transform_0(%arg0: i32, %arg1: i32, %arg2: i32) -> (i32, i32, i32, i32) {
    %c0_i32 = arith.constant 0 : i32
    %c0_i32_0 = arith.constant 0 : i32
    %c0_i32_1 = arith.constant 0 : i32
    return %arg0, %c0_i32, %arg1, %c0_i32_0 : i32, i32, i32, i32
  }
  func.func @transform_1(%arg0: i32, %arg1: i32, %arg2: i32) -> (i32, i32, i32, i32) {
    %c1_i32 = arith.constant 1 : i32
    %c0_i32 = arith.constant 0 : i32
    %c0_i32_0 = arith.constant 0 : i32
    return %arg0, %c1_i32, %arg2, %c0_i32 : i32, i32, i32, i32
  }
  func.func @transform_2(%arg0: i32, %arg1: i32, %arg2: i32) -> (i32, i32, i32, i32) {
    %c2_i32 = arith.constant 2 : i32
    %c0_i32 = arith.constant 0 : i32
    %c0_i32_0 = arith.constant 0 : i32
    return %arg0, %c2_i32, %arg2, %c0_i32 : i32, i32, i32, i32
  }
  func.func @transform_3(%arg0: i32, %arg1: i32, %arg2: i32) -> (i32, i32, i32) {
    %c0_i32 = arith.constant 0 : i32
    %c0_i32_0 = arith.constant 0 : i32
    return %arg0, %c0_i32, %arg2 : i32, i32, i32
  }
  func.func @transform_4(%arg0: i32, %arg1: i32, %arg2: i32) -> (i32, i32, i32) {
    %c0_i32 = arith.constant 0 : i32
    %c0_i32_0 = arith.constant 0 : i32
    return %arg0, %arg1, %c0_i32 : i32, i32, i32
  }
}

module attributes {stable_mosaic.version = 11 : i64} {
  func.func @_qkv_kernel(%arg0: i32, %arg1: i32, %arg2: i32, %arg3: memref<1x8x32xbf16, #tpu.memory_space<vmem>>, %arg4: memref<1x1x32xf32, #tpu.memory_space<vmem>>, %arg5: memref<1x1x32xf32, #tpu.memory_space<vmem>>, %arg6: memref<1x32x32xbf16, #tpu.memory_space<vmem>>, %arg7: memref<8x8xf32, #tpu.memory_space<vmem>>, %arg8: memref<8x8xf32, #tpu.memory_space<vmem>>, %arg9: memref<1x1x8x32xbf16, #tpu.memory_space<vmem>>, %arg10: memref<8x32xbf16, #tpu.memory_space<vmem>>) attributes {dimension_semantics = [#tpu.dimension_semantics<parallel>, #tpu.dimension_semantics<parallel>, #tpu.dimension_semantics<arbitrary>], iteration_bounds = array<i64: 2, 1, 3>, scalar_prefetch = 0 : i64, scratch_operands = 1 : i64, tpu.core_type = #tpu.core_type<tc>, window_params = [{transform_indices = @transform_0, window_bounds = array<i64: 1, 8, 32>}, {transform_indices = @transform_1, window_bounds = array<i64: 1, 1, 32>}, {transform_indices = @transform_2, window_bounds = array<i64: 1, 1, 32>}, {transform_indices = @transform_3, window_bounds = array<i64: 1, 32, 32>}, {transform_indices = @transform_4, window_bounds = array<i64: 8, 8>}, {transform_indices = @transform_5, window_bounds = array<i64: 8, 8>}, {transform_indices = @transform_6, window_bounds = array<i64: 1, 1, 8, 32>}]} {
    %c0_i32 = arith.constant 0 : i32
    %0 = arith.cmpi eq, %arg2, %c0_i32 : i32
    %1 = arith.extui %0 : i1 to i32
    %c0_i32_0 = arith.constant 0 : i32
    %2 = arith.cmpi ne, %1, %c0_i32_0 : i32
    scf.if %2 {
      %c0_8 = arith.constant 0 : index
      %c0_9 = arith.constant 0 : index
      %c0_10 = arith.constant 0 : index
      %13 = vector.load %arg3[%c0_8, %c0_9, %c0_10] : memref<1x8x32xbf16, #tpu.memory_space<vmem>>, vector<1x8x32xbf16>
      %14 = vector.shape_cast %13 : vector<1x8x32xbf16> to vector<8x32xbf16>
      %15 = arith.extf %14 : vector<8x32xbf16> to vector<8x32xf32>
      %16 = arith.mulf %15, %15 : vector<8x32xf32>
      %cst_11 = arith.constant dense<0.000000e+00> : vector<8xf32>
      %17 = vector.multi_reduction <add>, %16, %cst_11 [1] : vector<8x32xf32> to vector<8xf32>
      %18 = vector.shape_cast %17 : vector<8xf32> to vector<8x1xf32>
      %cst_12 = arith.constant 1.000000e-24 : f32
      %19 = vector.broadcast %cst_12 : f32 to vector<8x1xf32>
      %20 = arith.maximumf %18, %19 : vector<8x1xf32>
      %21 = math.rsqrt %20 : vector<8x1xf32>
      %22 = vector.broadcast %21 : vector<8x1xf32> to vector<8x32xf32>
      %23 = arith.mulf %15, %22 : vector<8x32xf32>
      %cst_13 = arith.constant 5.65685415 : f32
      %24 = vector.broadcast %cst_13 : f32 to vector<8x32xf32>
      %25 = arith.mulf %23, %24 : vector<8x32xf32>
      %c0_14 = arith.constant 0 : index
      %c0_15 = arith.constant 0 : index
      %c0_16 = arith.constant 0 : index
      %26 = vector.load %arg4[%c0_14, %c0_15, %c0_16] : memref<1x1x32xf32, #tpu.memory_space<vmem>>, vector<1x1x32xf32>
      %27 = vector.shape_cast %26 : vector<1x1x32xf32> to vector<1x32xf32>
      %28 = vector.broadcast %27 : vector<1x32xf32> to vector<8x32xf32>
      %29 = arith.mulf %25, %28 : vector<8x32xf32>
      %c0_17 = arith.constant 0 : index
      %c0_18 = arith.constant 0 : index
      %c0_19 = arith.constant 0 : index
      %30 = vector.load %arg5[%c0_17, %c0_18, %c0_19] : memref<1x1x32xf32, #tpu.memory_space<vmem>>, vector<1x1x32xf32>
      %31 = vector.shape_cast %30 : vector<1x1x32xf32> to vector<1x32xf32>
      %32 = vector.broadcast %31 : vector<1x32xf32> to vector<8x32xf32>
      %33 = arith.addf %29, %32 : vector<8x32xf32>
      %34 = arith.truncf %33 : vector<8x32xf32> to vector<8x32xbf16>
      %c0_20 = arith.constant 0 : index
      %c0_21 = arith.constant 0 : index
      %35 = vector.load %arg10[%c0_20, %c0_21] : memref<8x32xbf16, #tpu.memory_space<vmem>>, vector<8x32xbf16>
      tpu.vector_store %arg10[%c0_20, %c0_21], %34 {strides = array<i32>} : memref<8x32xbf16, #tpu.memory_space<vmem>>, vector<8x32xbf16>,
    } else {
    }
    %c0 = arith.constant 0 : index
    %c0_1 = arith.constant 0 : index
    %3 = vector.load %arg10[%c0, %c0_1] : memref<8x32xbf16, #tpu.memory_space<vmem>>, vector<8x32xbf16>
    %c0_2 = arith.constant 0 : index
    %c0_3 = arith.constant 0 : index
    %c0_4 = arith.constant 0 : index
    %4 = vector.load %arg6[%c0_2, %c0_3, %c0_4] : memref<1x32x32xbf16, #tpu.memory_space<vmem>>, vector<1x32x32xbf16>
    %5 = vector.shape_cast %4 : vector<1x32x32xbf16> to vector<32x32xbf16>
    %cst = arith.constant dense<0.000000e+00> : vector<8x32xf32>
    %6 = tpu.matmul %3, %5, %cst {dimension_numbers = #tpu.dot_dimension_numbers<[1], [0], [0], [1], [0, 0, 1, 1], [], []>} : vector<8x32xbf16>, vector<32x32xbf16>, vector<8x32xf32> -> vector<8x32xf32>
    %c2_i32 = arith.constant 2 : i32
    %7 = arith.cmpi slt, %arg2, %c2_i32 : i32
    %8 = arith.extui %7 : i1 to i32
    %c0_i32_5 = arith.constant 0 : i32
    %9 = arith.cmpi ne, %8, %c0_i32_5 : i32
    scf.if %9 {
      %13 = vector.shape_cast %6 : vector<8x32xf32> to vector<8x4x8xf32>
      %14 = vector.extract_strided_slice %13 {offsets = [0, 0, 4], sizes = [8, 4, 4], strides = [1, 1, 1]} : vector<8x4x8xf32> to vector<8x4x4xf32>
      %cst_8 = arith.constant 0.000000e+00 : f32
      %15 = vector.broadcast %cst_8 : f32 to vector<8x4x4xf32>
      %16 = arith.subf %15, %14 : vector<8x4x4xf32>
      %17 = vector.extract_strided_slice %13 {offsets = [0, 0, 0], sizes = [8, 4, 4], strides = [1, 1, 1]} : vector<8x4x8xf32> to vector<8x4x4xf32>
      %18 = tpu.concatenate %16, %17 in 2 : vector<8x4x4xf32>, vector<8x4x4xf32> -> vector<8x4x8xf32>
      %c0_9 = arith.constant 0 : index
      %c0_10 = arith.constant 0 : index
      %19 = vector.load %arg7[%c0_9, %c0_10] : memref<8x8xf32, #tpu.memory_space<vmem>>, vector<8x8xf32>
      %20 = vector.shape_cast %19 : vector<8x8xf32> to vector<8x1x8xf32>
      %c0_11 = arith.constant 0 : index
      %c0_12 = arith.constant 0 : index
      %21 = vector.load %arg8[%c0_11, %c0_12] : memref<8x8xf32, #tpu.memory_space<vmem>>, vector<8x8xf32>
      %22 = vector.shape_cast %21 : vector<8x8xf32> to vector<8x1x8xf32>
      %23 = vector.broadcast %20 : vector<8x1x8xf32> to vector<8x4x8xf32>
      %24 = arith.mulf %13, %23 : vector<8x4x8xf32>
      %25 = vector.broadcast %22 : vector<8x1x8xf32> to vector<8x4x8xf32>
      %26 = arith.mulf %18, %25 : vector<8x4x8xf32>
      %27 = arith.addf %24, %26 : vector<8x4x8xf32>
      %28 = vector.shape_cast %27 : vector<8x4x8xf32> to vector<8x32xf32>
      %29 = arith.truncf %28 : vector<8x32xf32> to vector<8x32xbf16>
      %c0_13 = arith.constant 0 : index
      %c0_14 = arith.constant 0 : index
      %c0_15 = arith.constant 0 : index
      %c0_16 = arith.constant 0 : index
      %30 = vector.load %arg9[%c0_13, %c0_14, %c0_15, %c0_16] : memref<1x1x8x32xbf16, #tpu.memory_space<vmem>>, vector<1x1x8x32xbf16>
      %31 = vector.shape_cast %30 : vector<1x1x8x32xbf16> to vector<8x32xbf16>
      %32 = vector.shape_cast %29 : vector<8x32xbf16> to vector<1x1x8x32xbf16>
      tpu.vector_store %arg9[%c0_13, %c0_14, %c0_15, %c0_16], %32 {strides = array<i32>} : memref<1x1x8x32xbf16, #tpu.memory_space<vmem>>, vector<1x1x8x32xbf16>,
    } else {
    }
    %c2_i32_6 = arith.constant 2 : i32
    %10 = arith.cmpi eq, %arg2, %c2_i32_6 : i32
    %11 = arith.extui %10 : i1 to i32
    %c0_i32_7 = arith.constant 0 : i32
    %12 = arith.cmpi ne, %11, %c0_i32_7 : i32
    scf.if %12 {
      %13 = arith.truncf %6 : vector<8x32xf32> to vector<8x32xbf16>
      %c0_8 = arith.constant 0 : index
      %c0_9 = arith.constant 0 : index
      %c0_10 = arith.constant 0 : index
      %c0_11 = arith.constant 0 : index
      %14 = vector.load %arg9[%c0_8, %c0_9, %c0_10, %c0_11] : memref<1x1x8x32xbf16, #tpu.memory_space<vmem>>, vector<1x1x8x32xbf16>
      %15 = vector.shape_cast %14 : vector<1x1x8x32xbf16> to vector<8x32xbf16>
      %16 = vector.shape_cast %13 : vector<8x32xbf16> to vector<1x1x8x32xbf16>
      tpu.vector_store %arg9[%c0_8, %c0_9, %c0_10, %c0_11], %16 {strides = array<i32>} : memref<1x1x8x32xbf16, #tpu.memory_space<vmem>>, vector<1x1x8x32xbf16>,
    } else {
    }
    return
  }
  func.func @transform_0(%arg0: i32, %arg1: i32, %arg2: i32) -> (i32, i32, i32) {
    %c0_i32 = arith.constant 0 : i32
    %c0_i32_0 = arith.constant 0 : i32
    return %arg0, %arg1, %c0_i32 : i32, i32, i32
  }
  func.func @transform_1(%arg0: i32, %arg1: i32, %arg2: i32) -> (i32, i32, i32) {
    %c0_i32 = arith.constant 0 : i32
    %c0_i32_0 = arith.constant 0 : i32
    %c0_i32_1 = arith.constant 0 : i32
    return %arg0, %c0_i32, %c0_i32_0 : i32, i32, i32
  }
  func.func @transform_2(%arg0: i32, %arg1: i32, %arg2: i32) -> (i32, i32, i32) {
    %c0_i32 = arith.constant 0 : i32
    %c0_i32_0 = arith.constant 0 : i32
    %c0_i32_1 = arith.constant 0 : i32
    return %arg0, %c0_i32, %c0_i32_0 : i32, i32, i32
  }
  func.func @transform_3(%arg0: i32, %arg1: i32, %arg2: i32) -> (i32, i32, i32) {
    %c0_i32 = arith.constant 0 : i32
    %c0_i32_0 = arith.constant 0 : i32
    %c0_i32_1 = arith.constant 0 : i32
    return %arg2, %c0_i32, %c0_i32_0 : i32, i32, i32
  }
  func.func @transform_4(%arg0: i32, %arg1: i32, %arg2: i32) -> (i32, i32) {
    %c0_i32 = arith.constant 0 : i32
    %c0_i32_0 = arith.constant 0 : i32
    return %arg1, %c0_i32 : i32, i32
  }
  func.func @transform_5(%arg0: i32, %arg1: i32, %arg2: i32) -> (i32, i32) {
    %c0_i32 = arith.constant 0 : i32
    %c0_i32_0 = arith.constant 0 : i32
    return %arg1, %c0_i32 : i32, i32
  }
  func.func @transform_6(%arg0: i32, %arg1: i32, %arg2: i32) -> (i32, i32, i32, i32) {
    %c0_i32 = arith.constant 0 : i32
    %c0_i32_0 = arith.constant 0 : i32
    return %arg0, %arg2, %arg1, %c0_i32 : i32, i32, i32, i32
  }
}

module attributes {stable_mosaic.version = 11 : i64} {
  func.func @_ff_norm_kernel(%arg0: i32, %arg1: i32, %arg2: i32, %arg3: memref<1x8x32xbf16, #tpu.memory_space<vmem>>, %arg4: memref<1x1x32xf32, #tpu.memory_space<vmem>>, %arg5: memref<1x1x32xf32, #tpu.memory_space<vmem>>, %arg6: memref<32x64xbf16, #tpu.memory_space<vmem>>, %arg7: memref<1x64xf32, #tpu.memory_space<vmem>>, %arg8: memref<1x8x64xbf16, #tpu.memory_space<vmem>>, %arg9: memref<8x32xbf16, #tpu.memory_space<vmem>>) attributes {dimension_semantics = [#tpu.dimension_semantics<parallel>, #tpu.dimension_semantics<parallel>, #tpu.dimension_semantics<arbitrary>], iteration_bounds = array<i64: 2, 1, 1>, scalar_prefetch = 0 : i64, scratch_operands = 1 : i64, tpu.core_type = #tpu.core_type<tc>, window_params = [{transform_indices = @transform_0, window_bounds = array<i64: 1, 8, 32>}, {transform_indices = @transform_1, window_bounds = array<i64: 1, 1, 32>}, {transform_indices = @transform_2, window_bounds = array<i64: 1, 1, 32>}, {transform_indices = @transform_3, window_bounds = array<i64: 32, 64>}, {transform_indices = @transform_4, window_bounds = array<i64: 1, 64>}, {transform_indices = @transform_5, window_bounds = array<i64: 1, 8, 64>}]} {
    %c0_i32 = arith.constant 0 : i32
    %0 = arith.cmpi eq, %arg2, %c0_i32 : i32
    %1 = arith.extui %0 : i1 to i32
    %c0_i32_0 = arith.constant 0 : i32
    %2 = arith.cmpi ne, %1, %c0_i32_0 : i32
    scf.if %2 {
      %c0_13 = arith.constant 0 : index
      %c0_14 = arith.constant 0 : index
      %c0_15 = arith.constant 0 : index
      %26 = vector.load %arg3[%c0_13, %c0_14, %c0_15] : memref<1x8x32xbf16, #tpu.memory_space<vmem>>, vector<1x8x32xbf16>
      %27 = vector.shape_cast %26 : vector<1x8x32xbf16> to vector<8x32xbf16>
      %28 = arith.extf %27 : vector<8x32xbf16> to vector<8x32xf32>
      %29 = arith.mulf %28, %28 : vector<8x32xf32>
      %cst_16 = arith.constant dense<0.000000e+00> : vector<8xf32>
      %30 = vector.multi_reduction <add>, %29, %cst_16 [1] : vector<8x32xf32> to vector<8xf32>
      %31 = vector.shape_cast %30 : vector<8xf32> to vector<8x1xf32>
      %cst_17 = arith.constant 1.000000e-24 : f32
      %32 = vector.broadcast %cst_17 : f32 to vector<8x1xf32>
      %33 = arith.maximumf %31, %32 : vector<8x1xf32>
      %34 = math.rsqrt %33 : vector<8x1xf32>
      %35 = vector.broadcast %34 : vector<8x1xf32> to vector<8x32xf32>
      %36 = arith.mulf %28, %35 : vector<8x32xf32>
      %cst_18 = arith.constant 5.65685415 : f32
      %37 = vector.broadcast %cst_18 : f32 to vector<8x32xf32>
      %38 = arith.mulf %36, %37 : vector<8x32xf32>
      %c0_19 = arith.constant 0 : index
      %c0_20 = arith.constant 0 : index
      %c0_21 = arith.constant 0 : index
      %39 = vector.load %arg4[%c0_19, %c0_20, %c0_21] : memref<1x1x32xf32, #tpu.memory_space<vmem>>, vector<1x1x32xf32>
      %40 = vector.shape_cast %39 : vector<1x1x32xf32> to vector<1x32xf32>
      %41 = vector.broadcast %40 : vector<1x32xf32> to vector<8x32xf32>
      %42 = arith.mulf %38, %41 : vector<8x32xf32>
      %c0_22 = arith.constant 0 : index
      %c0_23 = arith.constant 0 : index
      %c0_24 = arith.constant 0 : index
      %43 = vector.load %arg5[%c0_22, %c0_23, %c0_24] : memref<1x1x32xf32, #tpu.memory_space<vmem>>, vector<1x1x32xf32>
      %44 = vector.shape_cast %43 : vector<1x1x32xf32> to vector<1x32xf32>
      %45 = vector.broadcast %44 : vector<1x32xf32> to vector<8x32xf32>
      %46 = arith.addf %42, %45 : vector<8x32xf32>
      %47 = arith.truncf %46 : vector<8x32xf32> to vector<8x32xbf16>
      %c0_25 = arith.constant 0 : index
      %c0_26 = arith.constant 0 : index
      %48 = vector.load %arg9[%c0_25, %c0_26] : memref<8x32xbf16, #tpu.memory_space<vmem>>, vector<8x32xbf16>
      tpu.vector_store %arg9[%c0_25, %c0_26], %47 {strides = array<i32>} : memref<8x32xbf16, #tpu.memory_space<vmem>>, vector<8x32xbf16>,
    } else {
    }
    %c0 = arith.constant 0 : index
    %c0_1 = arith.constant 0 : index
    %3 = vector.load %arg9[%c0, %c0_1] : memref<8x32xbf16, #tpu.memory_space<vmem>>, vector<8x32xbf16>
    %c0_2 = arith.constant 0 : index
    %c0_3 = arith.constant 0 : index
    %4 = vector.load %arg6[%c0_2, %c0_3] : memref<32x64xbf16, #tpu.memory_space<vmem>>, vector<32x64xbf16>
    %cst = arith.constant dense<0.000000e+00> : vector<8x64xf32>
    %5 = tpu.matmul %3, %4, %cst {dimension_numbers = #tpu.dot_dimension_numbers<[1], [0], [0], [1], [0, 0, 1, 1], [], []>} : vector<8x32xbf16>, vector<32x64xbf16>, vector<8x64xf32> -> vector<8x64xf32>
    %c0_4 = arith.constant 0 : index
    %c0_5 = arith.constant 0 : index
    %6 = vector.load %arg7[%c0_4, %c0_5] : memref<1x64xf32, #tpu.memory_space<vmem>>, vector<1x64xf32>
    %7 = vector.broadcast %6 : vector<1x64xf32> to vector<8x64xf32>
    %8 = arith.addf %5, %7 : vector<8x64xf32>
    %9 = arith.mulf %8, %8 : vector<8x64xf32>
    %10 = arith.mulf %8, %9 : vector<8x64xf32>
    %cst_6 = arith.constant 4.471500e-02 : f32
    %11 = vector.broadcast %cst_6 : f32 to vector<8x64xf32>
    %12 = arith.mulf %11, %10 : vector<8x64xf32>
    %13 = arith.addf %8, %12 : vector<8x64xf32>
    %cst_7 = arith.constant 0.797884583 : f32
    %14 = vector.broadcast %cst_7 : f32 to vector<8x64xf32>
    %15 = arith.mulf %14, %13 : vector<8x64xf32>
    %16 = math.tanh %15 : vector<8x64xf32>
    %cst_8 = arith.constant 1.000000e+00 : f32
    %17 = vector.broadcast %cst_8 : f32 to vector<8x64xf32>
    %18 = arith.addf %17, %16 : vector<8x64xf32>
    %cst_9 = arith.constant 5.000000e-01 : f32
    %19 = vector.broadcast %cst_9 : f32 to vector<8x64xf32>
    %20 = arith.mulf %19, %18 : vector<8x64xf32>
    %21 = arith.mulf %8, %20 : vector<8x64xf32>
    %22 = arith.truncf %21 : vector<8x64xf32> to vector<8x64xbf16>
    %c0_10 = arith.constant 0 : index
    %c0_11 = arith.constant 0 : index
    %c0_12 = arith.constant 0 : index
    %23 = vector.load %arg8[%c0_10, %c0_11, %c0_12] : memref<1x8x64xbf16, #tpu.memory_space<vmem>>, vector<1x8x64xbf16>
    %24 = vector.shape_cast %23 : vector<1x8x64xbf16> to vector<8x64xbf16>
    %25 = vector.shape_cast %22 : vector<8x64xbf16> to vector<1x8x64xbf16>
    tpu.vector_store %arg8[%c0_10, %c0_11, %c0_12], %25 {strides = array<i32>} : memref<1x8x64xbf16, #tpu.memory_space<vmem>>, vector<1x8x64xbf16>,
    return
  }
  func.func @transform_0(%arg0: i32, %arg1: i32, %arg2: i32) -> (i32, i32, i32) {
    %c0_i32 = arith.constant 0 : i32
    %c0_i32_0 = arith.constant 0 : i32
    return %arg0, %arg1, %c0_i32 : i32, i32, i32
  }
  func.func @transform_1(%arg0: i32, %arg1: i32, %arg2: i32) -> (i32, i32, i32) {
    %c0_i32 = arith.constant 0 : i32
    %c0_i32_0 = arith.constant 0 : i32
    %c0_i32_1 = arith.constant 0 : i32
    return %arg0, %c0_i32, %c0_i32_0 : i32, i32, i32
  }
  func.func @transform_2(%arg0: i32, %arg1: i32, %arg2: i32) -> (i32, i32, i32) {
    %c0_i32 = arith.constant 0 : i32
    %c0_i32_0 = arith.constant 0 : i32
    %c0_i32_1 = arith.constant 0 : i32
    return %arg0, %c0_i32, %c0_i32_0 : i32, i32, i32
  }
  func.func @transform_3(%arg0: i32, %arg1: i32, %arg2: i32) -> (i32, i32) {
    %c0_i32 = arith.constant 0 : i32
    %c0_i32_0 = arith.constant 0 : i32
    return %c0_i32, %arg2 : i32, i32
  }
  func.func @transform_4(%arg0: i32, %arg1: i32, %arg2: i32) -> (i32, i32) {
    %c0_i32 = arith.constant 0 : i32
    %c0_i32_0 = arith.constant 0 : i32
    return %c0_i32, %arg2 : i32, i32
  }
  func.func @transform_5(%arg0: i32, %arg1: i32, %arg2: i32) -> (i32, i32, i32) {
    %c0_i32 = arith.constant 0 : i32
    return %arg0, %arg1, %arg2 : i32, i32, i32
  }
}

module attributes {stable_mosaic.version = 11 : i64} {
  func.func @kernel(%arg0: i32, %arg1: i32, %arg2: i32, %arg3: memref<16x64xbf16, #tpu.memory_space<vmem>>, %arg4: memref<64x32xbf16, #tpu.memory_space<vmem>>, %arg5: memref<1x32xf32, #tpu.memory_space<vmem>>, %arg6: memref<16x32xbf16, #tpu.memory_space<vmem>>, %arg7: memref<16x32xbf16, #tpu.memory_space<vmem>>, %arg8: memref<16x32xf32, #tpu.memory_space<vmem>>) attributes {dimension_semantics = [#tpu.dimension_semantics<parallel>, #tpu.dimension_semantics<parallel>, #tpu.dimension_semantics<arbitrary>], iteration_bounds = array<i64: 1, 1, 1>, scalar_prefetch = 0 : i64, scratch_operands = 1 : i64, tpu.core_type = #tpu.core_type<tc>, window_params = [{transform_indices = @transform_0, window_bounds = array<i64: 16, 64>}, {transform_indices = @transform_1, window_bounds = array<i64: 64, 32>}, {transform_indices = @transform_2, window_bounds = array<i64: 1, 32>}, {transform_indices = @transform_3, window_bounds = array<i64: 16, 32>}, {transform_indices = @transform_4, window_bounds = array<i64: 16, 32>}]} {
    %c0_i32 = arith.constant 0 : i32
    %0 = arith.cmpi eq, %arg2, %c0_i32 : i32
    %1 = arith.extui %0 : i1 to i32
    %c0_i32_0 = arith.constant 0 : i32
    %2 = arith.cmpi ne, %1, %c0_i32_0 : i32
    scf.if %2 {
      %cst_10 = arith.constant 0.000000e+00 : f32
      %12 = vector.broadcast %cst_10 : f32 to vector<16x32xf32>
      %c0_11 = arith.constant 0 : index
      %c0_12 = arith.constant 0 : index
      %13 = vector.load %arg8[%c0_11, %c0_12] : memref<16x32xf32, #tpu.memory_space<vmem>>, vector<16x32xf32>
      tpu.vector_store %arg8[%c0_11, %c0_12], %12 {strides = array<i32>} : memref<16x32xf32, #tpu.memory_space<vmem>>, vector<16x32xf32>,
    } else {
    }
    %c0 = arith.constant 0 : index
    %c0_1 = arith.constant 0 : index
    %3 = vector.load %arg8[%c0, %c0_1] : memref<16x32xf32, #tpu.memory_space<vmem>>, vector<16x32xf32>
    %c0_2 = arith.constant 0 : index
    %c0_3 = arith.constant 0 : index
    %4 = vector.load %arg3[%c0_2, %c0_3] : memref<16x64xbf16, #tpu.memory_space<vmem>>, vector<16x64xbf16>
    %c0_4 = arith.constant 0 : index
    %c0_5 = arith.constant 0 : index
    %5 = vector.load %arg4[%c0_4, %c0_5] : memref<64x32xbf16, #tpu.memory_space<vmem>>, vector<64x32xbf16>
    %cst = arith.constant dense<0.000000e+00> : vector<16x32xf32>
    %6 = tpu.matmul %4, %5, %cst {dimension_numbers = #tpu.dot_dimension_numbers<[1], [0], [0], [1], [0, 0, 1, 1], [], []>} : vector<16x64xbf16>, vector<64x32xbf16>, vector<16x32xf32> -> vector<16x32xf32>
    %7 = arith.addf %3, %6 : vector<16x32xf32>
    %c0_6 = arith.constant 0 : index
    %c0_7 = arith.constant 0 : index
    %8 = vector.load %arg8[%c0_6, %c0_7] : memref<16x32xf32, #tpu.memory_space<vmem>>, vector<16x32xf32>
    tpu.vector_store %arg8[%c0_6, %c0_7], %7 {strides = array<i32>} : memref<16x32xf32, #tpu.memory_space<vmem>>, vector<16x32xf32>,
    %c0_i32_8 = arith.constant 0 : i32
    %9 = arith.cmpi eq, %arg2, %c0_i32_8 : i32
    %10 = arith.extui %9 : i1 to i32
    %c0_i32_9 = arith.constant 0 : i32
    %11 = arith.cmpi ne, %10, %c0_i32_9 : i32
    scf.if %11 {
      %c0_10 = arith.constant 0 : index
      %c0_11 = arith.constant 0 : index
      %12 = vector.load %arg8[%c0_10, %c0_11] : memref<16x32xf32, #tpu.memory_space<vmem>>, vector<16x32xf32>
      %c0_12 = arith.constant 0 : index
      %c0_13 = arith.constant 0 : index
      %13 = vector.load %arg5[%c0_12, %c0_13] : memref<1x32xf32, #tpu.memory_space<vmem>>, vector<1x32xf32>
      %14 = vector.broadcast %13 : vector<1x32xf32> to vector<16x32xf32>
      %15 = arith.addf %12, %14 : vector<16x32xf32>
      %c0_14 = arith.constant 0 : index
      %c0_15 = arith.constant 0 : index
      %16 = vector.load %arg6[%c0_14, %c0_15] : memref<16x32xbf16, #tpu.memory_space<vmem>>, vector<16x32xbf16>
      %17 = arith.extf %16 : vector<16x32xbf16> to vector<16x32xf32>
      %18 = arith.addf %15, %17 : vector<16x32xf32>
      %19 = arith.truncf %18 : vector<16x32xf32> to vector<16x32xbf16>
      %c0_16 = arith.constant 0 : index
      %c0_17 = arith.constant 0 : index
      %20 = vector.load %arg7[%c0_16, %c0_17] : memref<16x32xbf16, #tpu.memory_space<vmem>>, vector<16x32xbf16>
      tpu.vector_store %arg7[%c0_16, %c0_17], %19 {strides = array<i32>} : memref<16x32xbf16, #tpu.memory_space<vmem>>, vector<16x32xbf16>,
    } else {
    }
    return
  }
  func.func @transform_0(%arg0: i32, %arg1: i32, %arg2: i32) -> (i32, i32) {
    %c0_i32 = arith.constant 0 : i32
    return %arg0, %arg2 : i32, i32
  }
  func.func @transform_1(%arg0: i32, %arg1: i32, %arg2: i32) -> (i32, i32) {
    %c0_i32 = arith.constant 0 : i32
    return %arg2, %arg1 : i32, i32
  }
  func.func @transform_2(%arg0: i32, %arg1: i32, %arg2: i32) -> (i32, i32) {
    %c0_i32 = arith.constant 0 : i32
    %c0_i32_0 = arith.constant 0 : i32
    return %c0_i32, %arg1 : i32, i32
  }
  func.func @transform_3(%arg0: i32, %arg1: i32, %arg2: i32) -> (i32, i32) {
    %c0_i32 = arith.constant 0 : i32
    return %arg0, %arg1 : i32, i32
  }
  func.func @transform_4(%arg0: i32, %arg1: i32, %arg2: i32) -> (i32, i32) {
    %c0_i32 = arith.constant 0 : i32
    return %arg0, %arg1 : i32, i32
  }
}

module attributes {stable_mosaic.version = 11 : i64} {
  func.func @_rmsnorm_kernel(%arg0: i32, %arg1: i32, %arg2: memref<1x8x32xbf16, #tpu.memory_space<vmem>>, %arg3: memref<1x32xf32, #tpu.memory_space<vmem>>, %arg4: memref<1x8x32xf32, #tpu.memory_space<vmem>>) attributes {dimension_semantics = [#tpu.dimension_semantics<parallel>, #tpu.dimension_semantics<parallel>], iteration_bounds = array<i64: 2, 1>, scalar_prefetch = 0 : i64, scratch_operands = 0 : i64, tpu.core_type = #tpu.core_type<tc>, window_params = [{transform_indices = @transform_0, window_bounds = array<i64: 1, 8, 32>}, {pipeline_mode = #tpu.pipeline_mode<synchronous>, transform_indices = @transform_1, window_bounds = array<i64: 1, 32>}, {transform_indices = @transform_2, window_bounds = array<i64: 1, 8, 32>}]} {
    %c0 = arith.constant 0 : index
    %c0_0 = arith.constant 0 : index
    %c0_1 = arith.constant 0 : index
    %0 = vector.load %arg2[%c0, %c0_0, %c0_1] : memref<1x8x32xbf16, #tpu.memory_space<vmem>>, vector<1x8x32xbf16>
    %1 = vector.shape_cast %0 : vector<1x8x32xbf16> to vector<8x32xbf16>
    %2 = arith.extf %1 : vector<8x32xbf16> to vector<8x32xf32>
    %3 = arith.mulf %2, %2 : vector<8x32xf32>
    %cst = arith.constant dense<0.000000e+00> : vector<8xf32>
    %4 = vector.multi_reduction <add>, %3, %cst [1] : vector<8x32xf32> to vector<8xf32>
    %5 = vector.shape_cast %4 : vector<8xf32> to vector<8x1xf32>
    %cst_2 = arith.constant 3.200000e+01 : f32
    %6 = vector.broadcast %cst_2 : f32 to vector<8x1xf32>
    %7 = arith.divf %5, %6 : vector<8x1xf32>
    %cst_3 = arith.constant 1.1920929E-7 : f32
    %8 = vector.broadcast %cst_3 : f32 to vector<8x1xf32>
    %9 = arith.addf %7, %8 : vector<8x1xf32>
    %10 = math.rsqrt %9 : vector<8x1xf32>
    %11 = vector.broadcast %10 : vector<8x1xf32> to vector<8x32xf32>
    %12 = arith.mulf %2, %11 : vector<8x32xf32>
    %c0_4 = arith.constant 0 : index
    %c0_5 = arith.constant 0 : index
    %13 = vector.load %arg3[%c0_4, %c0_5] : memref<1x32xf32, #tpu.memory_space<vmem>>, vector<1x32xf32>
    %14 = vector.broadcast %13 : vector<1x32xf32> to vector<8x32xf32>
    %15 = arith.mulf %12, %14 : vector<8x32xf32>
    %c0_6 = arith.constant 0 : index
    %c0_7 = arith.constant 0 : index
    %c0_8 = arith.constant 0 : index
    %16 = vector.load %arg4[%c0_6, %c0_7, %c0_8] : memref<1x8x32xf32, #tpu.memory_space<vmem>>, vector<1x8x32xf32>
    %17 = vector.shape_cast %16 : vector<1x8x32xf32> to vector<8x32xf32>
    %18 = vector.shape_cast %15 : vector<8x32xf32> to vector<1x8x32xf32>
    tpu.vector_store %arg4[%c0_6, %c0_7, %c0_8], %18 {strides = array<i32>} : memref<1x8x32xf32, #tpu.memory_space<vmem>>, vector<1x8x32xf32>,
    return
  }
  func.func @transform_0(%arg0: i32, %arg1: i32) -> (i32, i32, i32) {
    %c0_i32 = arith.constant 0 : i32
    %c0_i32_0 = arith.constant 0 : i32
    return %arg0, %arg1, %c0_i32 : i32, i32, i32
  }
  func.func @transform_1(%arg0: i32, %arg1: i32) -> (i32, i32) {
    %c0_i32 = arith.constant 0 : i32
    %c0_i32_0 = arith.constant 0 : i32
    %c0_i32_1 = arith.constant 0 : i32
    return %c0_i32, %c0_i32_0 : i32, i32
  }
  func.func @transform_2(%arg0: i32, %arg1: i32) -> (i32, i32, i32) {
    %c0_i32 = arith.constant 0 : i32
    %c0_i32_0 = arith.constant 0 : i32
    return %arg0, %arg1, %c0_i32 : i32, i32, i32
  }
}

module attributes {stable_mosaic.version = 11 : i64} {
  func.func @_skip_kernel(%arg0: i32, %arg1: i32, %arg2: i32, %arg3: memref<16x32xbf16, #tpu.memory_space<vmem>>, %arg4: memref<16x32xbf16, #tpu.memory_space<vmem>>, %arg5: memref<32x32xbf16, #tpu.memory_space<vmem>>, %arg6: memref<32x32xbf16, #tpu.memory_space<vmem>>, %arg7: memref<16x32xbf16, #tpu.memory_space<vmem>>, %arg8: memref<16x32xf32, #tpu.memory_space<vmem>>) attributes {dimension_semantics = [#tpu.dimension_semantics<parallel>, #tpu.dimension_semantics<parallel>, #tpu.dimension_semantics<arbitrary>], iteration_bounds = array<i64: 1, 1, 1>, scalar_prefetch = 0 : i64, scratch_operands = 1 : i64, tpu.core_type = #tpu.core_type<tc>, window_params = [{transform_indices = @transform_0, window_bounds = array<i64: 16, 32>}, {transform_indices = @transform_1, window_bounds = array<i64: 16, 32>}, {transform_indices = @transform_2, window_bounds = array<i64: 32, 32>}, {transform_indices = @transform_3, window_bounds = array<i64: 32, 32>}, {transform_indices = @transform_4, window_bounds = array<i64: 16, 32>}]} {
    %c0_i32 = arith.constant 0 : i32
    %0 = arith.cmpi eq, %arg2, %c0_i32 : i32
    %1 = arith.extui %0 : i1 to i32
    %c0_i32_0 = arith.constant 0 : i32
    %2 = arith.cmpi ne, %1, %c0_i32_0 : i32
    scf.if %2 {
      %cst_15 = arith.constant 0.000000e+00 : f32
      %16 = vector.broadcast %cst_15 : f32 to vector<16x32xf32>
      %c0_16 = arith.constant 0 : index
      %c0_17 = arith.constant 0 : index
      %17 = vector.load %arg8[%c0_16, %c0_17] : memref<16x32xf32, #tpu.memory_space<vmem>>, vector<16x32xf32>
      tpu.vector_store %arg8[%c0_16, %c0_17], %16 {strides = array<i32>} : memref<16x32xf32, #tpu.memory_space<vmem>>, vector<16x32xf32>,
    } else {
    }
    %c0 = arith.constant 0 : index
    %c0_1 = arith.constant 0 : index
    %3 = vector.load %arg8[%c0, %c0_1] : memref<16x32xf32, #tpu.memory_space<vmem>>, vector<16x32xf32>
    %c0_2 = arith.constant 0 : index
    %c0_3 = arith.constant 0 : index
    %4 = vector.load %arg3[%c0_2, %c0_3] : memref<16x32xbf16, #tpu.memory_space<vmem>>, vector<16x32xbf16>
    %c0_4 = arith.constant 0 : index
    %c0_5 = arith.constant 0 : index
    %5 = vector.load %arg5[%c0_4, %c0_5] : memref<32x32xbf16, #tpu.memory_space<vmem>>, vector<32x32xbf16>
    %cst = arith.constant dense<0.000000e+00> : vector<16x32xf32>
    %6 = tpu.matmul %4, %5, %cst {dimension_numbers = #tpu.dot_dimension_numbers<[1], [0], [0], [1], [0, 0, 1, 1], [], []>} : vector<16x32xbf16>, vector<32x32xbf16>, vector<16x32xf32> -> vector<16x32xf32>
    %c0_6 = arith.constant 0 : index
    %c0_7 = arith.constant 0 : index
    %7 = vector.load %arg4[%c0_6, %c0_7] : memref<16x32xbf16, #tpu.memory_space<vmem>>, vector<16x32xbf16>
    %c0_8 = arith.constant 0 : index
    %c0_9 = arith.constant 0 : index
    %8 = vector.load %arg6[%c0_8, %c0_9] : memref<32x32xbf16, #tpu.memory_space<vmem>>, vector<32x32xbf16>
    %cst_10 = arith.constant dense<0.000000e+00> : vector<16x32xf32>
    %9 = tpu.matmul %7, %8, %cst_10 {dimension_numbers = #tpu.dot_dimension_numbers<[1], [0], [0], [1], [0, 0, 1, 1], [], []>} : vector<16x32xbf16>, vector<32x32xbf16>, vector<16x32xf32> -> vector<16x32xf32>
    %10 = arith.addf %6, %9 : vector<16x32xf32>
    %11 = arith.addf %3, %10 : vector<16x32xf32>
    %c0_11 = arith.constant 0 : index
    %c0_12 = arith.constant 0 : index
    %12 = vector.load %arg8[%c0_11, %c0_12] : memref<16x32xf32, #tpu.memory_space<vmem>>, vector<16x32xf32>
    tpu.vector_store %arg8[%c0_11, %c0_12], %11 {strides = array<i32>} : memref<16x32xf32, #tpu.memory_space<vmem>>, vector<16x32xf32>,
    %c0_i32_13 = arith.constant 0 : i32
    %13 = arith.cmpi eq, %arg2, %c0_i32_13 : i32
    %14 = arith.extui %13 : i1 to i32
    %c0_i32_14 = arith.constant 0 : i32
    %15 = arith.cmpi ne, %14, %c0_i32_14 : i32
    scf.if %15 {
      %c0_15 = arith.constant 0 : index
      %c0_16 = arith.constant 0 : index
      %16 = vector.load %arg8[%c0_15, %c0_16] : memref<16x32xf32, #tpu.memory_space<vmem>>, vector<16x32xf32>
      %17 = arith.truncf %16 : vector<16x32xf32> to vector<16x32xbf16>
      %c0_17 = arith.constant 0 : index
      %c0_18 = arith.constant 0 : index
      %18 = vector.load %arg7[%c0_17, %c0_18] : memref<16x32xbf16, #tpu.memory_space<vmem>>, vector<16x32xbf16>
      tpu.vector_store %arg7[%c0_17, %c0_18], %17 {strides = array<i32>} : memref<16x32xbf16, #tpu.memory_space<vmem>>, vector<16x32xbf16>,
    } else {
    }
    return
  }
  func.func @transform_0(%arg0: i32, %arg1: i32, %arg2: i32) -> (i32, i32) {
    %c0_i32 = arith.constant 0 : i32
    return %arg0, %arg2 : i32, i32
  }
  func.func @transform_1(%arg0: i32, %arg1: i32, %arg2: i32) -> (i32, i32) {
    %c0_i32 = arith.constant 0 : i32
    return %arg0, %arg2 : i32, i32
  }
  func.func @transform_2(%arg0: i32, %arg1: i32, %arg2: i32) -> (i32, i32) {
    %c0_i32 = arith.constant 0 : i32
    return %arg2, %arg1 : i32, i32
  }
  func.func @transform_3(%arg0: i32, %arg1: i32, %arg2: i32) -> (i32, i32) {
    %c0_i32 = arith.constant 0 : i32
    return %arg2, %arg1 : i32, i32
  }
  func.func @transform_4(%arg0: i32, %arg1: i32, %arg2: i32) -> (i32, i32) {
    %c0_i32 = arith.constant 0 : i32
    return %arg0, %arg1 : i32, i32
  }
}

</mosaic_0001>

<bundles_post_ra>
// kernel: transformer_forward.13
= control target key start
LH: loop header
LB: loop body
LE: loop exit
PB: predicated region body
PF: predicated region fallthrough
CT: control target
= control target key end

     0   :  { %8 = vsyncpa [#allocation4], 0  ;;  %s171_s15 = smov [#allocation3]   ;;  %s172_s17 = smov 128   ;;  %s207_s0 = inlined_call_operand.vmem [shape: f32[2,32], index: 0, kind: input, shape index: {}]   ;;  %s208_s1 = inlined_call_operand.hbm [shape: bf16[32,256], index: 1, kind: input, shape index: {}]   ;;  %s209_s2 = inlined_call_operand.vmem [shape: f32[1,256], index: 2, kind: input, shape index: {}]   ;;  %s210_s3 = inlined_call_operand.vmem [shape: f32[2,256], index: 3, kind: output, shape index: {}]  }
   0x1   :  { %s15_s14 = sshll.u32 %s208_s1, 4  ;;  %s17_s16 = sshll.u32 %s171_s15, 4  ;;  %s16_s14 = int_to_ptr.hbm [resolvable:$true] %s15_s14  ;;  %s18_s16 = int_to_ptr.vmem [resolvable:$true] %s17_s16 }
   0x2   :  { %s173_s18 = smov 8  }
   0x3   :  { %23 = dma.hbm_to_vmem [thread:$0]  %s16_s14, 512, %s18_s16, [#allocation4], %s172_s17, %s172_s17, %s173_s18  }
   0x4   :  { %169 = dma.done.wait [#allocation4], 512  }
   0x5   :  { %170 = vsyncadd [#allocation4], 4294966784  ;;  %v129_v0 = vld [vmem:[#allocation3 + $0x10] sm:$0xf]  ;;  %v140_v1 = vld [vmem:[#allocation3 + $0x14] sm:$0xf0] }
   0x6   :  { %v139_v2 = vld [vmem:[#allocation3 + $0x14] sm:$0xf]  ;;  %v130_v3 = vor.u32 %v140_v1, %v129_v0  ;;  %v131_v4 = vld [vmem:[#allocation3 + $0x18] sm:$0xf0]  ;;  %v121_v5 = vld [vmem:[#allocation3] sm:$0xf] }
   0x7   :  { %v138_v6 = vld [vmem:[#allocation3 + $0x4] sm:$0xf0]  ;;  %v134_v7 = vor.u32 %v139_v2, %v131_v4  ;;  %v137_v8 = vld [vmem:[#allocation3 + $0x4] sm:$0xf]  ;;  %v123_v9 = vld [vmem:[#allocation3 + $0x8] sm:$0xf0] }
   0x8   :  { %73 = vmatpush.bf16.msra.mxu0 %v130_v3  ;;  %v122_v10 = vor.u32 %v138_v6, %v121_v5  ;;  %v37_v11 = vld [vmem:[%s207_s0] sm:$0x3]  ;;  %v126_v12 = vor.u32 %v137_v8, %v123_v9  ;;  %vm63_vm0 = vcmask 261120   ;;  %v174_v14 = vmov 0.0  }
   0x9   :  { %86 = vmatpush.bf16.msra.mxu1 %v134_v7  ;;  %v38_v13 = vpack.c.bf16 %v37_v11, %v37_v11  ;;  %35 = vst [vmem:[#allocation2] sm:$0xf] %v174_v14  ;;  %vm96_vm1 = vcmask 1041408   ;;  %v105_v17 = vld [vmem:[%s209_s2] sm:$0x3] }
   0xa   :  { %v108_v21 = vperm.slane %v105_v17, 1  ;;  %v107_v23 = vperm.slane %v105_v17, 0 }
   0xc   :  { %74 = vmatpush.bf16.msra.mxu0 %v122_v10  ;;  %v109_v24 = vrot.slane %v108_v21, 6 }
   0xd   :  { %87 = vmatpush.bf16.msra.mxu1 %v126_v12 }
   0xe   :  { %v110_v27 = vsel %vm96_vm1, %v107_v23, %v109_v24 }
   0xf   :  { %135 = vmatmul.msk.bf16.vlgmr.msra.gmra.mxu0 %vm63_vm0, %v38_v13 }
  0x10   :  { %136 = vmatmul.msk.bf16.vlgmr.msra.gmra.mxu1 %vm63_vm0, %v38_v13  ;;  %v36_v18 = vld [vmem:[#allocation2] sm:$0xf] }
  0x8c   :  { %v76_v15 = vpop.f32.mrf.mxu0 }
  0x8d   :  { %v89_v16 = vpop.f32.mrf.mxu1 }
  0x8e   :  { %v95_v19 = vrot.slane %v89_v16, 6 }
  0x90   :  { %v97_v20 = vsel %vm96_vm1, %v76_v15, %v95_v19 }
  0x91   :  { %v99_v22 = vadd.f32 %v97_v20, %v36_v18 }
  0x93   :  { %100 = vst [vmem:[#allocation2] sm:$0xf] %v99_v22 }
  0x94   :  { %v78_v25 = vpop.f32.mrf.mxu0 }
  0x95   :  { %v91_v26 = vpop.f32.mrf.mxu1 }
  0x9a   :  { %v104_v28 = vld [vmem:[#allocation2] sm:$0xf] }
  0x9b   :  { %v112_v29 = vadd.f32 %v110_v27, %v104_v28 }
  0x9d   :  { %113 = vst [vmem:[%s210_s3] sm:$0xf] %v112_v29 }
  0x9e   :  { %118 = vsyncpa [#allocation4], 1 }

// kernel: transformer_forward.16
= control target key start
LH: loop header
LB: loop body
LE: loop exit
PB: predicated region body
PF: predicated region fallthrough
CT: control target
= control target key end

     0   :  { %vm19_vm0 = vcmask 261120   ;;  %v110_v1 = vmov 0.0   ;;  %vm82_vm1 = vcmask 257024   ;;  %s154_s1 = inlined_call_operand.vmem [shape: bf16[32,32], index: 1, kind: input, shape index: {}]   ;;  %s155_s0 = inlined_call_operand.vmem [shape: bf16[16,32], index: 0, kind: input, shape index: {}]   ;;  %s156_s2 = inlined_call_operand.vmem [shape: bf16[16,32], index: 2, kind: input, shape index: {}]   ;;  %s157_s3 = inlined_call_operand.vmem [shape: bf16[16,32], index: 3, kind: output, shape index: {}]  }
   0x1   :  { %v104_v0 = vld [vmem:[%s154_s1 + $0x8] sm:$0xff]  ;;  %20 = vst.msk [vmem:[#allocation2] sm:$0xff] %vm19_vm0, %v110_v1  ;;  %v103_v2 = vld [vmem:[%s154_s1] sm:$0xff] }
   0x2   :  { %21 = vst.msk [vmem:[#allocation2 + $0x8] sm:$0xff] %vm19_vm0, %v110_v1  ;;  %57 = vmatpush.bf16.msra.mxu0 %v104_v0  ;;  %v102_v3 = vld [vmem:[%s155_s0] sm:$0xff] }
   0x3   :  { %v106_v7 = vld [vmem:[%s156_s2] sm:$0xff]  }
   0x4   :  { %v107_v9 = vunpack.c.l.bf16 %v106_v7  ;;  %v108_v15 = vunpack.c.h.bf16 %v106_v7 }
   0x6   :  { %58 = vmatpush.bf16.msra.mxu0 %v103_v2 }
   0x8   :  { %v22_v4 = vld [vmem:[#allocation2] sm:$0xff] }
   0x9   :  { %101 = vmatmul.msk.bf16.vlgmr.msra.gmra.mxu0 %vm19_vm0, %v102_v3  ;;  %v23_v8 = vld [vmem:[#allocation2 + $0x8] sm:$0xff] }
  0x86   :  { %v60_v5 = vpop.f32.mrf.mxu0 }
  0x87   :  { %v65_v6 = vadd.f32 %v60_v5, %v22_v4 }
  0x89   :  { %67 = vst.msk [vmem:[#allocation2] sm:$0xff] %vm19_vm0, %v65_v6 }
  0x8e   :  { %v62_v10 = vpop.f32.mrf.mxu0 }
  0x8f   :  { %v66_v11 = vadd.f32 %v62_v10, %v23_v8 }
  0x90   :  { %v72_v12 = vld [vmem:[#allocation2] sm:$0xff] }
  0x91   :  { %v78_v13 = vadd.f32 %v107_v9, %v72_v12  ;;  %68 = vst.msk [vmem:[#allocation2 + $0x8] sm:$0xff] %vm19_vm0, %v66_v11 }
  0x93   :  { %v80_v14 = vpack.c.bf16 %v78_v13, %v78_v13 }
  0x95   :  { %83 = vst.msk [vmem:[%s157_s3] sm:$0xf] %vm82_vm1, %v80_v14 }
  0x98   :  { %v73_v16 = vld [vmem:[#allocation2 + $0x8] sm:$0xff] }
  0x99   :  { %v79_v17 = vadd.f32 %v108_v15, %v73_v16 }
  0x9b   :  { %v81_v18 = vpack.c.bf16 %v79_v17, %v79_v17 }
  0x9d   :  { %84 = vst.msk [vmem:[%s157_s3 + $0x4] sm:$0xf] %vm82_vm1, %v81_v18 }

// kernel: transformer_forward.14
= control target key start
LH: loop header
LB: loop body
LE: loop exit
PB: predicated region body
PF: predicated region fallthrough
CT: control target
= control target key end

     0   :  { %s1084_s21 = smov 0   ;;  %s1086_s22 = smov 0   ;;  %s1310_s0 = inlined_call_operand.vmem [shape: bf16[2,8,32], index: 0, kind: input, shape index: {}]   ;;  %s1311_s1 = inlined_call_operand.vmem [shape: f32[2,1,32], index: 1, kind: input, shape index: {}]   ;;  %s1312_s2 = inlined_call_operand.vmem [shape: f32[2,1,32], index: 2, kind: input, shape index: {}]   ;;  %s1313_s3 = inlined_call_operand.vmem [shape: bf16[3,32,32], index: 3, kind: input, shape index: {}]   ;;  %s1314_s4 = inlined_call_operand.vmem [shape: f32[8,8], index: 4, kind: input, shape index: {}]   ;;  %s1315_s5 = inlined_call_operand.vmem [shape: f32[8,8], index: 5, kind: input, shape index: {}]   ;;  %s1316_s6 = inlined_call_operand.vmem [shape: bf16[2,3,8,32], index: 6, kind: output, shape index: {}]  }
   0x1   :  { %s1088_s23 = smov 0   ;;  %s1090_s24 = smov 0  }
   0x2   :  { %s1092_s25 = smov 0  }
   0x3 LB: > { %s28_s26 = sadd.s32 1, %s1029_s23  ;;  %s35_s27 = sadd.s32 1, %s1033_s24  ;;  %s1037_s25 = sphi %s1092_s25, %s16_s25   ;;  %s1033_s24 = sphi %s1090_s24, %s1324_s24   ;;  %s1029_s23 = sphi %s1088_s23, %s1323_s23   ;;  %s1025_s22 = sphi %s1086_s22, %s1322_s22   ;;  %s1021_s21 = sphi %s1084_s21, %s1321_s21  }
   0x4   : > { %p29_p0 = scmp.ge.s32.totalorder %s28_s26, 3  ;;  %p922_p1 = scmp.ge.s32.totalorder %s1037_s25, 1 }
   0x5   : > { %p283_p2 = scmp.lt.s32.totalorder %s1037_s25, 7 }
   0x6   : > { %s1326_s26 = smov (%p29_p0, %s28_s26), 0  ;;  %s1328_s27 = smov (!%p29_p0, %s35_s27), %s1033_s24 }
   0x7   : > { %1317 = sst [smem:[#allocation3_spill]] %s1326_s26  ;;  %p284_p3 = pnand %p922_p1, %p283_p2 }
   0x8   : > { %p37_p4 = scmp.ge.s32.totalorder %s1328_s27, 2  ;;  %p340_p5 = scmp.lt.s32.totalorder (!%p284_p3), %s1025_s22, 1 }
   0x9   : > { %287 = sbr.rel (%p284_p3) target bundleno = 744 (0x2e8), region = 44  ;;  %p353_p6 = scmp.lt.s32.totalorder (!%p284_p3), %s1021_s21, 2 }
   0xa   : > { %s1330_s27 = smov (%p37_p4, %s1328_s27), 0  ;;  %p927_p7 = scmp.ne.s32.totalorder (!%p284_p3), %s1021_s21, 0 }
   0xb   : > { %1318 = sst [smem:[#allocation4_spill]] %s1330_s27 }
   0xe   : > { %s1332_s22 = smov (!%p340_p5, %s1025_s22), 1 }
   0xf   : > { %s354_s28 = scalar_select %p353_p6, %s1021_s21, 2 }
  0x10   : > { %s923_s29 = sshll.u32 %s1332_s22, 2  ;;  %s349_s8 = scalar_lea.vmem %s1311_s1, %s1332_s22 }
  0x11   : > { %s346_s11 = scalar_lea.vmem %s1310_s0, %s923_s29  ;;  %s352_s14 = scalar_lea.vmem %s1312_s2, %s1332_s22 }
  0x12   : > { %s941_s15 = sshll.u32 %s354_s28, 4  ;;  %s944_s16 = smul.u32 3, %s1332_s22 }
  0x13   : > { %s1136_s19 = scalar_lea.vmem %s1313_s3, %s941_s15  ;;  %381 = sbr.rel (%p927_p7) target bundleno = 177 (0xb1), region = 48 }
  0x14   : > { %s374_s20 = sadd.s32 %s944_s16, %s354_s28 }
  0x15   : > { %s926_s27 = sshll.u32 %s374_s20, 2 }
  0x16   : > { %s1141_s7 = scalar_lea.vmem %s1316_s6, %s926_s27 }
  0x18   : > { %v382_v0 = vld [vmem:[%s346_s11] sm:$0xf]  ;;  %vm385_vm0 = vcmask 261120   ;;  %vm413_vm4 = vcmask 257024  }
  0x19   : > { %v383_v1 = vunpack.c.l.bf16 %v382_v0  ;;  %v995_v14 = vld [vmem:[%s349_s8] ss:$0 sm:$0xff] }
  0x1a   : > { %v996_v16 = vld [vmem:[%s352_s14] ss:$0 sm:$0xff] }
  0x1b   : > { %v384_v2 = vmul.f32 %v383_v1, %v383_v1 }
  0x1d   : > { %v386_v3 = vsel %vm385_vm0, %v384_v2, 0.0 }
  0x1e   : > { %387 = vadd.xlane.f32.xlu0 %v386_v3 }
  0x91   : > { %v388_v4 = vpop.xlane.xlu0 %387 }
  0x92   : > { %v389_v5 = vmax.f32 %v388_v4, 1e-24 }
  0x94   : > { %997 = vrsqrt.f32 %v389_v5  ;;  %vm396_vm2 = vweird.f32 %v389_v5 }
  0x9a   : > { %v998_v6 = vpop.eup %997 }
  0x9b   : > { %v391_v7 = vmul.f32 %v998_v6, %v389_v5  ;;  %vm397_vm1 = vweird.f32 %v998_v6 }
  0x9c   : > { %vm398_vm3 = vmor %vm396_vm2, %vm397_vm1 }
  0x9d   : > { %v392_v8 = vmul.f32 %v998_v6, %v391_v7 }
  0x9f   : > { %v393_v9 = vmul.f32 0.5, %v392_v8 }
  0xa1   : > { %v394_v10 = vsub.f32 1.5, %v393_v9 }
  0xa3   : > { %v395_v11 = vmul.f32 %v998_v6, %v394_v10 }
  0xa5   : > { %v399_v12 = vsel %vm398_vm3, %v998_v6, %v395_v11 }
  0xa6   : > { %v400_v13 = vmul.f32 %v399_v12, %v383_v1 }
  0xa8   : > { %v401_v15 = vmul.f32 5.656854, %v400_v13 }
  0xaa   : > { %v406_v17 = vmul.f32 %v995_v14, %v401_v15 }
  0xac   : > { %v411_v18 = vadd.f32 %v996_v16, %v406_v17 }
  0xae   : > { %v412_v19 = vpack.c.bf16 %v411_v18, %v411_v18 }
  0xb0   : > { %414 = vst.msk [vmem:[#allocation2] sm:$0xf] %vm413_vm4, %v412_v19 }
  0xb1 PF: > { %v943_v20 = vld [vmem:[%s1136_s19 + $0x8] sm:$0xff]  ;;  %v942_v21 = vld [vmem:[%s1136_s19] sm:$0xff]  ;;  %vm432_vm5 = vcmask 261120   ;;  %p937_p8 = scmp.ge.s32.totalorder %s1021_s21, 2 }
  0xb2   : > { %442 = vmatpush.bf16.msra.mxu0 %v943_v20  ;;  %s1039_s22 = smov (!%p937_p8), 112   ;;  %s1040_s8 = smov (!%p937_p8), 120  }
  0xb3   : > { %s1041_s9 = smov (!%p937_p8), 104   ;;  %s1044_s10 = smov (!%p937_p8), 4  }
  0xb4   : > { %s1045_s11 = smov (!%p937_p8), 124   ;;  %s1046_s16 = smov (!%p937_p8), 24  }
  0xb5   : > { %s1047_s17 = smov (!%p937_p8), 16   ;;  %s1048_s18 = smov (!%p937_p8), 8  }
  0xb6   : > { %443 = vmatpush.bf16.msra.mxu0 %v942_v21 }
  0xb7   : > { %v415_v22 = vld [vmem:[#allocation2] sm:$0xf] }
  0xb9   : > { %936 = vmatmul.msk.bf16.vlgmr.msra.gmra.mxu0 %vm432_vm5, %v415_v22 }
 0x136   : > { %v1156_v23 = vpop.f32.mrf.mxu0 }
 0x13a   : > { %452 = sbr.rel (%p937_p8) target bundleno = 734 (0x2de), region = 52 }
 0x13e   : > { %v447_v24 = vpop.f32.mrf.mxu0 }
 0x13f   : > { %457 = vrot.lane.b32.xlu0 %v1156_v23, %s1039_s22  ;;  %454 = vrot.lane.b32.xlu1 %v1156_v23, %s1040_s8  ;;  %v1042_v25 = vmov 1983009808   ;;  %v466_v27 = vrot.slane %v1156_v23, 4  ;;  %vm464_vm6 = vcmask 1047556   ;;  %v1043_v33 = vmov 1934713408  }
 0x140   : > { %v469_v26 = vunpack.c.l.s4 %v1042_v25  ;;  %v493_v34 = vunpack.c.l.s4 %v1043_v33  ;;  %v1233_v12 = vld [vmem:[%s1314_s4] sm:$0xff]  ;;  %vm592_vm7 = vcmask 31744   ;;  %vm743_vm8 = vcmask 64512  }
 0x141   : > { %v1238_v13 = vld [vmem:[%s1315_s5] sm:$0xff]  ;;  %v608_v14 = vrot.slane %v1233_v12, 6  ;;  %v606_v19 = vrot.slane %v1233_v12, 4  ;;  %vm745_vm9 = vcmask 130048   ;;  %vm747_vm10 = vcmask 195584  }
 0x142   : > { %v1163_v29 = vunpack.c.0.s8 %v469_v26  ;;  %v1167_v38 = vunpack.c.0.s8 %v493_v34  ;;  %v617_v16 = vrot.slane %v1238_v13, 6  ;;  %v615_v20 = vrot.slane %v1238_v13, 4 }
 0x143   : > { %v625_v17 = vperm.slane %v608_v14, 0  ;;  %v613_v33 = vrot.slane %v1238_v13, 2  ;;  %vm750_vm11 = vcmask 257024  }
 0x144   : > { %v649_v18 = vperm.slane %v617_v16, 0 }
 0x147   : > { %460 = vrot.lane.b32.xlu0 %v1156_v23, %s1041_s9 }
 0x1b1   : > { %v458_v28 = vpop.permute.xlu0 %457  ;;  %v455_v30 = vpop.permute.xlu1 %454 }
 0x1b2   : > { %v467_v31 = vsel %vm464_vm6, %v458_v28, %v466_v27  ;;  %v478_v32 = vrot.slane %v455_v30, 4  ;;  %v463_v35 = vrot.slane %v458_v28, 4  ;;  %v623_v27 = vperm.slane %v606_v19, 0 }
 0x1b3   : > { %v475_v36 = vperm.slane %v467_v31, %v1163_v29  ;;  %v647_v28 = vperm.slane %v615_v20, 0 }
 0x1b4   : > { %v465_v41 = vsel %vm464_vm6, %v463_v35, %v1156_v23 }
 0x1b5   : > { %v502_v42 = vrot.slane %v475_v36, 4  ;;  %v471_v48 = vperm.slane %v465_v41, %v1163_v29  ;;  %v645_v41 = vperm.slane %v613_v33, 0 }
 0x1b7   : > { %v490_v55 = vrot.slane %v471_v48, 4 }
 0x1b9   : > { %v461_v37 = vpop.permute.xlu0 %460 }
 0x1ba   : > { %v476_v39 = vrot.slane %v461_v37, 4  ;;  %v479_v40 = vsel %vm464_vm6, %v461_v37, %v478_v32  ;;  %v604_v37 = vrot.slane %v1233_v12, 2 }
 0x1bb   : > { %v487_v43 = vperm.slane %v479_v40, %v1163_v29 }
 0x1bc   : > { %v477_v44 = vsel %vm464_vm6, %v476_v39, %v455_v30 }
 0x1bd   : > { %v483_v45 = vperm.slane %v477_v44, %v1163_v29  ;;  %v500_v46 = vrot.slane %v487_v43, 4  ;;  %v503_v47 = vsel %vm464_vm6, %v487_v43, %v502_v42 }
 0x1be   : > { %v511_v49 = vperm.slane %v503_v47, %v1167_v38 }
 0x1bf   : > { %v488_v50 = vrot.slane %v483_v45, 4  ;;  %v501_v51 = vsel %vm464_vm6, %v500_v46, %v475_v36  ;;  %v491_v59 = vsel %vm464_vm6, %v483_v45, %v490_v55  ;;  %v621_v45 = vperm.slane %v604_v37, 0 }
 0x1c0   : > { %v1180_v52 = vperm.slane %v501_v51, %v1167_v38  ;;  %580 = vrot.lane.b32.xlu0 %v511_v49, %s1044_s10  ;;  %v526_v53 = vsub.f32 0.0, %v511_v49  ;;  %v518_v57 = vrot.slane %v511_v49, 4  ;;  %v499_v61 = vperm.slane %v491_v59, %v1167_v38 }
 0x1c1   : > { %v489_v54 = vsel %vm464_vm6, %v488_v50, %v471_v48  ;;  %v641_v24 = vmul.f32 %v625_v17, %v511_v49  ;;  %v619_v50 = vperm.slane %v1233_v12, 0  ;;  %v643_v51 = vperm.slane %v1238_v13, 0 }
 0x1c2   : > { %548 = vrot.lane.b32.xlu2 %v526_v53, %s1045_s11  ;;  %v524_v56 = vsub.f32 0.0, %v1180_v52  ;;  %v1187_v58 = vperm.slane %v489_v54, %v1167_v38  ;;  %v1192_v60 = vsel %vm464_vm6, 0.0, %v518_v57  ;;  %v514_v0 = vrot.slane %v499_v61, 4 }
 0x1c3   : > { %v527_v4 = vsub.f32 0.0, %v1192_v60  ;;  %v522_v5 = vsub.f32 0.0, %v499_v61  ;;  %v516_v7 = vrot.slane %v1180_v52, 4  ;;  %v639_v34 = vmul.f32 %v623_v27, %v1180_v52 }
 0x1c4   : > { %544 = vrot.lane.b32.xlu1 %v524_v56, %s1045_s11  ;;  %v512_v62 = vrot.slane %v1187_v58, 4  ;;  %v520_v1 = vsub.f32 0.0, %v1187_v58  ;;  %v1206_v2 = vsel %vm464_vm6, 0.0, %v514_v0  ;;  %v637_v48 = vmul.f32 %v621_v45, %v499_v61 }
 0x1c5   : > { %v523_v3 = vsub.f32 0.0, %v1206_v2  ;;  %v1220_v8 = vsel %vm464_vm6, 0.0, %v516_v7  ;;  %v605_v55 = vrot.slane %v1233_v12, 3  ;;  %v635_v57 = vmul.f32 %v619_v50, %v1187_v58 }
 0x1c6   : > { %v1200_v63 = vsel %vm464_vm6, 0.0, %v512_v62  ;;  %v525_v9 = vsub.f32 0.0, %v1220_v8  ;;  %v616_v27 = vrot.slane %v1238_v13, 5 }
 0x1c7   : > { %v521_v6 = vsub.f32 0.0, %v1200_v63 }
 0x1c8   : > { %582 = vrot.lane.b32.xlu0 %v1192_v60, %s1044_s10 }
 0x1ca   : > { %572 = vrot.lane.b32.xlu2 %v499_v61, %s1044_s10  ;;  %v603_v61 = vrot.slane %v1233_v12, 1 }
 0x1cc   : > { %570 = vrot.lane.b32.xlu1 %v1200_v63, %s1044_s10 }
 0x1d0   : > { %536 = vrot.lane.b32.xlu0 %v520_v1, %s1045_s11 }
 0x1d2   : > { %576 = vrot.lane.b32.xlu2 %v1180_v52, %s1044_s10  ;;  %v614_v52 = vrot.slane %v1238_v13, 3 }
 0x1d4   : > { %542 = vrot.lane.b32.xlu1 %v523_v3, %s1045_s11  ;;  %v646_v62 = vperm.slane %v614_v52, 0 }
 0x1d8   : > { %550 = vrot.lane.b32.xlu0 %v527_v4, %s1045_s11 }
 0x1da   : > { %540 = vrot.lane.b32.xlu2 %v522_v5, %s1045_s11  ;;  %v622_v5 = vperm.slane %v605_v55, 0 }
 0x1dc   : > { %538 = vrot.lane.b32.xlu1 %v521_v6, %s1045_s11  ;;  %v612_v6 = vrot.slane %v1238_v13, 1  ;;  %v638_v14 = vmul.f32 %v622_v5, %v1206_v2 }
 0x1de   : > { %v644_v16 = vperm.slane %v612_v6, 0 }
 0x1e0   : > { %578 = vrot.lane.b32.xlu0 %v1220_v8, %s1044_s10 }
 0x1e2   : > { %574 = vrot.lane.b32.xlu2 %v1206_v2, %s1044_s10 }
 0x1e4   : > { %546 = vrot.lane.b32.xlu1 %v525_v9, %s1045_s11 }
 0x1ea   : > { %568 = vrot.lane.b32.xlu2 %v1187_v58, %s1044_s10  ;;  %v620_v58 = vperm.slane %v603_v61, 0 }
 0x21c   : > { %v549_v10 = vpop.permute.xlu2 %548 }
 0x224   : > { %v573_v11 = vpop.permute.xlu2 %572 }
 0x22c   : > { %v577_v15 = vpop.permute.xlu2 %576 }
 0x232   : > { %v581_v21 = vpop.permute.xlu0 %580 }
 0x233   : > { %v599_v22 = vsel %vm592_vm7, %v549_v10, %v581_v21  ;;  %v618_v10 = vrot.slane %v1238_v13, 7 }
 0x234   : > { %v665_v25 = vmul.f32 %v649_v18, %v599_v22  ;;  %v541_v26 = vpop.permute.xlu2 %540 }
 0x235   : > { %v595_v44 = vsel %vm592_vm7, %v541_v26, %v573_v11  ;;  %v609_v11 = vrot.slane %v1233_v12, 7  ;;  %v650_v18 = vperm.slane %v618_v10, 0 }
 0x236   : > { %v673_v30 = vadd.f32 %v665_v25, %v641_v24  ;;  %v545_v31 = vpop.permute.xlu1 %544  ;;  %v661_v47 = vmul.f32 %v645_v41, %v595_v44  ;;  %v636_v24 = vmul.f32 %v620_v58, %v1200_v63  ;;  %v607_v25 = vrot.slane %v1233_v12, 5 }
 0x237   : > { %v597_v32 = vsel %vm592_vm7, %v545_v31, %v577_v15  ;;  %v626_v20 = vperm.slane %v609_v11, 0 }
 0x238   : > { %v663_v35 = vmul.f32 %v647_v28, %v597_v32  ;;  %v687_v36 = vrot.slane %v673_v30, 4  ;;  %v669_v53 = vadd.f32 %v661_v47, %v637_v48  ;;  %v624_v33 = vperm.slane %v607_v25, 0 }
 0x239   : > { %v642_v32 = vmul.f32 %v626_v20, %v1192_v60 }
 0x23a   : > { %v671_v39 = vadd.f32 %v663_v35, %v639_v34  ;;  %v583_v40 = vpop.permute.xlu0 %582  ;;  %v675_v3 = vrot.slane %v669_v53, 4  ;;  %v648_v35 = vperm.slane %v616_v27, 0 }
 0x23c   : > { %v688_v42 = vsel %vm464_vm6, %v687_v36, %v671_v39  ;;  %v575_v43 = vpop.permute.xlu2 %574 }
 0x23d   : > { %v692_v60 = vperm.slane %v688_v42, %v1163_v29 }
 0x23e   : > { %v571_v46 = vpop.permute.xlu1 %570 }
 0x242   : > { %v537_v49 = vpop.permute.xlu0 %536 }
 0x244   : > { %v569_v54 = vpop.permute.xlu2 %568 }
 0x245   : > { %v593_v56 = vsel %vm592_vm7, %v537_v49, %v569_v54 }
 0x246   : > { %v659_v59 = vmul.f32 %v643_v51, %v593_v56  ;;  %v543_v0 = vpop.permute.xlu1 %542  ;;  %v713_v51 = vrot.slane %v692_v60, 4 }
 0x247   : > { %v596_v1 = vsel %vm592_vm7, %v543_v0, %v575_v43  ;;  %v640_v43 = vmul.f32 %v624_v33, %v1220_v8 }
 0x248   : > { %v667_v4 = vadd.f32 %v659_v59, %v635_v57  ;;  %v662_v9 = vmul.f32 %v646_v62, %v596_v1 }
 0x24a   : > { %v676_v7 = vsel %vm464_vm6, %v675_v3, %v667_v4  ;;  %v551_v15 = vpop.permute.xlu0 %550  ;;  %v670_v17 = vadd.f32 %v662_v9, %v638_v14 }
 0x24b   : > { %v600_v21 = vsel %vm592_vm7, %v551_v15, %v583_v40  ;;  %v680_v28 = vperm.slane %v676_v7, %v1163_v29 }
 0x24c   : > { %v681_v2 = vrot.slane %v670_v17, 4  ;;  %v666_v30 = vmul.f32 %v650_v18, %v600_v21 }
 0x24d   : > { %v701_v36 = vrot.slane %v680_v28, 4 }
 0x24e   : > { %v539_v19 = vpop.permute.xlu1 %538  ;;  %v674_v63 = vadd.f32 %v666_v30, %v642_v32 }
 0x24f   : > { %v594_v22 = vsel %vm592_vm7, %v539_v19, %v571_v46 }
 0x250   : > { %v660_v26 = vmul.f32 %v644_v16, %v594_v22  ;;  %v693_v46 = vrot.slane %v674_v63, 4 }
 0x252   : > { %v668_v31 = vadd.f32 %v660_v26, %v636_v24  ;;  %v579_v39 = vpop.permute.xlu0 %578 }
 0x254   : > { %v682_v34 = vsel %vm464_vm6, %v681_v2, %v668_v31 }
 0x255   : > { %v686_v37 = vperm.slane %v682_v34, %v1163_v29 }
 0x256   : > { %v547_v12 = vpop.permute.xlu1 %546 }
 0x257   : > { %v699_v40 = vrot.slane %v686_v37, 4  ;;  %v598_v13 = vsel %vm592_vm7, %v547_v12, %v579_v39  ;;  %v702_v41 = vsel %vm464_vm6, %v686_v37, %v701_v36 }
 0x258   : > { %v664_v44 = vmul.f32 %v648_v35, %v598_v13  ;;  %v710_v49 = vperm.slane %v702_v41, %v1167_v38 }
 0x259   : > { %v700_v45 = vsel %vm464_vm6, %v699_v40, %v680_v28 }
 0x25a   : > { %v672_v47 = vadd.f32 %v664_v44, %v640_v43  ;;  %v706_v52 = vperm.slane %v700_v45, %v1167_v38  ;;  %v729_v55 = vrot.slane %v710_v49, 4 }
 0x25c   : > { %v694_v48 = vsel %vm464_vm6, %v693_v46, %v672_v47  ;;  %v725_v62 = vrot.slane %v706_v52, 4 }
 0x25d   : > { %v698_v50 = vperm.slane %v694_v48, %v1163_v29 }
 0x25f   : > { %v714_v53 = vsel %vm464_vm6, %v698_v50, %v713_v51  ;;  %v711_v54 = vrot.slane %v698_v50, 4 }
 0x260   : > { %v722_v8 = vperm.slane %v714_v53, %v1167_v38 }
 0x261   : > { %v712_v42 = vsel %vm464_vm6, %v711_v54, %v692_v60 }
 0x262   : > { %v730_v56 = vsel %vm464_vm6, %v722_v8, %v729_v55  ;;  %v727_v57 = vrot.slane %v722_v8, 4  ;;  %v718_v59 = vperm.slane %v712_v42, %v1167_v38 }
 0x263   : > { %740 = vrot.lane.b32.xlu0 %v730_v56, %s1046_s16 }
 0x264   : > { %v728_v29 = vsel %vm464_vm6, %v727_v57, %v710_v49  ;;  %v726_v0 = vsel %vm464_vm6, %v718_v59, %v725_v62  ;;  %v723_v61 = vrot.slane %v718_v59, 4 }
 0x265   : > { %736 = vrot.lane.b32.xlu2 %v728_v29, %s1047_s17  ;;  %732 = vrot.lane.b32.xlu1 %v726_v0, %s1048_s18 }
 0x266   : > { %v724_v1 = vsel %vm464_vm6, %v723_v61, %v706_v52 }
 0x2bf   : > { %v737_v38 = vpop.permute.xlu2 %736 }
 0x2d5   : > { %v741_v5 = vpop.permute.xlu0 %740 }
 0x2d7   : > { %v733_v3 = vpop.permute.xlu1 %732 }
 0x2d8   : > { %v744_v4 = vsel %vm743_vm8, %v724_v1, %v733_v3 }
 0x2d9   : > { %v746_v6 = vsel %vm745_vm9, %v744_v4, %v737_v38 }
 0x2da   : > { %v748_v7 = vsel %vm747_vm10, %v746_v6, %v741_v5 }
 0x2db   : > { %v749_v9 = vpack.c.bf16 %v748_v7, %v748_v7 }
 0x2dd   : > { %751 = vst.msk [vmem:[%s1141_s7] sm:$0xf] %vm750_vm11, %v749_v9 }
 0x2de PF: > { %p938_p9 = scmp.ne.s32.totalorder %s1021_s21, 2 }
 0x2e0   : > { %755 = sbr.rel (%p938_p9) target bundleno = 744 (0x2e8), region = 56 }
 0x2e5   : > { %v756_v10 = vpack.c.bf16 %v1156_v23, %v1156_v23  ;;  %vm757_vm12 = vcmask 257024  }
 0x2e7   : > { %758 = vst.msk [vmem:[%s1141_s7] sm:$0xf] %vm757_vm12, %v756_v10 }
 0x2e8 PF: > { %s16_s25 = sadd.s32 1, %s1037_s25   ;;  %s1319_s19 = sld [smem:[#allocation3_spill]] }
 0x2e9   : > { %p13_p10 = scmp.ge.s32.totalorder %s16_s25, 8   ;;  %s1320_s20 = sld [smem:[#allocation4_spill]] }
 0x2ea   : > { %s1321_s21 = smov %s1029_s23  ;;  %s1322_s22 = smov %s1033_s24 }
 0x2eb   :  { %15 = sbr.rel (!%p13_p10) target bundleno = 3 (0x3), region = 101 }
 0x2ee   : > { %s1323_s23 = smov %s1319_s19 }
 0x2ef   : > { %s1324_s24 = smov %s1320_s20 }

// kernel: transformer_forward.17
= control target key start
LH: loop header
LB: loop body
LE: loop exit
PB: predicated region body
PF: predicated region fallthrough
CT: control target
= control target key end

     0   :  { %s653_s18 = smov 0   ;;  %s655_s19 = smov 0   ;;  %s712_s0 = inlined_call_operand.vmem [shape: bf16[2,8,32], index: 0, kind: input, shape index: {}]   ;;  %s713_s1 = inlined_call_operand.vmem [shape: f32[2,1,32], index: 1, kind: input, shape index: {}]   ;;  %s714_s2 = inlined_call_operand.vmem [shape: f32[2,1,32], index: 2, kind: input, shape index: {}]   ;;  %s715_s3 = inlined_call_operand.vmem [shape: bf16[32,64], index: 3, kind: input, shape index: {}]   ;;  %s716_s4 = inlined_call_operand.vmem [shape: f32[1,64], index: 4, kind: input, shape index: {}]   ;;  %s717_s5 = inlined_call_operand.vmem [shape: bf16[2,8,64], index: 5, kind: output, shape index: {}]  }
   0x1   :  { %s657_s20 = smov 0  }
   0x2 LB: > { %s34_s21 = sadd.s32 1, %s617_s19  ;;  %p552_p0 = scmp.ge.s32.totalorder %s621_s20, 1  ;;  %s621_s20 = sphi %s657_s20, %s15_s20   ;;  %s617_s19 = sphi %s655_s19, %s719_s19   ;;  %s613_s18 = sphi %s653_s18, %s718_s18  }
   0x3   : > { %p36_p1 = scmp.ge.s32.totalorder %s34_s21, 2  ;;  %p247_p2 = scmp.lt.s32.totalorder %s621_s20, 3 }
   0x5   : > { %s721_s21 = smov (%p36_p1, %s34_s21), 0  ;;  %p248_p3 = pnand %p552_p0, %p247_p2 }
   0x6   : > { %p295_p4 = scmp.lt.s32.totalorder (!%p248_p3), %s613_s18, 1 }
   0x7   : > { %251 = sbr.rel (%p248_p3) target bundleno = 329 (0x149), region = 40 }
   0xc   : > { %s723_s18 = smov (!%p295_p4, %s613_s18), 1  ;;  %vm333_vm0 = vcmask 261120   ;;  %v567_v4 = vld [vmem:[%s715_s3 + $0x8] sm:$0xff]  ;;  %v566_v6 = vld [vmem:[%s715_s3] sm:$0xff]  ;;  %vm361_vm4 = vcmask 257024   ;;  %vm411_vm5 = vcmask 519168  }
   0xd   : > { %s553_s22 = sshll.u32 %s723_s18, 2  ;;  %s307_s25 = scalar_lea.vmem %s714_s2, %s723_s18  ;;  %394 = vmatpush.bf16.msra.mxu0 %v567_v4  ;;  %v594_v23 = vld [vmem:[%s716_s4] ss:$0 sm:$0xff] }
   0xe   : > { %s301_s28 = scalar_lea.vmem %s712_s0, %s553_s22  ;;  %s304_s6 = scalar_lea.vmem %s713_s1, %s723_s18  ;;  %v592_v17 = vld [vmem:[%s307_s25] ss:$0 sm:$0xff] }
   0xf   : > { %v330_v0 = vld [vmem:[%s301_s28] sm:$0xf]  ;;  %s324_s15 = scalar_lea.vmem %s717_s5, %s553_s22 }
  0x10   : > { %v331_v1 = vunpack.c.l.bf16 %v330_v0  ;;  %v593_v16 = vld [vmem:[%s304_s6] ss:$0 sm:$0xff] }
  0x11   : > { %395 = vmatpush.bf16.msra.mxu0 %v566_v6 }
  0x12   : > { %v332_v2 = vmul.f32 %v331_v1, %v331_v1 }
  0x14   : > { %v334_v3 = vsel %vm333_vm0, %v332_v2, 0.0 }
  0x15   : > { %335 = vadd.xlane.f32.xlu0 %v334_v3 }
  0x88   : > { %v336_v5 = vpop.xlane.xlu0 %335 }
  0x89   : > { %v337_v7 = vmax.f32 %v336_v5, 1e-24 }
  0x8b   : > { %595 = vrsqrt.f32 %v337_v7  ;;  %vm344_vm2 = vweird.f32 %v337_v7 }
  0x91   : > { %v596_v8 = vpop.eup %595 }
  0x92   : > { %v339_v9 = vmul.f32 %v596_v8, %v337_v7  ;;  %vm345_vm1 = vweird.f32 %v596_v8 }
  0x93   : > { %vm346_vm3 = vmor %vm344_vm2, %vm345_vm1 }
  0x94   : > { %v340_v10 = vmul.f32 %v596_v8, %v339_v9 }
  0x96   : > { %v341_v11 = vmul.f32 0.5, %v340_v10 }
  0x98   : > { %v342_v12 = vsub.f32 1.5, %v341_v11 }
  0x9a   : > { %v343_v13 = vmul.f32 %v596_v8, %v342_v12 }
  0x9c   : > { %v347_v14 = vsel %vm346_vm3, %v596_v8, %v343_v13 }
  0x9d   : > { %v348_v15 = vmul.f32 %v347_v14, %v331_v1 }
  0x9f   : > { %v349_v18 = vmul.f32 5.656854, %v348_v15 }
  0xa1   : > { %v354_v19 = vmul.f32 %v593_v16, %v349_v18 }
  0xa3   : > { %v359_v20 = vadd.f32 %v592_v17, %v354_v19 }
  0xa5   : > { %v360_v21 = vpack.c.bf16 %v359_v20, %v359_v20 }
  0xa7   : > { %362 = vst.msk [vmem:[#allocation2] sm:$0xf] %vm361_vm4, %v360_v21 }
  0xae   : > { %v363_v22 = vld [vmem:[#allocation2] sm:$0xf] }
  0xaf   : > { %563 = vmatmul.msk.bf16.vlgmr.msra.gmra.mxu0 %vm333_vm0, %v363_v22 }
 0x12c   : > { %v397_v24 = vpop.f32.mrf.mxu0 }
 0x12d   : > { %v398_v25 = vadd.f32 %v594_v23, %v397_v24 }
 0x12f   : > { %v401_v26 = vmul.f32 %v398_v25, %v398_v25 }
 0x131   : > { %v402_v27 = vmul.f32 %v401_v26, %v398_v25 }
 0x133   : > { %v403_v28 = vmul.f32 0.044715, %v402_v27 }
 0x134   : > { %v399_v29 = vpop.f32.mrf.mxu0 }
 0x135   : > { %v404_v30 = vadd.f32 %v403_v28, %v398_v25 }
 0x137   : > { %v405_v31 = vmul.f32 0.7978846, %v404_v30 }
 0x139   : > { %597 = vtanh.f32 %v405_v31 }
 0x13f   : > { %v598_v32 = vpop.eup %597 }
 0x140   : > { %v407_v33 = vadd.f32 1.0, %v598_v32 }
 0x142   : > { %v408_v34 = vmul.f32 0.5, %v407_v33 }
 0x144   : > { %v409_v35 = vmul.f32 %v408_v34, %v398_v25 }
 0x146   : > { %v410_v36 = vpack.c.bf16 %v409_v35, %v409_v35 }
 0x148   : > { %412 = vst.msk [vmem:[%s324_s15] sm:$0xf] %vm411_vm5, %v410_v36 }
 0x149 PF: > { %s15_s20 = sadd.s32 1, %s621_s20   ;;  %s718_s18 = smov %s617_s19 }
 0x14a   : > { %p12_p5 = scmp.ge.s32.totalorder %s15_s20, 4   ;;  %s719_s19 = smov %s721_s21 }
 0x14c   :  { %14 = sbr.rel (!%p12_p5) target bundleno = 2 (0x2), region = 86 }

// kernel: transformer_forward.15
= control target key start
LH: loop header
LB: loop body
LE: loop exit
PB: predicated region body
PF: predicated region fallthrough
CT: control target
= control target key end

     0   :  { %s1517_s15 = smov 0   ;;  %s1519_s16 = smov 0   ;;  %s1832_s0 = inlined_call_operand.vmem [shape: bf16[2,3,8,32], index: 0, kind: input, shape index: {}, may-alias: {0,1,2}]   ;;  %s1833_s1 = inlined_call_operand.vmem [shape: bf16[2,3,8,32], index: 1, kind: input, shape index: {}, may-alias: {0,1,2}]   ;;  %s1834_s2 = inlined_call_operand.vmem [shape: bf16[2,3,8,32], index: 2, kind: input, shape index: {}, may-alias: {0,1,2}]   ;;  %s1835_s3 = inlined_call_operand.vmem [shape: f32[2,1,8], index: 3, kind: input, shape index: {}]   ;;  %s1836_s4 = inlined_call_operand.vmem [shape: bf16[2,8,32], index: 4, kind: output, shape index: {}]  }
   0x1   :  { %s1521_s17 = smov 0  }
   0x2 LB: > { %s33_s18 = sadd.s32 1, %s1475_s16  ;;  %p1376_p0 = scmp.ge.s32.totalorder %s1479_s17, 1  ;;  %s1479_s17 = sphi %s1521_s17, %s14_s17   ;;  %s1475_s16 = sphi %s1519_s16, %s1840_s16   ;;  %s1471_s15 = sphi %s1517_s15, %s1839_s15  }
   0x3   : > { %p35_p1 = scmp.ge.s32.totalorder %s33_s18, 2  ;;  %p233_p2 = scmp.lt.s32.totalorder %s1479_s17, 3 }
   0x5   : > { %s1842_s18 = smov (%p35_p1, %s33_s18), 0  ;;  %p234_p3 = pnand %p1376_p0, %p233_p2 }
   0x6   : > { %p288_p4 = scmp.lt.s32.totalorder (!%p234_p3), %s1471_s15, 1  ;;  %s1481_s26 = smov (!%p234_p3), 104  }
   0x7   : > { %237 = sbr.rel (%p234_p3) target bundleno = 965 (0x3c5), region = 36  ;;  %s1482_s27 = smov (!%p234_p3), 120  }
   0x8   : > { %s1483_s28 = smov (!%p234_p3), 112   ;;  %s1489_s11 = smov (!%p234_p3), 24  }
   0x9   : > { %s1490_s12 = smov (!%p234_p3), 16   ;;  %s1491_s13 = smov (!%p234_p3), 8  }
   0xc   : > { %s1844_s15 = smov (!%p288_p4, %s1471_s15), 1  ;;  %v1484_v4 = vmov 1983009808   ;;  %v1485_v19 = vmov 1934713408   ;;  %vm378_vm0 = vcmask 1047556  }
   0xd   : > { %s1538_s19 = smul.u32 12, %s1844_s15  ;;  %v369_v5 = vunpack.c.l.s4 %v1484_v4  ;;  %v383_v20 = vunpack.c.l.s4 %v1485_v19  ;;  %vm342_vm1 = vcmask 64512   ;;  %s319_s8 = scalar_lea.vmem %s1835_s3, %s1844_s15  ;;  %vm333_vm2 = vcmask 7168  }
   0xe   : > { %vm930_vm3 = vcmask 1043456   ;;  %s1380_s14 = sshll.u32 %s1844_s15, 2 }
   0xf   : > { %s1305_s22 = scalar_lea.vmem %s1833_s1, %s1538_s19  ;;  %s295_s25 = scalar_lea.vmem %s1832_s0, %s1538_s19  ;;  %v1554_v13 = vunpack.c.0.s8 %v369_v5  ;;  %v1560_v33 = vunpack.c.0.s8 %v383_v20 }
  0x10   : > { %v1381_v0 = vld [vmem:[%s1305_s22 + $0x4] sm:$0xf]  ;;  %v347_v1 = vld [vmem:[%s295_s25] sm:$0xf]  ;;  %s1310_s5 = scalar_lea.vmem %s1834_s2, %s1538_s19  ;;  %s326_s21 = scalar_lea.vmem %s1836_s4, %s1380_s14 }
  0x11   : > { %476 = vrot.lane.b32.xlu1 %v1381_v0, %s1481_s26  ;;  %472 = vrot.lane.b32.xlu0 %v1381_v0, %s1482_s27  ;;  %v481_v8 = vshrl.u32 %v1381_v0, 16  ;;  %v358_v21 = vshrl.u32 %v347_v1, 16  ;;  %v1576_v51 = vld [vmem:[%s1310_s5 + $0x8] sm:$0xf] }
  0x12   : > { %351 = vrot.lane.b32.xlu2 %v347_v1, %s1483_s28 }
  0x19   : > { %474 = vrot.lane.b32.xlu0 %v1381_v0, %s1483_s28  ;;  %349 = vrot.lane.b32.xlu1 %v347_v1, %s1482_s27 }
  0x1a   : > { %353 = vrot.lane.b32.xlu2 %v347_v1, %s1481_s26 }
  0x21   : > { %594 = vrot.lane.b32.xlu0 %v1576_v51, %s1482_s27  ;;  %596 = vrot.lane.b32.xlu1 %v1576_v51, %s1483_s28 }
  0x22   : > { %598 = vrot.lane.b32.xlu2 %v1576_v51, %s1481_s26 }
  0x6c   : > { %v352_v2 = vpop.permute.xlu2 %351 }
  0x6d   : > { %v364_v9 = vshrl.u32 %v352_v2, 16 }
  0x74   : > { %v354_v3 = vpop.permute.xlu2 %353 }
  0x75   : > { %v363_v10 = vpack.i.b16 %v354_v3, %v352_v2  ;;  %v365_v11 = vshrl.u32 %v354_v3, 16 }
  0x77   : > { %v366_v16 = vpack.i.b16 %v365_v11, %v364_v9  ;;  %v376_v17 = vperm.slane %v363_v10, %v1554_v13 }
  0x79   : > { %v377_v25 = vrot.slane %v376_v17, 4  ;;  %v403_v26 = vperm.slane %v366_v16, %v1554_v13 }
  0x7b   : > { %v404_v39 = vrot.slane %v403_v26, 4 }
  0x83   : > { %v477_v6 = vpop.permute.xlu1 %476  ;;  %v473_v7 = vpop.permute.xlu0 %472 }
  0x84   : > { %v482_v12 = vshrl.u32 %v473_v7, 16  ;;  %v480_v14 = vpack.i.b16 %v473_v7, %v1381_v0  ;;  %v488_v22 = vshrl.u32 %v477_v6, 16 }
  0x86   : > { %v483_v15 = vpack.i.b16 %v482_v12, %v481_v8  ;;  %v494_v18 = vperm.slane %v480_v14, %v1554_v13 }
  0x88   : > { %v520_v23 = vperm.slane %v483_v15, %v1554_v13  ;;  %v502_v32 = vrot.slane %v494_v18, 4 }
  0x8a   : > { %v528_v38 = vrot.slane %v520_v23, 4 }
  0x8b   : > { %v475_v24 = vpop.permute.xlu0 %474  ;;  %v350_v27 = vpop.permute.xlu1 %349 }
  0x8c   : > { %v486_v28 = vpack.i.b16 %v477_v6, %v475_v24  ;;  %v487_v29 = vshrl.u32 %v475_v24, 16  ;;  %v357_v30 = vpack.i.b16 %v350_v27, %v347_v1  ;;  %v359_v31 = vshrl.u32 %v350_v27, 16 }
  0x8e   : > { %v489_v34 = vpack.i.b16 %v488_v22, %v487_v29  ;;  %v499_v35 = vperm.slane %v486_v28, %v1554_v13  ;;  %v360_v36 = vpack.i.b16 %v359_v31, %v358_v21  ;;  %v371_v37 = vperm.slane %v357_v30, %v1554_v13 }
  0x90   : > { %v500_v40 = vrot.slane %v499_v35, 4  ;;  %v503_v41 = vsel %vm378_vm0, %v499_v35, %v502_v32  ;;  %v525_v42 = vperm.slane %v489_v34, %v1554_v13  ;;  %v379_v43 = vsel %vm378_vm0, %v377_v25, %v371_v37 }
  0x91   : > { %v511_v44 = vperm.slane %v503_v41, %v1560_v33  ;;  %v380_v45 = vrot.slane %v371_v37, 4  ;;  %v385_v46 = vperm.slane %v379_v43, %v1560_v33  ;;  %v398_v50 = vperm.slane %v360_v36, %v1554_v13 }
  0x92   : > { %v501_v47 = vsel %vm378_vm0, %v500_v40, %v494_v18  ;;  %v526_v48 = vrot.slane %v525_v42, 4  ;;  %v529_v49 = vsel %vm378_vm0, %v525_v42, %v528_v38 }
  0x93   : > { %v507_v52 = vperm.slane %v501_v47, %v1560_v33  ;;  %v514_v53 = vrot.slane %v511_v44, 4  ;;  %v537_v54 = vperm.slane %v529_v49, %v1560_v33  ;;  %v381_v55 = vsel %vm378_vm0, %v376_v17, %v380_v45 }
  0x94   : > { %v527_v56 = vsel %vm378_vm0, %v526_v48, %v520_v23  ;;  %v389_v57 = vperm.slane %v381_v55, %v1560_v33  ;;  %v405_v58 = vsel %vm378_vm0, %v404_v39, %v398_v50  ;;  %v390_v0 = vrot.slane %v385_v46, 4 }
  0x95   : > { %v512_v59 = vrot.slane %v507_v52, 4  ;;  %v515_v60 = vsel %vm378_vm0, 0, %v514_v53  ;;  %v533_v61 = vperm.slane %v527_v56, %v1560_v33  ;;  %v540_v62 = vrot.slane %v537_v54, 4 }
  0x96   : > { %v547_v63 = vrot.slane %v515_v60, 4  ;;  %v392_v1 = vrot.slane %v389_v57, 4  ;;  %v406_v2 = vrot.slane %v398_v50, 4  ;;  %v411_v6 = vperm.slane %v405_v58, %v1560_v33 }
  0x97   : > { %v513_v3 = vsel %vm378_vm0, 0, %v512_v59  ;;  %v538_v4 = vrot.slane %v533_v61, 4  ;;  %v541_v5 = vsel %vm378_vm0, 0, %v540_v62  ;;  %v391_v14 = vsel %vm378_vm0, 0, %v390_v0 }
  0x98   : > { %v566_v7 = vrot.slane %v541_v5, 4  ;;  %v393_v8 = vsel %vm378_vm0, 0, %v392_v1  ;;  %v407_v9 = vsel %vm378_vm0, %v403_v26, %v406_v2  ;;  %v542_v15 = vsel %vm378_vm0, %v514_v53, %v507_v52 }
  0x99   : > { %v415_v10 = vperm.slane %v407_v9, %v1560_v33  ;;  %v425_v11 = vrot.slane %v393_v8, 4  ;;  %v539_v12 = vsel %vm378_vm0, 0, %v538_v4  ;;  %v548_v16 = vsel %vm378_vm0, %v547_v63, %v513_v3 }
  0x9a   : > { %v567_v17 = vsel %vm378_vm0, %v566_v7, %v539_v12  ;;  %v416_v18 = vrot.slane %v411_v6, 4  ;;  %v552_v20 = vperm.slane %v548_v16, %v1554_v13  ;;  %v561_v21 = vsel %vm378_vm0, %v540_v62, %v533_v61  ;;  %v595_v16 = vpop.permute.xlu0 %594 }
  0x9b   : > { %v418_v19 = vrot.slane %v415_v10, 4  ;;  %v420_v22 = vsel %vm378_vm0, %v392_v1, %v385_v46  ;;  %v571_v23 = vperm.slane %v567_v17, %v1554_v13  ;;  %v426_v24 = vsel %vm378_vm0, %v425_v11, %v391_v14  ;;  %v599_v17 = vpop.permute.xlu2 %598 }
  0x9c   : > { %v546_v26 = vperm.slane %v542_v15, %v1554_v13  ;;  %v553_v27 = vrot.slane %v552_v20, 4  ;;  %v430_v28 = vperm.slane %v426_v24, %v1554_v13  ;;  %v565_v30 = vperm.slane %v561_v21, %v1554_v13  ;;  %v597_v21 = vpop.permute.xlu1 %596 }
  0x9d   : > { %v419_v25 = vsel %vm378_vm0, 0, %v418_v19  ;;  %v572_v31 = vrot.slane %v571_v23, 4  ;;  %v417_v32 = vsel %vm378_vm0, 0, %v416_v18  ;;  %v424_v35 = vperm.slane %v420_v22, %v1554_v13 }
  0x9e   : > { %v444_v29 = vrot.slane %v419_v25, 4  ;;  %v554_v34 = vsel %vm378_vm0, %v553_v27, %v546_v26  ;;  %v431_v36 = vrot.slane %v430_v28, 4  ;;  %v439_v42 = vsel %vm378_vm0, %v418_v19, %v411_v6 }
  0x9f   : > { %v558_v37 = vperm.slane %v554_v34, %v1560_v33  ;;  %v573_v38 = vsel %vm378_vm0, %v572_v31, %v565_v30  ;;  %v443_v53 = vperm.slane %v439_v42, %v1554_v13  ;;  %v603_v15 = vshrl.u32 %v1576_v51, 16 }
  0xa0   : > { %v445_v39 = vsel %vm378_vm0, %v444_v29, %v417_v32  ;;  %v577_v40 = vperm.slane %v573_v38, %v1560_v33  ;;  %v432_v41 = vsel %vm378_vm0, %v431_v36, %v424_v35  ;;  %v602_v18 = vpack.i.b16 %v595_v16, %v1576_v51 }
  0xa1   : > { %v449_v43 = vperm.slane %v445_v39, %v1554_v13  ;;  %v583_v44 = vshrl.u32 %v558_v37, 16  ;;  %v559_v45 = vrot.slane %v558_v37, 4  ;;  %v436_v46 = vperm.slane %v432_v41, %v1560_v33 }
  0xa2   : > { %v582_v47 = vpack.i.b16 %v577_v40, %v558_v37  ;;  %v584_v48 = vshrl.u32 %v577_v40, 16  ;;  %v578_v49 = vrot.slane %v577_v40, 4  ;;  %v604_v19 = vshrl.u32 %v595_v16, 16 }
  0xa3   : > { %v450_v50 = vrot.slane %v449_v43, 4  ;;  %v560_v52 = vsel %vm378_vm0, 0, %v559_v45  ;;  %v437_v63 = vrot.slane %v436_v46, 4  ;;  %v461_v6 = vshrl.u32 %v436_v46, 16  ;;  %v1432_v45 = vld [vmem:[%s319_s8] ss:$0 sm:$0xff] }
  0xa4   : > { %v719_v54 = vsel %vm342_vm1, %v582_v47, 0  ;;  %v585_v55 = vpack.i.b16 %v584_v48, %v583_v44  ;;  %v579_v56 = vsel %vm378_vm0, 0, %v578_v49  ;;  %v589_v58 = vshrl.u32 %v560_v52, 16 }
  0xa5   : > { %728 = vmatpush.bf16.xpose.msra.mxu0 %v719_v54  ;;  %v588_v57 = vpack.i.b16 %v579_v56, %v560_v52  ;;  %v590_v59 = vshrl.u32 %v579_v56, 16  ;;  %v451_v60 = vsel %vm378_vm0, %v450_v50, %v443_v53  ;;  %v438_v7 = vsel %vm378_vm0, 0, %v437_v63 }
  0xa6   : > { %v738_v61 = vsel %vm342_vm1, %v585_v55, 0  ;;  %v455_v62 = vperm.slane %v451_v60, %v1560_v33  ;;  %v467_v12 = vshrl.u32 %v438_v7, 16  ;;  %v610_v20 = vshrl.u32 %v599_v17, 16 }
  0xa7   : > { %747 = vmatpush.bf16.xpose.msra.mxu1 %v738_v61  ;;  %v757_v0 = vsel %vm342_vm1, %v588_v57, 0  ;;  %v591_v1 = vpack.i.b16 %v590_v59, %v589_v58  ;;  %v608_v22 = vpack.i.b16 %v599_v17, %v597_v21  ;;  %v609_v23 = vshrl.u32 %v597_v21, 16 }
  0xa8   : > { %766 = vmatpush.bf16.xpose.msra.mxu2 %v757_v0  ;;  %v462_v2 = vshrl.u32 %v455_v62, 16  ;;  %v456_v3 = vrot.slane %v455_v62, 4  ;;  %v460_v5 = vpack.i.b16 %v455_v62, %v436_v46  ;;  %v605_v24 = vpack.i.b16 %v604_v19, %v603_v15 }
  0xa9   : > { %v776_v4 = vsel %vm342_vm1, %v591_v1, 0  ;;  %v616_v25 = vperm.slane %v602_v18, %v1554_v13  ;;  %v1486_v26 = vmov -inf   ;;  %v611_v27 = vpack.i.b16 %v610_v20, %v609_v23 }
  0xaa   : > { %785 = vmatpush.bf16.xpose.msra.mxu3 %v776_v4  ;;  %v457_v8 = vsel %vm378_vm0, 0, %v456_v3  ;;  %v463_v10 = vpack.i.b16 %v462_v2, %v461_v6  ;;  %334 = vst.msk [vmem:[#allocation2] sm:$0xff] %vm333_vm2, %v1486_v26  ;;  %v621_v28 = vperm.slane %v608_v22, %v1554_v13  ;;  %v642_v51 = vperm.slane %v605_v24, %v1554_v13 }
  0xab   : > { %v468_v9 = vshrl.u32 %v457_v8, 16  ;;  %v466_v11 = vpack.i.b16 %v457_v8, %v438_v7  ;;  %335 = vst.msk [vmem:[#allocation2 + $0x8] sm:$0xff] %vm333_vm2, %v1486_v26  ;;  %v624_v29 = vrot.slane %v616_v25, 4  ;;  %v647_v31 = vperm.slane %v611_v27, %v1554_v13 }
  0xac   : > { %1383 = vmatmul.msk.bf16.vlgmr.msra.gmra.mxu0 %vm342_vm1, %v460_v5  ;;  %336 = vst.msk [vmem:[#allocation2 + $0x10] sm:$0xff] %vm333_vm2, %v1486_v26  ;;  %v622_v30 = vrot.slane %v621_v28, 4  ;;  %v650_v32 = vrot.slane %v642_v51, 4 }
  0xad   : > { %v469_v14 = vpack.i.b16 %v468_v9, %v467_v12  ;;  %337 = vst.msk [vmem:[#allocation2 + $0x18] sm:$0xff] %vm333_vm2, %v1486_v26  ;;  %v625_v34 = vsel %vm378_vm0, %v621_v28, %v624_v29  ;;  %v648_v37 = vrot.slane %v647_v31, 4 }
  0xae   : > { %1384 = vmatmul.msk.bf16.vlgmr.msra.gmra.mxu1 %vm342_vm1, %v463_v10  ;;  %v623_v35 = vsel %vm378_vm0, %v622_v30, %v616_v25  ;;  %v633_v36 = vperm.slane %v625_v34, %v1560_v33  ;;  %v651_v39 = vsel %vm378_vm0, %v647_v31, %v650_v32 }
  0xaf   : > { %1385 = vmatmul.msk.bf16.vlgmr.msra.gmra.mxu2 %vm342_vm1, %v466_v11  ;;  %v629_v38 = vperm.slane %v623_v35, %v1560_v33  ;;  %v649_v41 = vsel %vm378_vm0, %v648_v37, %v642_v51  ;;  %v659_v42 = vperm.slane %v651_v39, %v1560_v33 }
  0xb0   : > { %v636_v40 = vrot.slane %v633_v36, 4  ;;  %v655_v44 = vperm.slane %v649_v41, %v1560_v33 }
  0xb1   : > { %1386 = vmatmul.msk.bf16.vlgmr.msra.gmra.mxu3 %vm342_vm1, %v469_v14  ;;  %v634_v43 = vrot.slane %v629_v38, 4  ;;  %v662_v47 = vrot.slane %v659_v42, 4  ;;  %v1487_v42 = vmov 0  }
  0xb2   : > { %v637_v46 = vsel %vm378_vm0, 0, %v636_v40  ;;  %v660_v50 = vrot.slane %v655_v44, 4  ;;  %v664_v53 = vsel %vm378_vm0, %v636_v40, %v629_v38  ;;  %1430 = vset.pattern.permute.xlu2 %v1487_v42  ;;  %1429 = vset.pattern.permute.xlu0 %v1487_v42 }
  0xb3   : > { %v635_v49 = vsel %vm378_vm0, 0, %v634_v43  ;;  %v669_v52 = vrot.slane %v637_v46, 4  ;;  %v663_v55 = vsel %vm378_vm0, 0, %v662_v47  ;;  %v683_v56 = vsel %vm378_vm0, %v662_v47, %v655_v44  ;;  %1431 = vset.pattern.permute.xlu1 %v1487_v42  ;;  %v1711_v44 = vld [vmem:[#allocation2] sm:$0xff] }
  0xb4   : > { %v688_v58 = vrot.slane %v663_v55, 4  ;;  %v661_v59 = vsel %vm378_vm0, 0, %v660_v50  ;;  %v668_v62 = vperm.slane %v664_v53, %v1554_v13  ;;  %v687_v0 = vperm.slane %v683_v56, %v1554_v13 }
  0xb5   : > { %v670_v60 = vsel %vm378_vm0, %v669_v52, %v635_v49  ;;  %v1488_v43 = vmov 0.0   ;;  %v804_v49 = vld [vmem:[#allocation2 + $0x10] sm:$0xff] }
  0xb6   : > { %v674_v63 = vperm.slane %v670_v60, %v1554_v13  ;;  %v689_v1 = vsel %vm378_vm0, %v688_v58, %v661_v59  ;;  %338 = vst.msk [vmem:[#allocation3] sm:$0xff] %vm333_vm2, %v1488_v43 }
  0xb7   : > { %v693_v5 = vperm.slane %v689_v1, %v1554_v13  ;;  %339 = vst.msk [vmem:[#allocation3 + $0x8] sm:$0xff] %vm333_vm2, %v1488_v43 }
  0xb8   : > { %v675_v4 = vrot.slane %v674_v63, 4  ;;  %340 = vst.msk [vmem:[#allocation3 + $0x10] sm:$0xff] %vm333_vm2, %v1488_v43 }
  0xb9   : > { %v694_v7 = vrot.slane %v693_v5, 4  ;;  %341 = vst.msk [vmem:[#allocation3 + $0x18] sm:$0xff] %vm333_vm2, %v1488_v43 }
  0xba   : > { %v676_v6 = vsel %vm378_vm0, %v675_v4, %v668_v62  ;;  %343 = vst.msk [vmem:[#allocation4] sm:$0xff] %vm342_vm1, %v1488_v43 }
  0xbb   : > { %v680_v9 = vperm.slane %v676_v6, %v1560_v33  ;;  %v695_v12 = vsel %vm378_vm0, %v694_v7, %v687_v0  ;;  %344 = vst.msk [vmem:[#allocation4 + $0x8] sm:$0xff] %vm342_vm1, %v1488_v43 }
  0xbc   : > { %v699_v16 = vperm.slane %v695_v12, %v1560_v33  ;;  %345 = vst.msk [vmem:[#allocation4 + $0x10] sm:$0xff] %vm342_vm1, %v1488_v43 }
  0xbd   : > { %v705_v17 = vshrl.u32 %v680_v9, 16  ;;  %v681_v18 = vrot.slane %v680_v9, 4  ;;  %346 = vst.msk [vmem:[#allocation4 + $0x18] sm:$0xff] %vm342_vm1, %v1488_v43 }
  0xbe   : > { %v704_v22 = vpack.i.b16 %v699_v16, %v680_v9  ;;  %v706_v23 = vshrl.u32 %v699_v16, 16  ;;  %v700_v26 = vrot.slane %v699_v16, 4 }
  0xbf   : > { %v682_v25 = vsel %vm378_vm0, 0, %v681_v18 }
  0xc0   : > { %v932_v29 = vsel %vm930_vm3, %v704_v22, 0  ;;  %v707_v51 = vpack.i.b16 %v706_v23, %v705_v17  ;;  %v701_v30 = vsel %vm378_vm0, 0, %v700_v26  ;;  %v711_v31 = vshrl.u32 %v682_v25, 16  ;;  %v866_v26 = vld [vmem:[#allocation3] sm:$0xff] }
  0xc1   : > { %941 = vmatpush.bf16.msrb.mxu0 %v932_v29  ;;  %v710_v35 = vpack.i.b16 %v701_v30, %v682_v25  ;;  %v712_v36 = vshrl.u32 %v701_v30, 16 }
  0xc2   : > { %v951_v34 = vsel %vm930_vm3, %v707_v51, 0 }
  0xc3   : > { %960 = vmatpush.bf16.msrb.mxu1 %v951_v34  ;;  %v970_v38 = vsel %vm930_vm3, %v710_v35, 0  ;;  %v713_v39 = vpack.i.b16 %v712_v36, %v711_v31  ;;  %v868_v35 = vld [vmem:[#allocation3 + $0x10] sm:$0xff] }
  0xc4   : > { %979 = vmatpush.bf16.msrb.mxu2 %v970_v38 }
  0xc5   : > { %v989_v41 = vsel %vm930_vm3, %v713_v39, 0 }
  0xc6   : > { %998 = vmatpush.bf16.msrb.mxu3 %v989_v41 }
 0x129   : > { %v730_v48 = vpop.f32.mrf.mxu0 }
 0x12a   : > { %v791_v54 = vmul.f32 0.35355338, %v730_v48  ;;  %v1716_v48 = vld [vmem:[#allocation2 + $0x8] sm:$0xff] }
 0x12b   : > { %v749_v57 = vpop.f32.mrf.mxu1 }
 0x12c   : > { %v1672_v61 = vadd.f32 %v1432_v45, %v791_v54  ;;  %v792_v2 = vmul.f32 0.35355338, %v749_v57  ;;  %v1721_v54 = vld [vmem:[#allocation2 + $0x18] sm:$0xff] }
 0x12e   : > { %v806_v3 = vsel %vm342_vm1, %v1672_v61, -inf  ;;  %v1683_v11 = vadd.f32 %v1432_v45, %v792_v2 }
 0x12f   : > { %807 = vmax.xlane.f32.xlu2 %v806_v3 }
 0x130   : > { %v809_v24 = vsel %vm342_vm1, %v1683_v11, -inf }
 0x131   : > { %v732_v8 = vpop.f32.mrf.mxu0 }
 0x132   : > { %v768_v10 = vpop.f32.mrf.mxu2 }
 0x133   : > { %v793_v14 = vmul.f32 0.35355338, %v768_v10  ;;  %v751_v15 = vpop.f32.mrf.mxu1 }
 0x134   : > { %v787_v19 = vpop.f32.mrf.mxu3 }
 0x135   : > { %v794_v20 = vmul.f32 0.35355338, %v787_v19  ;;  %v1687_v21 = vadd.f32 %v1432_v45, %v793_v14 }
 0x137   : > { %810 = vmax.xlane.f32.xlu2 %v809_v24  ;;  %v812_v27 = vsel %vm342_vm1, %v1687_v21, -inf  ;;  %v1694_v28 = vadd.f32 %v1432_v45, %v794_v20 }
 0x138   : > { %813 = vmax.xlane.f32.xlu0 %v812_v27 }
 0x139   : > { %v815_v32 = vsel %vm342_vm1, %v1694_v28, -inf }
 0x13a   : > { %816 = vmax.xlane.f32.xlu1 %v815_v32  ;;  %v770_v37 = vpop.f32.mrf.mxu2 }
 0x13b   : > { %v869_v37 = vld [vmem:[#allocation3 + $0x18] sm:$0xff] }
 0x13c   : > { %v789_v40 = vpop.f32.mrf.mxu3 }
 0x1a2   : > { %v808_v45 = vpop.xlane.xlu2 %807 }
 0x1a3   : > { %v818_v46 = vmax.f32 %v1711_v44, %v808_v45  ;;  %v867_v45 = vld [vmem:[#allocation3 + $0x8] sm:$0xff] }
 0x1a5   : > { %v822_v47 = vsub.f32 %v1711_v44, %v818_v46  ;;  %1012 = vst.msk [vmem:[#allocation2] sm:$0xff] %vm333_vm2, %v818_v46  ;;  %836 = vperm.xlu2 %1430, %v818_v46  }
 0x1a7   : > { %v826_v24 = vmul.f32 1.442695, %v822_v47 }
 0x1aa   : > { %v811_v50 = vpop.xlane.xlu2 %810 }
 0x1ab   : > { %v1719_v52 = vmax.f32 %v1716_v48, %v811_v50  ;;  %v814_v53 = vpop.xlane.xlu0 %813 }
 0x1ac   : > { %v820_v55 = vmax.f32 %v804_v49, %v814_v53 }
 0x1ad   : > { %v823_v56 = vsub.f32 %v1716_v48, %v1719_v52  ;;  %1013 = vst.msk [vmem:[#allocation2 + $0x8] sm:$0xff] %vm333_vm2, %v1719_v52  ;;  %v817_v57 = vpop.xlane.xlu1 %816 }
 0x1ae   : > { %v824_v58 = vsub.f32 %v804_v49, %v820_v55  ;;  %1014 = vst.msk [vmem:[#allocation2 + $0x10] sm:$0xff] %vm333_vm2, %v820_v55  ;;  %v821_v59 = vmax.f32 %v1721_v54, %v817_v57  ;;  %846 = vperm.xlu0 %1429, %v820_v55   ;;  %v897_v57 = vld [vmem:[#allocation4 + $0x10] sm:$0xff] }
 0x1af   : > { %v828_v34 = vmul.f32 1.442695, %v823_v56 }
 0x1b0   : > { %v825_v60 = vsub.f32 %v1721_v54, %v821_v59  ;;  %1015 = vst.msk [vmem:[#allocation2 + $0x18] sm:$0xff] %vm333_vm2, %v821_v59  ;;  %851 = vperm.xlu1 %1431, %v821_v59  }
 0x1b2   : > { %v832_v32 = vmul.f32 1.442695, %v825_v60 }
 0x1b8   : > { %841 = vperm.xlu1 %1431, %v1719_v52  }
 0x1ff   : > { %v837_v62 = vpop.permute.xlu2 %836 }
 0x200   : > { %v854_v63 = vsub.f32 %v1672_v61, %v837_v62 }
 0x202   : > { %v858_v0 = vmul.f32 1.442695, %v854_v63 }
 0x204   : > { %1433 = vpow2.f32 %v858_v0 }
 0x20a   : > { %v1434_v1 = vpop.eup %1433 }
 0x20b   : > { %v874_v2 = vsel %vm342_vm1, %v1434_v1, 0.0  ;;  %v923_v3 = vpack.c.bf16 %v1434_v1, %v1434_v1  ;;  %v895_v1 = vld [vmem:[#allocation4] sm:$0xff] }
 0x20c   : > { %875 = vadd.xlane.f32.xlu2 %v874_v2 }
 0x20d   : > { %1387 = vmatmul.msk.bf16.vlgmr.msrb.gmra.mxu0 %vm342_vm1, %v923_v3 }
 0x220   : > { %v847_v4 = vpop.permute.xlu0 %846 }
 0x221   : > { %v856_v5 = vsub.f32 %v1687_v21, %v847_v4 }
 0x222   : > { %v852_v6 = vpop.permute.xlu1 %851 }
 0x223   : > { %v862_v7 = vmul.f32 1.442695, %v856_v5  ;;  %v857_v8 = vsub.f32 %v1694_v28, %v852_v6 }
 0x225   : > { %1435 = vpow2.f32 %v862_v7  ;;  %v864_v9 = vmul.f32 1.442695, %v857_v8 }
 0x227   : > { %1437 = vpow2.f32 %v864_v9 }
 0x22a   : > { %v842_v61 = vpop.permute.xlu1 %841 }
 0x22b   : > { %v1436_v10 = vpop.eup %1435  ;;  %v855_v12 = vsub.f32 %v1683_v11, %v842_v61  ;;  %v830_v11 = vmul.f32 1.442695, %v824_v58 }
 0x22c   : > { %v880_v14 = vsel %vm342_vm1, %v1436_v10, 0.0  ;;  %v925_v15 = vpack.c.bf16 %v1436_v10, %v1436_v10 }
 0x22d   : > { %v1438_v16 = vpop.eup %1437  ;;  %v860_v17 = vmul.f32 1.442695, %v855_v12  ;;  %881 = vadd.xlane.f32.xlu0 %v880_v14  ;;  %v898_v12 = vld [vmem:[#allocation4 + $0x18] sm:$0xff] }
 0x22e   : > { %1389 = vmatmul.msk.bf16.vlgmr.msrb.gmra.mxu2 %vm342_vm1, %v925_v15  ;;  %v883_v18 = vsel %vm342_vm1, %v1438_v16, 0.0  ;;  %v926_v19 = vpack.c.bf16 %v1438_v16, %v1438_v16 }
 0x22f   : > { %1439 = vpow2.f32 %v860_v17  ;;  %884 = vadd.xlane.f32.xlu1 %v883_v18 }
 0x230   : > { %1390 = vmatmul.msk.bf16.vlgmr.msrb.gmra.mxu3 %vm342_vm1, %v926_v19  ;;  %1441 = vpow2.f32 %v830_v11 }
 0x231   : > { %1443 = vpow2.f32 %v826_v24 }
 0x232   : > { %1445 = vpow2.f32 %v832_v32 }
 0x233   : > { %1447 = vpow2.f32 %v828_v34 }
 0x235   : > { %v1440_v20 = vpop.eup %1439 }
 0x236   : > { %v877_v21 = vsel %vm342_vm1, %v1440_v20, 0.0  ;;  %v924_v22 = vpack.c.bf16 %v1440_v20, %v1440_v20  ;;  %v1442_v23 = vpop.eup %1441 }
 0x237   : > { %878 = vadd.xlane.f32.xlu0 %v877_v21  ;;  %v1444_v25 = vpop.eup %1443  ;;  %v872_v38 = vmul.f32 %v1442_v23, %v868_v35 }
 0x238   : > { %1388 = vmatmul.msk.bf16.vlgmr.msrb.gmra.mxu1 %vm342_vm1, %v924_v22  ;;  %v870_v27 = vmul.f32 %v1444_v25, %v866_v26  ;;  %v1446_v36 = vpop.eup %1445 }
 0x239   : > { %v873_v41 = vmul.f32 %v1446_v36, %v869_v37  ;;  %v1448_v44 = vpop.eup %1447 }
 0x23a   : > { %v871_v46 = vmul.f32 %v1448_v44, %v867_v45 }
 0x24b   : > { %911 = vperm.xlu0 %1429, %v1442_v23  }
 0x27f   : > { %v876_v28 = vpop.xlane.xlu2 %875 }
 0x280   : > { %v886_v29 = vadd.f32 %v876_v28, %v870_v27  ;;  %v896_v28 = vld [vmem:[#allocation4 + $0x8] sm:$0xff] }
 0x282   : > { %891 = vst.msk [vmem:[#allocation3] sm:$0xff] %vm333_vm2, %v886_v29 }
 0x289   : > { %v1023_v51 = vld [vmem:[#allocation3] sm:$0xff] }
 0x28a   : > { %v943_v30 = vpop.f32.mrf.mxu0  ;;  %1029 = vperm.xlu1 %1431, %v1023_v51  }
 0x292   : > { %v945_v31 = vpop.f32.mrf.mxu0  ;;  %901 = vperm.xlu1 %1431, %v1444_v25  }
 0x2a0   : > { %v882_v39 = vpop.xlane.xlu0 %881 }
 0x2a1   : > { %v888_v40 = vadd.f32 %v882_v39, %v872_v38 }
 0x2a2   : > { %v885_v42 = vpop.xlane.xlu1 %884 }
 0x2a3   : > { %893 = vst.msk [vmem:[#allocation3 + $0x10] sm:$0xff] %vm333_vm2, %v888_v40  ;;  %v889_v43 = vadd.f32 %v885_v42, %v873_v41 }
 0x2a5   : > { %894 = vst.msk [vmem:[#allocation3 + $0x18] sm:$0xff] %vm333_vm2, %v889_v43 }
 0x2aa   : > { %v879_v47 = vpop.xlane.xlu0 %878  ;;  %v1025_v58 = vld [vmem:[#allocation3 + $0x10] sm:$0xff] }
 0x2ab   : > { %v887_v48 = vadd.f32 %v879_v47, %v871_v46 }
 0x2ac   : > { %v1026_v49 = vld [vmem:[#allocation3 + $0x18] sm:$0xff] }
 0x2ad   : > { %892 = vst.msk [vmem:[#allocation3 + $0x8] sm:$0xff] %vm333_vm2, %v887_v48  ;;  %1044 = vperm.xlu0 %1429, %v1026_v49  }
 0x2b1   : > { %v981_v50 = vpop.f32.mrf.mxu2 }
 0x2b3   : > { %v1000_v52 = vpop.f32.mrf.mxu3 }
 0x2b4   : > { %v1024_v53 = vld [vmem:[#allocation3 + $0x8] sm:$0xff] }
 0x2b5   : > { %v1751_v54 = vpop.f32.mrf.mxu1  ;;  %1034 = vperm.xlu2 %1430, %v1024_v53   ;;  %906 = vperm.xlu0 %1429, %v1448_v44  }
 0x2b9   : > { %v983_v55 = vpop.f32.mrf.mxu2 }
 0x2bb   : > { %v1002_v56 = vpop.f32.mrf.mxu3 }
 0x2bd   : > { %v964_v59 = vpop.f32.mrf.mxu1  ;;  %v912_v60 = vpop.permute.xlu0 %911  ;;  %1039 = vperm.xlu2 %1430, %v1025_v58  }
 0x2be   : > { %v921_v62 = vmul.f32 %v912_v60, %v897_v57 }
 0x2c0   : > { %v1006_v63 = vadd.f32 %v981_v50, %v921_v62 }
 0x2c2   : > { %1010 = vst.msk [vmem:[#allocation4 + $0x10] sm:$0xff] %vm342_vm1, %v1006_v63 }
 0x2c5   : > { %916 = vperm.xlu2 %1430, %v1446_v36  }
 0x2c9   : > { %v1021_v38 = vld [vmem:[#allocation4 + $0x10] sm:$0xff] }
 0x2fc   : > { %v1030_v0 = vpop.permute.xlu1 %1029 }
 0x2fd   : > { %1449 = vrcp.f32 %v1030_v0  ;;  %v1058_v26 = vand.u32 2147483648, %v1030_v0  ;;  %vm1052_vm7 = vweird.f32 %v1030_v0  ;;  %v1056_v51 = vand.u32 2147483647, %v1030_v0 }
 0x2ff   : > { %v1059_v41 = vor.u32 1.1754944e-38, %v1058_v26  ;;  %vm1057_vm11 = vcmp.eq.f32.partialorder %v1056_v51, 8.507059e+37 }
 0x303   : > { %v1450_v6 = vpop.eup %1449 }
 0x304   : > { %v902_v2 = vpop.permute.xlu1 %901  ;;  %v1048_v8 = vmul.f32 %v1450_v6, %v1030_v0  ;;  %vm1053_vm5 = vweird.f32 %v1450_v6 }
 0x305   : > { %v919_v3 = vmul.f32 %v902_v2, %v895_v1  ;;  %vm1763_vm9 = vmor %vm1052_vm7, %vm1053_vm5  ;;  %vm1233_vm7 = vcmask 195584  }
 0x306   : > { %v1049_v9 = vsub.f32 1.0, %v1048_v8 }
 0x307   : > { %v1004_v4 = vadd.f32 %v943_v30, %v919_v3 }
 0x308   : > { %v1050_v17 = vmul.f32 %v1450_v6, %v1049_v9 }
 0x309   : > { %1008 = vst.msk [vmem:[#allocation4] sm:$0xff] %vm342_vm1, %v1004_v4 }
 0x30a   : > { %v1051_v24 = vadd.f32 %v1450_v6, %v1050_v17 }
 0x30c   : > { %v1055_v36 = vsel %vm1763_vm9, %v1450_v6, %v1051_v24 }
 0x30d   : > { %v1060_v47 = vsel %vm1057_vm11, %v1059_v41, %v1055_v36 }
 0x30f   : > { %v1755_v5 = vpop.permute.xlu2 %1034 }
 0x310   : > { %1451 = vrcp.f32 %v1755_v5  ;;  %v1019_v42 = vld [vmem:[#allocation4] sm:$0xff]  ;;  %v1073_v55 = vand.u32 2147483648, %v1755_v5  ;;  %vm1067_vm15 = vweird.f32 %v1755_v5 }
 0x312   : > { %v1074_v1 = vor.u32 1.1754944e-38, %v1073_v55 }
 0x316   : > { %v1758_v61 = vpop.eup %1451 }
 0x317   : > { %v1040_v7 = vpop.permute.xlu2 %1039  ;;  %v1063_v18 = vmul.f32 %v1758_v61, %v1755_v5  ;;  %vm1068_vm13 = vweird.f32 %v1758_v61 }
 0x318   : > { %1453 = vrcp.f32 %v1040_v7  ;;  %v1088_v21 = vand.u32 2147483648, %v1040_v7  ;;  %v1086_v11 = vand.u32 2147483647, %v1040_v7  ;;  %vm1082_vm6 = vweird.f32 %v1040_v7  ;;  %vm1069_vm3 = vmor %vm1067_vm15, %vm1068_vm13 }
 0x319   : > { %v1064_v25 = vsub.f32 1.0, %v1063_v18 }
 0x31a   : > { %v1089_v30 = vor.u32 1.1754944e-38, %v1088_v21  ;;  %vm1087_vm10 = vcmp.eq.f32.partialorder %v1086_v11, 8.507059e+37 }
 0x31b   : > { %v1065_v37 = vmul.f32 %v1758_v61, %v1064_v25 }
 0x31d   : > { %v1066_v50 = vadd.f32 %v1758_v61, %v1065_v37 }
 0x31e   : > { %v1454_v10 = vpop.eup %1453 }
 0x31f   : > { %v1078_v14 = vmul.f32 %v1454_v10, %v1040_v7  ;;  %v1045_v15 = vpop.permute.xlu0 %1044  ;;  %v917_v16 = vpop.permute.xlu2 %916  ;;  %vm1083_vm4 = vweird.f32 %v1454_v10  ;;  %v1070_v59 = vsel %vm1069_vm3, %v1758_v61, %v1066_v50 }
 0x320   : > { %1455 = vrcp.f32 %v1045_v15  ;;  %v922_v20 = vmul.f32 %v917_v16, %v898_v12  ;;  %vm1084_vm8 = vmor %vm1082_vm6, %vm1083_vm4  ;;  %v1103_v45 = vand.u32 2147483648, %v1045_v15  ;;  %v1101_v49 = vand.u32 2147483647, %v1045_v15 }
 0x321   : > { %v1079_v19 = vsub.f32 1.0, %v1078_v14  ;;  %vm1097_vm14 = vweird.f32 %v1045_v15  ;;  %vm1231_vm6 = vcmask 130048  }
 0x322   : > { %v1007_v23 = vadd.f32 %v1000_v52, %v922_v20  ;;  %v1061_v52 = vmul.f32 %v1060_v47, %v1019_v42  ;;  %v1104_v57 = vor.u32 1.1754944e-38, %v1103_v45  ;;  %vm1102_vm4 = vcmp.eq.f32.partialorder %v1101_v49, 8.507059e+37 }
 0x323   : > { %v1080_v22 = vmul.f32 %v1454_v10, %v1079_v19 }
 0x324   : > { %1011 = vst.msk [vmem:[#allocation4 + $0x18] sm:$0xff] %vm342_vm1, %v1007_v23  ;;  %v1110_v60 = vrot.slane %v1061_v52, 4 }
 0x325   : > { %v1081_v27 = vadd.f32 %v1454_v10, %v1080_v22 }
 0x326   : > { %v1456_v29 = vpop.eup %1455 }
 0x327   : > { %v1085_v32 = vsel %vm1084_vm8, %v1454_v10, %v1081_v27  ;;  %v1093_v34 = vmul.f32 %v1456_v29, %v1045_v15  ;;  %v907_v35 = vpop.permute.xlu0 %906  ;;  %vm1098_vm12 = vweird.f32 %v1456_v29  ;;  %vm1236_vm8 = vcmask 257024  }
 0x328   : > { %v1090_v39 = vsel %vm1087_vm10, %v1089_v30, %v1085_v32  ;;  %v920_v40 = vmul.f32 %v907_v35, %v896_v28  ;;  %vm1099_vm2 = vmor %vm1097_vm14, %vm1098_vm12 }
 0x329   : > { %v1091_v43 = vmul.f32 %v1090_v39, %v1021_v38  ;;  %v1094_v44 = vsub.f32 1.0, %v1093_v34 }
 0x32a   : > { %v1005_v46 = vadd.f32 %v1751_v54, %v920_v40  ;;  %v1071_v54 = vand.u32 2147483647, %v1755_v5 }
 0x32b   : > { %v1095_v48 = vmul.f32 %v1456_v29, %v1094_v44  ;;  %v1107_v53 = vrot.slane %v1091_v43, 4  ;;  %v1022_v0 = vld [vmem:[#allocation4 + $0x18] sm:$0xff]  ;;  %v1111_v3 = vsel %vm378_vm0, %v1091_v43, %v1110_v60 }
 0x32c   : > { %1009 = vst.msk [vmem:[#allocation4 + $0x8] sm:$0xff] %vm342_vm1, %v1005_v46  ;;  %vm1072_vm5 = vcmp.eq.f32.partialorder %v1071_v54, 8.507059e+37  ;;  %v1119_v9 = vperm.slane %v1111_v3, %v1554_v13 }
 0x32d   : > { %v1096_v56 = vadd.f32 %v1456_v29, %v1095_v48  ;;  %v1109_v62 = vsel %vm378_vm0, %v1107_v53, %v1061_v52  ;;  %v1075_v4 = vsel %vm1072_vm5, %v1074_v1, %v1070_v59 }
 0x32e   : > { %v1115_v5 = vperm.slane %v1109_v62, %v1554_v13  ;;  %v1146_v16 = vrot.slane %v1119_v9, 4 }
 0x32f   : > { %v1100_v58 = vsel %vm1099_vm2, %v1456_v29, %v1096_v56 }
 0x330   : > { %v1105_v63 = vsel %vm1102_vm4, %v1104_v57, %v1100_v58  ;;  %v1134_v12 = vrot.slane %v1115_v5, 4 }
 0x331   : > { %v1106_v2 = vmul.f32 %v1105_v63, %v1022_v0 }
 0x333   : > { %v1020_v6 = vld [vmem:[#allocation4 + $0x8] sm:$0xff]  ;;  %v1120_v7 = vrot.slane %v1106_v2, 4 }
 0x334   : > { %v1076_v8 = vmul.f32 %v1075_v4, %v1020_v6 }
 0x336   : > { %v1121_v61 = vsel %vm378_vm0, %v1120_v7, %v1076_v8  ;;  %v1122_v10 = vrot.slane %v1076_v8, 4 }
 0x337   : > { %v1127_v14 = vperm.slane %v1121_v61, %v1554_v13 }
 0x338   : > { %v1123_v15 = vsel %vm378_vm0, %v1106_v2, %v1122_v10 }
 0x339   : > { %v1131_v17 = vperm.slane %v1123_v15, %v1554_v13  ;;  %v1132_v18 = vrot.slane %v1127_v14, 4  ;;  %v1135_v19 = vsel %vm378_vm0, %v1127_v14, %v1134_v12 }
 0x33a   : > { %v1143_v20 = vperm.slane %v1135_v19, %v1560_v33 }
 0x33b   : > { %v1133_v21 = vsel %vm378_vm0, %v1132_v18, %v1115_v5  ;;  %v1144_v22 = vrot.slane %v1131_v17, 4  ;;  %v1147_v11 = vsel %vm378_vm0, %v1131_v17, %v1146_v16 }
 0x33c   : > { %v1139_v23 = vperm.slane %v1133_v21, %v1560_v33  ;;  %v1155_v24 = vperm.slane %v1147_v11, %v1560_v33  ;;  %v1158_v25 = vrot.slane %v1143_v20, 4 }
 0x33d   : > { %v1145_v26 = vsel %vm378_vm0, %v1144_v22, %v1119_v9 }
 0x33e   : > { %v1151_v27 = vperm.slane %v1145_v26, %v1560_v33  ;;  %v1156_v28 = vrot.slane %v1139_v23, 4  ;;  %v1159_v29 = vsel %vm378_vm0, 0.0, %v1158_v25  ;;  %v1162_v51 = vrot.slane %v1155_v24, 4 }
 0x33f   : > { %v1164_v30 = vsel %vm378_vm0, %v1158_v25, %v1139_v23  ;;  %v1169_v31 = vrot.slane %v1159_v29, 4 }
 0x340   : > { %v1157_v32 = vsel %vm378_vm0, 0.0, %v1156_v28  ;;  %v1160_v34 = vrot.slane %v1151_v27, 4  ;;  %v1163_v35 = vsel %vm378_vm0, 0.0, %v1162_v51  ;;  %v1168_v36 = vperm.slane %v1164_v30, %v1554_v13 }
 0x341   : > { %v1170_v37 = vsel %vm378_vm0, %v1169_v31, %v1157_v32  ;;  %v1175_v38 = vsel %vm378_vm0, %v1162_v51, %v1151_v27  ;;  %v1180_v39 = vrot.slane %v1163_v35, 4 }
 0x342   : > { %v1161_v40 = vsel %vm378_vm0, 0.0, %v1160_v34  ;;  %v1174_v41 = vperm.slane %v1170_v37, %v1554_v13  ;;  %v1179_v42 = vperm.slane %v1175_v38, %v1554_v13  ;;  %v1188_v43 = vrot.slane %v1168_v36, 4 }
 0x343   : > { %v1181_v44 = vsel %vm378_vm0, %v1180_v39, %v1161_v40 }
 0x344   : > { %v1185_v45 = vperm.slane %v1181_v44, %v1554_v13  ;;  %v1189_v46 = vsel %vm378_vm0, %v1174_v41, %v1188_v43  ;;  %v1200_v47 = vrot.slane %v1179_v42, 4  ;;  %v1186_v48 = vrot.slane %v1174_v41, 4 }
 0x345   : > { %v1197_v49 = vperm.slane %v1189_v46, %v1560_v33 }
 0x346   : > { %v1201_v50 = vsel %vm378_vm0, %v1185_v45, %v1200_v47  ;;  %v1187_v52 = vsel %vm378_vm0, %v1186_v48, %v1168_v36  ;;  %v1198_v53 = vrot.slane %v1185_v45, 4 }
 0x347   : > { %v1209_v55 = vperm.slane %v1201_v50, %v1560_v33  ;;  %v1216_v56 = vrot.slane %v1197_v49, 4  ;;  %v1193_v54 = vperm.slane %v1187_v52, %v1560_v33 }
 0x348   : > { %v1199_v57 = vsel %vm378_vm0, %v1198_v53, %v1179_v42 }
 0x349   : > { %v1217_v13 = vsel %vm378_vm0, %v1209_v55, %v1216_v56  ;;  %v1214_v58 = vrot.slane %v1209_v55, 4  ;;  %v1205_v59 = vperm.slane %v1199_v57, %v1560_v33  ;;  %v1212_v60 = vrot.slane %v1193_v54, 4 }
 0x34a   : > { %1227 = vrot.lane.b32.xlu0 %v1217_v13, %s1489_s11 }
 0x34b   : > { %v1215_v62 = vsel %vm378_vm0, %v1214_v58, %v1197_v49  ;;  %v1210_v63 = vrot.slane %v1205_v59, 4  ;;  %v1213_v0 = vsel %vm378_vm0, %v1205_v59, %v1212_v60 }
 0x34c   : > { %1223 = vrot.lane.b32.xlu2 %v1215_v62, %s1490_s12  ;;  %1219 = vrot.lane.b32.xlu1 %v1213_v0, %s1491_s13 }
 0x34d   : > { %v1211_v1 = vsel %vm378_vm0, %v1210_v63, %v1193_v54 }
 0x3a6   : > { %v1224_v3 = vpop.permute.xlu2 %1223 }
 0x3bc   : > { %v1228_v4 = vpop.permute.xlu0 %1227 }
 0x3be   : > { %v1220_v2 = vpop.permute.xlu1 %1219 }
 0x3bf   : > { %v1230_v33 = vsel %vm342_vm1, %v1211_v1, %v1220_v2 }
 0x3c0   : > { %v1232_v5 = vsel %vm1231_vm6, %v1230_v33, %v1224_v3 }
 0x3c1   : > { %v1234_v6 = vsel %vm1233_vm7, %v1232_v5, %v1228_v4 }
 0x3c2   : > { %v1235_v7 = vpack.c.bf16 %v1234_v6, %v1234_v6 }
 0x3c4   : > { %1237 = vst.msk [vmem:[%s326_s21] sm:$0xf] %vm1236_vm8, %v1235_v7 }
 0x3c5 PF: > { %s14_s17 = sadd.s32 1, %s1479_s17   ;;  %s1839_s15 = smov %s1475_s16 }
 0x3c6   : > { %p11_p5 = scmp.ge.s32.totalorder %s14_s17, 4   ;;  %s1840_s16 = smov %s1842_s18 }
 0x3c8   :  { %13 = sbr.rel (!%p11_p5) target bundleno = 2 (0x2), region = 83 }

// kernel: transformer_forward.18
= control target key start
LH: loop header
LB: loop body
LE: loop exit
PB: predicated region body
PF: predicated region fallthrough
CT: control target
= control target key end

     0   :  { %vm22_vm0 = vcmask 261120   ;;  %v147_v1 = vmov 0.0   ;;  %vm66_vm1 = vcmask 523264   ;;  %vm108_vm2 = vcmask 257024   ;;  %s204_s1 = inlined_call_operand.vmem [shape: bf16[64,32], index: 1, kind: input, shape index: {}]   ;;  %s205_s2 = inlined_call_operand.vmem [shape: f32[1,32], index: 2, kind: input, shape index: {}]   ;;  %s206_s0 = inlined_call_operand.vmem [shape: bf16[16,64], index: 0, kind: input, shape index: {}]   ;;  %s207_s3 = inlined_call_operand.vmem [shape: bf16[16,32], index: 3, kind: input, shape index: {}]   ;;  %s208_s4 = inlined_call_operand.vmem [shape: bf16[16,32], index: 4, kind: output, shape index: {}]  }
   0x1   :  { %v140_v0 = vld [vmem:[%s204_s1 + $0x18] sm:$0xff]  ;;  %23 = vst.msk [vmem:[#allocation2] sm:$0xff] %vm22_vm0, %v147_v1  ;;  %v139_v2 = vld [vmem:[%s204_s1 + $0x10] sm:$0xff]  ;;  %v138_v3 = vld [vmem:[%s204_s1 + $0x8] sm:$0xff] }
   0x2   :  { %24 = vst.msk [vmem:[#allocation2 + $0x8] sm:$0xff] %vm22_vm0, %v147_v1  ;;  %74 = vmatpush.bf16.msra.mxu0 %v140_v0  ;;  %v137_v4 = vld [vmem:[%s204_s1] sm:$0xff] }
   0x3   :  { %v136_v5 = vld [vmem:[%s206_s0] sm:$0xff] }
   0x4   :  { %v142_v9 = vld [vmem:[%s207_s3] sm:$0xff]  }
   0x5   :  { %v146_v11 = vld [vmem:[%s205_s2] ss:$0 sm:$0xff]  ;;  %v143_v13 = vunpack.c.l.bf16 %v142_v9  ;;  %v144_v19 = vunpack.c.h.bf16 %v142_v9 }
   0x6   :  { %75 = vmatpush.bf16.msra.mxu0 %v139_v2 }
   0x8   :  { %v25_v6 = vld [vmem:[#allocation2] sm:$0xff] }
   0x9   :  { %v26_v10 = vld [vmem:[#allocation2 + $0x8] sm:$0xff] }
   0xa   :  { %76 = vmatpush.bf16.msra.mxu0 %v138_v3 }
   0xe   :  { %77 = vmatpush.bf16.msra.mxu0 %v137_v4 }
  0x11   :  { %135 = vmatmul.msk.bf16.vlgmr.msra.gmra.mxu0 %vm66_vm1, %v136_v5 }
  0x8e   :  { %v79_v7 = vpop.f32.mrf.mxu0 }
  0x8f   :  { %v84_v8 = vadd.f32 %v79_v7, %v25_v6 }
  0x91   :  { %87 = vst.msk [vmem:[#allocation2] sm:$0xff] %vm22_vm0, %v84_v8 }
  0x96   :  { %v81_v12 = vpop.f32.mrf.mxu0 }
  0x97   :  { %v85_v14 = vadd.f32 %v81_v12, %v26_v10 }
  0x98   :  { %v92_v15 = vld [vmem:[#allocation2] sm:$0xff] }
  0x99   :  { %v98_v16 = vadd.f32 %v146_v11, %v92_v15  ;;  %88 = vst.msk [vmem:[#allocation2 + $0x8] sm:$0xff] %vm22_vm0, %v85_v14 }
  0x9b   :  { %v104_v17 = vadd.f32 %v143_v13, %v98_v16 }
  0x9d   :  { %v106_v18 = vpack.c.bf16 %v104_v17, %v104_v17 }
  0x9f   :  { %109 = vst.msk [vmem:[%s208_s4] sm:$0xf] %vm108_vm2, %v106_v18 }
  0xa0   :  { %v93_v20 = vld [vmem:[#allocation2 + $0x8] sm:$0xff] }
  0xa1   :  { %v99_v21 = vadd.f32 %v146_v11, %v93_v20 }
  0xa3   :  { %v105_v22 = vadd.f32 %v144_v19, %v99_v21 }
  0xa5   :  { %v107_v23 = vpack.c.bf16 %v105_v22, %v105_v22 }
  0xa7   :  { %110 = vst.msk [vmem:[%s208_s4 + $0x4] sm:$0xf] %vm108_vm2, %v107_v23 }

// kernel: transformer_forward.25
= control target key start
LH: loop header
LB: loop body
LE: loop exit
PB: predicated region body
PF: predicated region fallthrough
CT: control target
= control target key end

     0   :  { %7 = vsyncpa [#allocation3], 0  ;;  %s555_s0 = inlined_call_operand.vmem [shape: bf16[2,8,32], index: 0, kind: input, shape index: {}]   ;;  %s556_s1 = inlined_call_operand.vmem [shape: f32[1,32], index: 1, kind: input, shape index: {}]   ;;  %s557_s2 = inlined_call_operand.hbm [shape: f32[2,8,32], index: 2, kind: output, shape index: {}]  }
   0x1   :  { %9 = vsyncpa [#allocation3 + $0x1], 0  ;;  %s453_s9 = smov 0   ;;  %s455_s10 = smov 0  }
   0x2   :  { %s457_s11 = smov 0   ;;  %s459_s12 = smov 0  }
   0x3   :  { %s461_s13 = smov 0   ;;  %s463_s14 = smov 0  }
   0x4 LB: > { %s285_s15 = sadd.s32 4294967295, %s435_s14   ;;  %s286_s16 = sadd.s32 4294967294, %s435_s14   ;;  %s435_s14 = sphi %s463_s14, %s15_s14   ;;  %s431_s13 = sphi %s461_s13, %s564_s13   ;;  %s427_s12 = sphi %s459_s12, %s563_s12   ;;  %s423_s11 = sphi %s457_s11, %s562_s11   ;;  %s419_s10 = sphi %s455_s10, %s561_s10   ;;  %s415_s9 = sphi %s453_s9, %s560_s9  }
   0x5   : > { %s27_s17 = sadd.s32 1, %s431_s13  ;;  %s85_s18 = sadd.s32 1, %s423_s11 }
   0x6   : > { %p29_p0 = scmp.ge.s32.totalorder %s27_s17, 2  ;;  %p95_p1 = scmp.ne.s32.totalorder %s423_s11, %s419_s10 }
   0x7   : > { %p96_p2 = scmp.eq.s32.totalorder %s285_s15, 1  ;;  %p101_p3 = scmp.ne.s32.totalorder %s419_s10, %s415_s9 }
   0x8   : > { %s566_s17 = smov (%p29_p0, %s27_s17), 0  ;;  %p102_p5 = scmp.eq.s32.totalorder %s286_s16, 1 }
   0x9   : > { %p493_p4 = por %p96_p2, %p95_p1  ;;  %s80_s20 = ssub.s32 %s431_s13, %s566_s17 }
   0xa   : > { %p289_p6 = scmp.ge.s32.totalorder %s435_s14, 1  ;;  %p83_p7 = scmp.eq.s32.totalorder %s80_s20, 0 }
   0xb   : > { %p500_p8 = por %p102_p5, %p101_p3  ;;  %p133_p9 = scmp.lt.s32.totalorder %s435_s14, 3 }
   0xc   : > { %s506_s22 = scalar_select %p83_p7, %s423_s11, %s85_s18  }
   0xd   : > { %p134_p10 = pnand %p289_p6, %p133_p9 }
   0xe   : > { %p157_p11 = scmp.lt.s32.totalorder (!%p134_p10), %s427_s12, 1  ;;  %s154_s28 = sand.u32 (!%p134_p10), 1, %s419_s10  }
   0xf   : > { %137 = sbr.rel (%p134_p10) target bundleno = 175 (0xaf), region = 28  ;;  %s290_s29 = sshll.u32 (!%p134_p10), %s154_s28, 3 }
  0x10   : > { %s293_s30 = sshll.u32 (!%p134_p10), %s427_s12, 3  ;;  %s156_s8 = scalar_lea.vmem (!%p134_p10), [#allocation2], %s290_s29 }
  0x11   : > { %s209_s5 = scalar_lea.hbm (!%p134_p10), %s557_s2, %s293_s30  ;;  %s211_s15 = sshll.u32 (!%p134_p10), %s156_s8, 4  ;;  %s212_s15 = int_to_ptr.vmem [resolvable:$true] %s211_s15 }
  0x12   : > { %s213_s16 = sshll.u32 (!%p134_p10), %s209_s5, 4  ;;  %s377_s25 = scalar_lea.hbm (!%p134_p10), %s557_s2, 16  ;;  %s214_s16 = int_to_ptr.hbm [resolvable:$true] %s213_s16 }
  0x13   : > { %s371_s18 = sshra.s32 (!%p134_p10), %s214_s16, 4  ;;  %s372_s18 = int_to_ptr.hbm [resolvable:$true] %s371_s18 }
  0x14   : > { %s158_s23 = scalar_select %p157_p11, %s427_s12, 1  ;;  %vm167_vm0 = vcmask 261120   ;;  %v437_v4 = vmov 32.0   ;;  %v352_v20 = vld [vmem:[%s556_s1] ss:$0 sm:$0xff] }
  0x15   : > { %353 = vrcp.f32 %v437_v4  ;;  %s198_s12 = scalar_lea.sflag [#allocation3], %s154_s28  ;;  %s373_s20 = scalar_lea.hbm %s372_s18, 8 }
  0x16   : > { %s291_s24 = sshll.u32 %s158_s23, 2  ;;  %p374_p12 = scmp.ne.s32.totalorder %s372_s18, %s373_s20 }
  0x17   : > { %s163_s27 = scalar_lea.vmem %s555_s0, %s291_s24  ;;  %p378_p1 = scmp.lt.s32.totalorder %s372_s18, %s557_s2 }
  0x18   : > { %v164_v0 = vld [vmem:[%s163_s27] sm:$0xf]  ;;  %p375_p13 = pnand %p374_p12, %p493_p4  ;;  %p379_p2 = scmp.lt.s32.totalorder %s377_s25, %s373_s20 }
  0x19   : > { %v165_v1 = vunpack.c.l.bf16 %v164_v0 }
  0x1a   : > { %p376_p0 = pneg %p375_p13  ;;  %p380_p3 = por %p379_p2, %p378_p1 }
  0x1b   : > { %v166_v2 = vmul.f32 %v165_v1, %v165_v1  ;;  %v354_v5 = vpop.eup %353 }
  0x1c   : > { %v172_v6 = vmul.f32 32.0, %v354_v5  ;;  %vm176_vm1 = vweird.f32 %v354_v5  ;;  %p381_p5 = pnand %p380_p3, %p376_p0 }
  0x1d   : > { %v168_v3 = vsel %vm167_vm0, %v166_v2, 0.0 }
  0x1e   : > { %169 = vadd.xlane.f32.xlu0 %v168_v3  ;;  %v173_v7 = vsub.f32 1.0, %v172_v6 }
  0x20   : > { %v174_v8 = vmul.f32 %v354_v5, %v173_v7 }
  0x22   : > { %v175_v9 = vadd.f32 %v354_v5, %v174_v8 }
  0x24   : > { %v177_v10 = vsel %vm176_vm1, %v354_v5, %v175_v9 }
  0x91   : > { %v170_v11 = vpop.xlane.xlu0 %169 }
  0x92   : > { %v178_v12 = vmul.f32 %v177_v10, %v170_v11 }
  0x94   : > { %v179_v13 = vadd.f32 1.1920929e-07, %v178_v12 }
  0x96   : > { %355 = vrsqrt.f32 %v179_v13  ;;  %vm186_vm3 = vweird.f32 %v179_v13 }
  0x9c   : > { %v356_v14 = vpop.eup %355 }
  0x9d   : > { %v181_v15 = vmul.f32 %v356_v14, %v179_v13  ;;  %vm187_vm2 = vweird.f32 %v356_v14 }
  0x9e   : > { %vm188_vm4 = vmor %vm186_vm3, %vm187_vm2 }
  0x9f   : > { %v182_v16 = vmul.f32 %v356_v14, %v181_v15 }
  0xa1   : > { %v183_v17 = vmul.f32 0.5, %v182_v16 }
  0xa3   : > { %v184_v18 = vsub.f32 1.5, %v183_v17 }
  0xa5   : > { %v185_v19 = vmul.f32 %v356_v14, %v184_v18 }
  0xa7   : > { %v189_v21 = vsel %vm188_vm4, %v356_v14, %v185_v19 }
  0xa8   : > { %v190_v22 = vmul.f32 %v189_v21, %v165_v1 }
  0xaa   : > { %v195_v23 = vmul.f32 %v352_v20, %v190_v22 }
  0xac   : > { %196 = vst.msk [vmem:[%s156_s8] sm:$0xff] %vm167_vm0, %v195_v23 }
  0xad   : > { %384 = shalt.err (!%p381_p5)
}
  0xae   : > { %296 = dma.vmem_to_hbm [thread:$0]  (%p493_p4), %s212_s15, 128, %s214_s16, %s198_s12  }
  0xaf PF: > { %p302_p6 = scmp.ge.s32.totalorder %s435_s14, 2  ;;  %s225_s28 = sand.u32 1, %s415_s9  }
  0xb0   : > { %s226_s29 = scalar_lea.sflag [#allocation3], %s225_s28 }
  0xb1   : > { %p299_p7 = pnand %p302_p6, %p500_p8 }
  0xb3   : > { %p300_p9 = pneg %p299_p7 }
  0xb5   : > { %410 = dma.done.wait (%p300_p9), %s226_s29, 128  }
  0xb6   : > { %412 = vsyncadd (%p300_p9), %s226_s29, 4294967168  ;;  %s15_s14 = sadd.s32 1, %s435_s14   ;;  %s560_s9 = smov %s419_s10 }
  0xb7   : > { %p12_p10 = scmp.ge.s32.totalorder %s15_s14, 4   ;;  %s561_s10 = smov %s423_s11 }
  0xb8   : > { %s562_s11 = smov %s506_s22  ;;  %s563_s12 = smov %s431_s13 }
  0xb9   : > { %s564_s13 = smov %s566_s17  ;;  %14 = sbr.rel (!%p12_p10) target bundleno = 4 (0x4), region = 63 }
  0xbe   :  { %232 = vsyncpa [#allocation3], 1 }
  0xbf   :  { %234 = vsyncpa [#allocation3 + $0x1], 1 }

// kernel: transformer_forward.19
= control target key start
LH: loop header
LB: loop body
LE: loop exit
PB: predicated region body
PF: predicated region fallthrough
CT: control target
= control target key end

     0   :  { %vm22_vm0 = vcmask 261120   ;;  %v159_v6 = vmov 0.0   ;;  %vm119_vm1 = vcmask 257024   ;;  %s215_s3 = inlined_call_operand.vmem [shape: bf16[32,32], index: 3, kind: input, shape index: {}]   ;;  %s216_s2 = inlined_call_operand.vmem [shape: bf16[32,32], index: 2, kind: input, shape index: {}]   ;;  %s217_s1 = inlined_call_operand.vmem [shape: bf16[16,32], index: 1, kind: input, shape index: {}]   ;;  %s218_s0 = inlined_call_operand.vmem [shape: bf16[16,32], index: 0, kind: input, shape index: {}]   ;;  %s219_s4 = inlined_call_operand.vmem [shape: bf16[16,32], index: 4, kind: output, shape index: {}]  }
   0x1   :  { %v157_v0 = vld [vmem:[%s215_s3 + $0x8] sm:$0xff]  ;;  %v156_v2 = vld [vmem:[%s215_s3] sm:$0xff]  ;;  %23 = vst.msk [vmem:[#allocation2] sm:$0xff] %vm22_vm0, %v159_v6 }
   0x2   :  { %v154_v1 = vld [vmem:[%s216_s2 + $0x8] sm:$0xff]  ;;  %66 = vmatpush.bf16.msra.mxu0 %v157_v0  ;;  %v153_v3 = vld [vmem:[%s216_s2] sm:$0xff]  ;;  %24 = vst.msk [vmem:[#allocation2 + $0x8] sm:$0xff] %vm22_vm0, %v159_v6 }
   0x3   :  { %100 = vmatpush.bf16.msra.mxu1 %v154_v1  ;;  %v155_v4 = vld [vmem:[%s217_s1] sm:$0xff] }
   0x4   :  { %v152_v5 = vld [vmem:[%s218_s0] sm:$0xff] }
   0x6   :  { %67 = vmatpush.bf16.msra.mxu0 %v156_v2 }
   0x7   :  { %101 = vmatpush.bf16.msra.mxu1 %v153_v3 }
   0x8   :  { %v25_v8 = vld [vmem:[#allocation2] sm:$0xff] }
   0x9   :  { %138 = vmatmul.msk.bf16.vlgmr.msra.gmra.mxu0 %vm22_vm0, %v155_v4  ;;  %v26_v13 = vld [vmem:[#allocation2 + $0x8] sm:$0xff] }
   0xa   :  { %151 = vmatmul.msk.bf16.vlgmr.msra.gmra.mxu1 %vm22_vm0, %v152_v5 }
  0x86   :  { %v69_v7 = vpop.f32.mrf.mxu0 }
  0x87   :  { %v103_v9 = vpop.f32.mrf.mxu1 }
  0x88   :  { %v104_v10 = vadd.f32 %v103_v9, %v69_v7 }
  0x8a   :  { %v108_v11 = vadd.f32 %v104_v10, %v25_v8 }
  0x8c   :  { %110 = vst.msk [vmem:[#allocation2] sm:$0xff] %vm22_vm0, %v108_v11 }
  0x8e   :  { %v71_v12 = vpop.f32.mrf.mxu0 }
  0x8f   :  { %v105_v14 = vpop.f32.mrf.mxu1 }
  0x90   :  { %v106_v15 = vadd.f32 %v105_v14, %v71_v12 }
  0x92   :  { %v109_v16 = vadd.f32 %v106_v15, %v26_v13 }
  0x93   :  { %v115_v17 = vld [vmem:[#allocation2] sm:$0xff] }
  0x94   :  { %v117_v18 = vpack.c.bf16 %v115_v17, %v115_v17  ;;  %111 = vst.msk [vmem:[#allocation2 + $0x8] sm:$0xff] %vm22_vm0, %v109_v16 }
  0x96   :  { %120 = vst.msk [vmem:[%s219_s4] sm:$0xf] %vm119_vm1, %v117_v18 }
  0x9b   :  { %v116_v19 = vld [vmem:[#allocation2 + $0x8] sm:$0xff] }
  0x9c   :  { %v118_v20 = vpack.c.bf16 %v116_v19, %v116_v19 }
  0x9e   :  { %121 = vst.msk [vmem:[%s219_s4 + $0x4] sm:$0xf] %vm119_vm1, %v118_v20 }

</bundles_post_ra>
